<compile_context>
chip_gen: v7x
topology: tpu7x:2x2x1
jax: 0.10.0
libtpu: 0.0.40
codegen_flags: <defaults>
</compile_context>

<pallas_src>
import functools

import jax
import jax.numpy as jnp
from jax import lax
from jax.experimental import pallas as pl
from jax.experimental.pallas import tpu as pltpu


# ----------------------------- Pallas kernels ------------------------------

def _conv_relu_pool_kernel(x_ref, w_ref, b_ref, s0_ref, s1_ref, o_ref, *,
                           kh, kw, conv_cols, out_rows):
    """Fused VALID conv (stride 1) + bias + ReLU + 2x2/2 max-pool, one sample.

    x_ref : (1, H, W, Cin)          input image (VMEM)
    w_ref : (kh*kw, Cin, Cout)      weights, w_ref[i*kw+j][c, o] = W[o, c, i, j]
    b_ref : (1, Cout)               bias
    s0/s1 : (out_cols, conv_cols)   0/1 matrices selecting even / odd conv
                                    columns (pooling along W as two matmuls)
    o_ref : (1, out_rows, out_cols, Cout)   pooled output
    """
    bias = b_ref[...]
    s0 = s0_ref[...]
    s1 = s1_ref[...]
    cout = w_ref.shape[-1]

    def row_body(a, carry):
        h0 = 2 * a                                   # top conv row of pool row a
        r0 = jnp.zeros((conv_cols, cout), jnp.float32)   # conv row h0
        r1 = jnp.zeros((conv_cols, cout), jnp.float32)   # conv row h0 + 1
        # in-kernel im2col: each of the kh+1 input rows feeding this pool row is
        # loaded once from VMEM and contributes (via small GEMMs) to both conv
        # rows; nothing is materialized in HBM.
        for i in range(kh + 1):
            for j in range(kw):
                row = x_ref[0, h0 + i, j:j + conv_cols, :]      # (conv_cols, Cin)
                if i < kh:
                    r0 = r0 + jnp.dot(row, w_ref[i * kw + j],
                                      preferred_element_type=jnp.float32)
                if i >= 1:
                    r1 = r1 + jnp.dot(row, w_ref[(i - 1) * kw + j],
                                      preferred_element_type=jnp.float32)
        m = jnp.maximum(r0, r1)                       # pool along H
        pooled = jnp.maximum(                         # pool along W (even/odd)
            jnp.dot(s0, m, preferred_element_type=jnp.float32),
            jnp.dot(s1, m, preferred_element_type=jnp.float32))
        o_ref[0, a, :, :] = jnp.maximum(pooled + bias, 0.0)      # bias + ReLU
        return carry

    lax.fori_loop(0, out_rows, row_body, 0)


def conv2d_relu_pool(x_nhwc, wk, b2d, *, kh, kw):
    """(N,H,W,Cin) -> (N,(H-kh+1)//2,(W-kw+1)//2,Cout); grid parallel over N."""
    n, h, w, cin = x_nhwc.shape
    cout = wk.shape[-1]
    conv_rows, conv_cols = h - kh + 1, w - kw + 1
    out_rows, out_cols = conv_rows // 2, conv_cols // 2
    cols_i = jnp.arange(conv_cols)[None, :]
    rows_i = jnp.arange(out_cols)[:, None]
    s0 = (cols_i == 2 * rows_i).astype(jnp.float32)      # (out_cols, conv_cols)
    s1 = (cols_i == 2 * rows_i + 1).astype(jnp.float32)
    kernel = functools.partial(_conv_relu_pool_kernel, kh=kh, kw=kw,
                               conv_cols=conv_cols, out_rows=out_rows)
    return pl.pallas_call(
        kernel,
        out_shape=jax.ShapeDtypeStruct((n, out_rows, out_cols, cout),
                                       jnp.float32),
        grid=(n,),
        in_specs=[
            pl.BlockSpec((1, h, w, cin), lambda i: (i, 0, 0, 0)),
            pl.BlockSpec(wk.shape, lambda i: (0, 0, 0)),
            pl.BlockSpec(b2d.shape, lambda i: (0, 0)),
            pl.BlockSpec(s0.shape, lambda i: (0, 0)),
            pl.BlockSpec(s1.shape, lambda i: (0, 0)),
        ],
        out_specs=pl.BlockSpec((1, out_rows, out_cols, cout),
                               lambda i: (i, 0, 0, 0)),
        compiler_params=pltpu.CompilerParams(
            dimension_semantics=("parallel",)),   # v7x: shard batch over 2 TCs
    )(x_nhwc, wk, b2d, s0, s1)


def _fc_chain_kernel(x_ref, w1_ref, b1_ref, w2_ref, b2_ref, w3_ref, b3_ref,
                     o_ref):
    # fc1 -> ReLU -> fc2 -> ReLU -> fc3; intermediates stay in VMEM / vregs.
    h = jnp.dot(x_ref[...], w1_ref[...], preferred_element_type=jnp.float32)
    h = jnp.maximum(h + b1_ref[...], 0.0)
    h = jnp.dot(h, w2_ref[...], preferred_element_type=jnp.float32)
    h = jnp.maximum(h + b2_ref[...], 0.0)
    y = jnp.dot(h, w3_ref[...], preferred_element_type=jnp.float32) + b3_ref[...]
    o_ref[...] = y.astype(o_ref.dtype)


def fc_chain(x, w1, b1, w2, b2, w3, b3):
    vmem = pl.BlockSpec(memory_space=pltpu.MemorySpace.VMEM)
    return pl.pallas_call(
        _fc_chain_kernel,
        out_shape=jax.ShapeDtypeStruct((x.shape[0], w3.shape[1]), jnp.float32),
        in_specs=[vmem] * 7,
        out_specs=vmem,
    )(x, w1, b1, w2, b2, w3, b3)


# ------------------------------- glue / model ------------------------------

def init_params(key):
    """Deterministic PyTorch-default-style init: U(-1/sqrt(fan_in), +...)."""
    def uni(k, shape, fan_in):
        bound = 1.0 / float(fan_in) ** 0.5
        return jax.random.uniform(k, shape, jnp.float32, -bound, bound)
    ks = jax.random.split(key, 10)
    return {
        "conv1_w": uni(ks[0], (6, 3, 5, 5), 3 * 25),
        "conv1_b": uni(ks[1], (6,), 3 * 25),
        "conv2_w": uni(ks[2], (16, 6, 5, 5), 6 * 25),
        "conv2_b": uni(ks[3], (16,), 6 * 25),
        "fc1_w": uni(ks[4], (120, 400), 400),
        "fc1_b": uni(ks[5], (120,), 400),
        "fc2_w": uni(ks[6], (84, 120), 120),
        "fc2_b": uni(ks[7], (84,), 120),
        "fc3_w": uni(ks[8], (10, 84), 84),
        "fc3_b": uni(ks[9], (10,), 84),
    }


def prepare_params(p):
    """One-time weight re-layout, hoisted out of the per-step forward."""
    # conv weights -> (kh*kw, Cin, Cout); conv1 Cout padded 6->8, conv2 Cin 6->8.
    w1 = jnp.transpose(p["conv1_w"], (2, 3, 1, 0)).reshape(25, 3, 6)
    w1 = jnp.pad(w1, ((0, 0), (0, 0), (0, 2)))
    b1 = jnp.pad(p["conv1_b"], (0, 2)).reshape(1, 8)
    w2 = jnp.transpose(p["conv2_w"], (2, 3, 1, 0)).reshape(25, 6, 16)
    w2 = jnp.pad(w2, ((0, 0), (0, 2), (0, 0)))
    b2 = p["conv2_b"].reshape(1, 16)
    # fc1: permute its 400 input columns from NCHW-flatten to NHWC-flatten
    # order, transpose to (K, N), zero-pad the 120 outputs to 128 lanes.
    f1 = p["fc1_w"].reshape(120, 16, 5, 5).transpose(0, 2, 3, 1).reshape(120, 400)
    f1 = jnp.pad(f1.T, ((0, 0), (0, 8)))                      # (400, 128)
    fb1 = jnp.pad(p["fc1_b"], (0, 8)).reshape(1, 128)
    f2 = jnp.pad(p["fc2_w"].T, ((0, 8), (0, 44)))             # (128, 128)
    fb2 = jnp.pad(p["fc2_b"], (0, 44)).reshape(1, 128)
    f3 = jnp.pad(p["fc3_w"].T, ((0, 44), (0, 0)))             # (128, 10)
    fb3 = p["fc3_b"].reshape(1, 10)
    return {"c1_w": w1, "c1_b": b1, "c2_w": w2, "c2_b": b2,
            "f1_w": f1, "f1_b": fb1, "f2_w": f2, "f2_b": fb2,
            "f3_w": f3, "f3_b": fb3}


@jax.jit
def net_forward(prep, x_nchw):
    """Forward pass of `Net`; input is NCHW float32 (N, 3, 32, 32)."""
    n = x_nchw.shape[0]
    x = jnp.transpose(x_nchw, (0, 2, 3, 1))                           # -> NHWC
    x = conv2d_relu_pool(x, prep["c1_w"], prep["c1_b"], kh=5, kw=5)   # (N,14,14,8)
    x = conv2d_relu_pool(x, prep["c2_w"], prep["c2_b"], kh=5, kw=5)   # (N,5,5,16)
    x = x.reshape(n, 5 * 5 * 16)        # NHWC flatten (fc1_w was pre-permuted)
    return fc_chain(x, prep["f1_w"], prep["f1_b"], prep["f2_w"], prep["f2_b"],
                    prep["f3_w"], prep["f3_b"])                        # (N, 10)


def net_forward_ref(params, x):
    """Pure-JAX (XLA) reference for correctness checking."""
    dn = ("NCHW", "OIHW", "NCHW")
    def conv(x, w, b):
        y = lax.conv_general_dilated(x, w, (1, 1), "VALID", dimension_numbers=dn)
        return jnp.maximum(y + b.reshape(1, -1, 1, 1), 0.0)
    def pool(x):
        return lax.reduce_window(x, -jnp.inf, lax.max,
                                 (1, 1, 2, 2), (1, 1, 2, 2), "VALID")
    x = pool(conv(x, params["conv1_w"], params["conv1_b"]))
    x = pool(conv(x, params["conv2_w"], params["conv2_b"]))
    x = x.reshape(x.shape[0], -1)
    x = jnp.maximum(x @ params["fc1_w"].T + params["fc1_b"], 0.0)
    x = jnp.maximum(x @ params["fc2_w"].T + params["fc2_b"], 0.0)
    return x @ params["fc3_w"].T + params["fc3_b"]


if __name__ == "__main__":
    key = jax.random.PRNGKey(0)
    kp, kx = jax.random.split(key)
    params = init_params(kp)
    prep = prepare_params(params)
    x = jax.random.normal(kx, (2, 3, 32, 32), jnp.float32)  # NCHW, like PyTorch

    out = jax.block_until_ready(net_forward(prep, x))
    assert out.shape == (2, 10) and out.dtype == jnp.float32

    ref = jax.block_until_ready(net_forward_ref(params, x))
    assert jnp.allclose(out, ref, rtol=1e-4, atol=1e-4), "mismatch vs reference"

    print("KERNEL_OK")
</pallas_src>

<mosaic_0001>
module attributes {stable_mosaic.version = 11 : i64} {
  func.func @_conv_relu_pool_kernel(%arg0: i32, %arg1: memref<1x32x32x3xf32, #tpu.memory_space<vmem>>, %arg2: memref<25x3x8xf32, #tpu.memory_space<vmem>>, %arg3: memref<1x8xf32, #tpu.memory_space<vmem>>, %arg4: memref<14x28xf32, #tpu.memory_space<vmem>>, %arg5: memref<14x28xf32, #tpu.memory_space<vmem>>, %arg6: memref<1x14x14x8xf32, #tpu.memory_space<vmem>>) attributes {dimension_semantics = [#tpu.dimension_semantics<parallel>], iteration_bounds = array<i64: 2>, scalar_prefetch = 0 : i64, scratch_operands = 0 : i64, tpu.core_type = #tpu.core_type<tc>, window_params = [{transform_indices = @transform_0, window_bounds = array<i64: 1, 32, 32, 3>}, {pipeline_mode = #tpu.pipeline_mode<synchronous>, transform_indices = @transform_1, window_bounds = array<i64: 25, 3, 8>}, {pipeline_mode = #tpu.pipeline_mode<synchronous>, transform_indices = @transform_2, window_bounds = array<i64: 1, 8>}, {pipeline_mode = #tpu.pipeline_mode<synchronous>, transform_indices = @transform_3, window_bounds = array<i64: 14, 28>}, {pipeline_mode = #tpu.pipeline_mode<synchronous>, transform_indices = @transform_4, window_bounds = array<i64: 14, 28>}, {transform_indices = @transform_5, window_bounds = array<i64: 1, 14, 14, 8>}]} {
    %c0 = arith.constant 0 : index
    %c0_0 = arith.constant 0 : index
    %0 = vector.load %arg3[%c0, %c0_0] : memref<1x8xf32, #tpu.memory_space<vmem>>, vector<1x8xf32>
    %c0_1 = arith.constant 0 : index
    %c0_2 = arith.constant 0 : index
    %1 = vector.load %arg4[%c0_1, %c0_2] : memref<14x28xf32, #tpu.memory_space<vmem>>, vector<14x28xf32>
    %c0_3 = arith.constant 0 : index
    %c0_4 = arith.constant 0 : index
    %2 = vector.load %arg5[%c0_3, %c0_4] : memref<14x28xf32, #tpu.memory_space<vmem>>, vector<14x28xf32>
    %c0_i32 = arith.constant 0 : i32
    %c14_i32 = arith.constant 14 : i32
    %3 = arith.addi %c0_i32, %c14_i32 : i32
    %c1_i32 = arith.constant 1 : i32
    scf.for %arg7 = %c0_i32 to %3 step %c1_i32  : i32 {
      %c2_i32 = arith.constant 2 : i32
      %4 = arith.muli %c2_i32, %arg7 : i32
      %cst = arith.constant 0.000000e+00 : f32
      %5 = vector.broadcast %cst : f32 to vector<28x8xf32>
      %cst_6 = arith.constant 0.000000e+00 : f32
      %6 = vector.broadcast %cst_6 : f32 to vector<28x8xf32>
      %c0_i32_7 = arith.constant 0 : i32
      %7 = arith.addi %4, %c0_i32_7 : i32
      %c0_8 = arith.constant 0 : index
      %8 = arith.index_cast %7 : i32 to index
      %c0_9 = arith.constant 0 : index
      %c0_10 = arith.constant 0 : index
      %9 = vector.load %arg1[%c0_8, %8, %c0_9, %c0_10] : memref<1x32x32x3xf32, #tpu.memory_space<vmem>>, vector<1x1x28x3xf32>
      %10 = vector.shape_cast %9 : vector<1x1x28x3xf32> to vector<28x3xf32>
      %c0_11 = arith.constant 0 : index
      %c0_12 = arith.constant 0 : index
      %c0_13 = arith.constant 0 : index
      %11 = vector.load %arg2[%c0_11, %c0_12, %c0_13] : memref<25x3x8xf32, #tpu.memory_space<vmem>>, vector<1x3x8xf32>
      %12 = vector.shape_cast %11 : vector<1x3x8xf32> to vector<3x8xf32>
      %cst_14 = arith.constant dense<0.000000e+00> : vector<28x8xf32>
      %13 = tpu.matmul %10, %12, %cst_14 {dimension_numbers = #tpu.dot_dimension_numbers<[1], [0], [0], [1], [0, 0, 1, 1], [], []>} : vector<28x3xf32>, vector<3x8xf32>, vector<28x8xf32> -> vector<28x8xf32>
      %14 = arith.addf %5, %13 : vector<28x8xf32>
      %c0_i32_15 = arith.constant 0 : i32
      %15 = arith.addi %4, %c0_i32_15 : i32
      %c0_16 = arith.constant 0 : index
      %16 = arith.index_cast %15 : i32 to index
      %c1 = arith.constant 1 : index
      %c0_17 = arith.constant 0 : index
      %17 = vector.load %arg1[%c0_16, %16, %c1, %c0_17] : memref<1x32x32x3xf32, #tpu.memory_space<vmem>>, vector<1x1x28x3xf32>
      %18 = vector.shape_cast %17 : vector<1x1x28x3xf32> to vector<28x3xf32>
      %c1_18 = arith.constant 1 : index
      %c0_19 = arith.constant 0 : index
      %c0_20 = arith.constant 0 : index
      %19 = vector.load %arg2[%c1_18, %c0_19, %c0_20] : memref<25x3x8xf32, #tpu.memory_space<vmem>>, vector<1x3x8xf32>
      %20 = vector.shape_cast %19 : vector<1x3x8xf32> to vector<3x8xf32>
      %cst_21 = arith.constant dense<0.000000e+00> : vector<28x8xf32>
      %21 = tpu.matmul %18, %20, %cst_21 {dimension_numbers = #tpu.dot_dimension_numbers<[1], [0], [0], [1], [0, 0, 1, 1], [], []>} : vector<28x3xf32>, vector<3x8xf32>, vector<28x8xf32> -> vector<28x8xf32>
      %22 = arith.addf %14, %21 : vector<28x8xf32>
      %c0_i32_22 = arith.constant 0 : i32
      %23 = arith.addi %4, %c0_i32_22 : i32
      %c0_23 = arith.constant 0 : index
      %24 = arith.index_cast %23 : i32 to index
      %c2 = arith.constant 2 : index
      %c0_24 = arith.constant 0 : index
      %25 = vector.load %arg1[%c0_23, %24, %c2, %c0_24] : memref<1x32x32x3xf32, #tpu.memory_space<vmem>>, vector<1x1x28x3xf32>
      %26 = vector.shape_cast %25 : vector<1x1x28x3xf32> to vector<28x3xf32>
      %c2_25 = arith.constant 2 : index
      %c0_26 = arith.constant 0 : index
      %c0_27 = arith.constant 0 : index
      %27 = vector.load %arg2[%c2_25, %c0_26, %c0_27] : memref<25x3x8xf32, #tpu.memory_space<vmem>>, vector<1x3x8xf32>
      %28 = vector.shape_cast %27 : vector<1x3x8xf32> to vector<3x8xf32>
      %cst_28 = arith.constant dense<0.000000e+00> : vector<28x8xf32>
      %29 = tpu.matmul %26, %28, %cst_28 {dimension_numbers = #tpu.dot_dimension_numbers<[1], [0], [0], [1], [0, 0, 1, 1], [], []>} : vector<28x3xf32>, vector<3x8xf32>, vector<28x8xf32> -> vector<28x8xf32>
      %30 = arith.addf %22, %29 : vector<28x8xf32>
      %c0_i32_29 = arith.constant 0 : i32
      %31 = arith.addi %4, %c0_i32_29 : i32
      %c0_30 = arith.constant 0 : index
      %32 = arith.index_cast %31 : i32 to index
      %c3 = arith.constant 3 : index
      %c0_31 = arith.constant 0 : index
      %33 = vector.load %arg1[%c0_30, %32, %c3, %c0_31] : memref<1x32x32x3xf32, #tpu.memory_space<vmem>>, vector<1x1x28x3xf32>
      %34 = vector.shape_cast %33 : vector<1x1x28x3xf32> to vector<28x3xf32>
      %c3_32 = arith.constant 3 : index
      %c0_33 = arith.constant 0 : index
      %c0_34 = arith.constant 0 : index
      %35 = vector.load %arg2[%c3_32, %c0_33, %c0_34] : memref<25x3x8xf32, #tpu.memory_space<vmem>>, vector<1x3x8xf32>
      %36 = vector.shape_cast %35 : vector<1x3x8xf32> to vector<3x8xf32>
      %cst_35 = arith.constant dense<0.000000e+00> : vector<28x8xf32>
      %37 = tpu.matmul %34, %36, %cst_35 {dimension_numbers = #tpu.dot_dimension_numbers<[1], [0], [0], [1], [0, 0, 1, 1], [], []>} : vector<28x3xf32>, vector<3x8xf32>, vector<28x8xf32> -> vector<28x8xf32>
      %38 = arith.addf %30, %37 : vector<28x8xf32>
      %c0_i32_36 = arith.constant 0 : i32
      %39 = arith.addi %4, %c0_i32_36 : i32
      %c0_37 = arith.constant 0 : index
      %40 = arith.index_cast %39 : i32 to index
      %c4 = arith.constant 4 : index
      %c0_38 = arith.constant 0 : index
      %41 = vector.load %arg1[%c0_37, %40, %c4, %c0_38] : memref<1x32x32x3xf32, #tpu.memory_space<vmem>>, vector<1x1x28x3xf32>
      %42 = vector.shape_cast %41 : vector<1x1x28x3xf32> to vector<28x3xf32>
      %c4_39 = arith.constant 4 : index
      %c0_40 = arith.constant 0 : index
      %c0_41 = arith.constant 0 : index
      %43 = vector.load %arg2[%c4_39, %c0_40, %c0_41] : memref<25x3x8xf32, #tpu.memory_space<vmem>>, vector<1x3x8xf32>
      %44 = vector.shape_cast %43 : vector<1x3x8xf32> to vector<3x8xf32>
      %cst_42 = arith.constant dense<0.000000e+00> : vector<28x8xf32>
      %45 = tpu.matmul %42, %44, %cst_42 {dimension_numbers = #tpu.dot_dimension_numbers<[1], [0], [0], [1], [0, 0, 1, 1], [], []>} : vector<28x3xf32>, vector<3x8xf32>, vector<28x8xf32> -> vector<28x8xf32>
      %46 = arith.addf %38, %45 : vector<28x8xf32>
      %c1_i32_43 = arith.constant 1 : i32
      %47 = arith.addi %4, %c1_i32_43 : i32
      %c0_44 = arith.constant 0 : index
      %48 = arith.index_cast %47 : i32 to index
      %c0_45 = arith.constant 0 : index
      %c0_46 = arith.constant 0 : index
      %49 = vector.load %arg1[%c0_44, %48, %c0_45, %c0_46] : memref<1x32x32x3xf32, #tpu.memory_space<vmem>>, vector<1x1x28x3xf32>
      %50 = vector.shape_cast %49 : vector<1x1x28x3xf32> to vector<28x3xf32>
      %c5 = arith.constant 5 : index
      %c0_47 = arith.constant 0 : index
      %c0_48 = arith.constant 0 : index
      %51 = vector.load %arg2[%c5, %c0_47, %c0_48] : memref<25x3x8xf32, #tpu.memory_space<vmem>>, vector<1x3x8xf32>
      %52 = vector.shape_cast %51 : vector<1x3x8xf32> to vector<3x8xf32>
      %cst_49 = arith.constant dense<0.000000e+00> : vector<28x8xf32>
      %53 = tpu.matmul %50, %52, %cst_49 {dimension_numbers = #tpu.dot_dimension_numbers<[1], [0], [0], [1], [0, 0, 1, 1], [], []>} : vector<28x3xf32>, vector<3x8xf32>, vector<28x8xf32> -> vector<28x8xf32>
      %54 = arith.addf %46, %53 : vector<28x8xf32>
      %c0_50 = arith.constant 0 : index
      %c0_51 = arith.constant 0 : index
      %c0_52 = arith.constant 0 : index
      %55 = vector.load %arg2[%c0_50, %c0_51, %c0_52] : memref<25x3x8xf32, #tpu.memory_space<vmem>>, vector<1x3x8xf32>
      %56 = vector.shape_cast %55 : vector<1x3x8xf32> to vector<3x8xf32>
      %cst_53 = arith.constant dense<0.000000e+00> : vector<28x8xf32>
      %57 = tpu.matmul %50, %56, %cst_53 {dimension_numbers = #tpu.dot_dimension_numbers<[1], [0], [0], [1], [0, 0, 1, 1], [], []>} : vector<28x3xf32>, vector<3x8xf32>, vector<28x8xf32> -> vector<28x8xf32>
      %58 = arith.addf %6, %57 : vector<28x8xf32>
      %c1_i32_54 = arith.constant 1 : i32
      %59 = arith.addi %4, %c1_i32_54 : i32
      %c0_55 = arith.constant 0 : index
      %60 = arith.index_cast %59 : i32 to index
      %c1_56 = arith.constant 1 : index
      %c0_57 = arith.constant 0 : index
      %61 = vector.load %arg1[%c0_55, %60, %c1_56, %c0_57] : memref<1x32x32x3xf32, #tpu.memory_space<vmem>>, vector<1x1x28x3xf32>
      %62 = vector.shape_cast %61 : vector<1x1x28x3xf32> to vector<28x3xf32>
      %c6 = arith.constant 6 : index
      %c0_58 = arith.constant 0 : index
      %c0_59 = arith.constant 0 : index
      %63 = vector.load %arg2[%c6, %c0_58, %c0_59] : memref<25x3x8xf32, #tpu.memory_space<vmem>>, vector<1x3x8xf32>
      %64 = vector.shape_cast %63 : vector<1x3x8xf32> to vector<3x8xf32>
      %cst_60 = arith.constant dense<0.000000e+00> : vector<28x8xf32>
      %65 = tpu.matmul %62, %64, %cst_60 {dimension_numbers = #tpu.dot_dimension_numbers<[1], [0], [0], [1], [0, 0, 1, 1], [], []>} : vector<28x3xf32>, vector<3x8xf32>, vector<28x8xf32> -> vector<28x8xf32>
      %66 = arith.addf %54, %65 : vector<28x8xf32>
      %c1_61 = arith.constant 1 : index
      %c0_62 = arith.constant 0 : index
      %c0_63 = arith.constant 0 : index
      %67 = vector.load %arg2[%c1_61, %c0_62, %c0_63] : memref<25x3x8xf32, #tpu.memory_space<vmem>>, vector<1x3x8xf32>
      %68 = vector.shape_cast %67 : vector<1x3x8xf32> to vector<3x8xf32>
      %cst_64 = arith.constant dense<0.000000e+00> : vector<28x8xf32>
      %69 = tpu.matmul %62, %68, %cst_64 {dimension_numbers = #tpu.dot_dimension_numbers<[1], [0], [0], [1], [0, 0, 1, 1], [], []>} : vector<28x3xf32>, vector<3x8xf32>, vector<28x8xf32> -> vector<28x8xf32>
      %70 = arith.addf %58, %69 : vector<28x8xf32>
      %c1_i32_65 = arith.constant 1 : i32
      %71 = arith.addi %4, %c1_i32_65 : i32
      %c0_66 = arith.constant 0 : index
      %72 = arith.index_cast %71 : i32 to index
      %c2_67 = arith.constant 2 : index
      %c0_68 = arith.constant 0 : index
      %73 = vector.load %arg1[%c0_66, %72, %c2_67, %c0_68] : memref<1x32x32x3xf32, #tpu.memory_space<vmem>>, vector<1x1x28x3xf32>
      %74 = vector.shape_cast %73 : vector<1x1x28x3xf32> to vector<28x3xf32>
      %c7 = arith.constant 7 : index
      %c0_69 = arith.constant 0 : index
      %c0_70 = arith.constant 0 : index
      %75 = vector.load %arg2[%c7, %c0_69, %c0_70] : memref<25x3x8xf32, #tpu.memory_space<vmem>>, vector<1x3x8xf32>
      %76 = vector.shape_cast %75 : vector<1x3x8xf32> to vector<3x8xf32>
      %cst_71 = arith.constant dense<0.000000e+00> : vector<28x8xf32>
      %77 = tpu.matmul %74, %76, %cst_71 {dimension_numbers = #tpu.dot_dimension_numbers<[1], [0], [0], [1], [0, 0, 1, 1], [], []>} : vector<28x3xf32>, vector<3x8xf32>, vector<28x8xf32> -> vector<28x8xf32>
      %78 = arith.addf %66, %77 : vector<28x8xf32>
      %c2_72 = arith.constant 2 : index
      %c0_73 = arith.constant 0 : index
      %c0_74 = arith.constant 0 : index
      %79 = vector.load %arg2[%c2_72, %c0_73, %c0_74] : memref<25x3x8xf32, #tpu.memory_space<vmem>>, vector<1x3x8xf32>
      %80 = vector.shape_cast %79 : vector<1x3x8xf32> to vector<3x8xf32>
      %cst_75 = arith.constant dense<0.000000e+00> : vector<28x8xf32>
      %81 = tpu.matmul %74, %80, %cst_75 {dimension_numbers = #tpu.dot_dimension_numbers<[1], [0], [0], [1], [0, 0, 1, 1], [], []>} : vector<28x3xf32>, vector<3x8xf32>, vector<28x8xf32> -> vector<28x8xf32>
      %82 = arith.addf %70, %81 : vector<28x8xf32>
      %c1_i32_76 = arith.constant 1 : i32
      %83 = arith.addi %4, %c1_i32_76 : i32
      %c0_77 = arith.constant 0 : index
      %84 = arith.index_cast %83 : i32 to index
      %c3_78 = arith.constant 3 : index
      %c0_79 = arith.constant 0 : index
      %85 = vector.load %arg1[%c0_77, %84, %c3_78, %c0_79] : memref<1x32x32x3xf32, #tpu.memory_space<vmem>>, vector<1x1x28x3xf32>
      %86 = vector.shape_cast %85 : vector<1x1x28x3xf32> to vector<28x3xf32>
      %c8 = arith.constant 8 : index
      %c0_80 = arith.constant 0 : index
      %c0_81 = arith.constant 0 : index
      %87 = vector.load %arg2[%c8, %c0_80, %c0_81] : memref<25x3x8xf32, #tpu.memory_space<vmem>>, vector<1x3x8xf32>
      %88 = vector.shape_cast %87 : vector<1x3x8xf32> to vector<3x8xf32>
      %cst_82 = arith.constant dense<0.000000e+00> : vector<28x8xf32>
      %89 = tpu.matmul %86, %88, %cst_82 {dimension_numbers = #tpu.dot_dimension_numbers<[1], [0], [0], [1], [0, 0, 1, 1], [], []>} : vector<28x3xf32>, vector<3x8xf32>, vector<28x8xf32> -> vector<28x8xf32>
      %90 = arith.addf %78, %89 : vector<28x8xf32>
      %c3_83 = arith.constant 3 : index
      %c0_84 = arith.constant 0 : index
      %c0_85 = arith.constant 0 : index
      %91 = vector.load %arg2[%c3_83, %c0_84, %c0_85] : memref<25x3x8xf32, #tpu.memory_space<vmem>>, vector<1x3x8xf32>
      %92 = vector.shape_cast %91 : vector<1x3x8xf32> to vector<3x8xf32>
      %cst_86 = arith.constant dense<0.000000e+00> : vector<28x8xf32>
      %93 = tpu.matmul %86, %92, %cst_86 {dimension_numbers = #tpu.dot_dimension_numbers<[1], [0], [0], [1], [0, 0, 1, 1], [], []>} : vector<28x3xf32>, vector<3x8xf32>, vector<28x8xf32> -> vector<28x8xf32>
      %94 = arith.addf %82, %93 : vector<28x8xf32>
      %c1_i32_87 = arith.constant 1 : i32
      %95 = arith.addi %4, %c1_i32_87 : i32
      %c0_88 = arith.constant 0 : index
      %96 = arith.index_cast %95 : i32 to index
      %c4_89 = arith.constant 4 : index
      %c0_90 = arith.constant 0 : index
      %97 = vector.load %arg1[%c0_88, %96, %c4_89, %c0_90] : memref<1x32x32x3xf32, #tpu.memory_space<vmem>>, vector<1x1x28x3xf32>
      %98 = vector.shape_cast %97 : vector<1x1x28x3xf32> to vector<28x3xf32>
      %c9 = arith.constant 9 : index
      %c0_91 = arith.constant 0 : index
      %c0_92 = arith.constant 0 : index
      %99 = vector.load %arg2[%c9, %c0_91, %c0_92] : memref<25x3x8xf32, #tpu.memory_space<vmem>>, vector<1x3x8xf32>
      %100 = vector.shape_cast %99 : vector<1x3x8xf32> to vector<3x8xf32>
      %cst_93 = arith.constant dense<0.000000e+00> : vector<28x8xf32>
      %101 = tpu.matmul %98, %100, %cst_93 {dimension_numbers = #tpu.dot_dimension_numbers<[1], [0], [0], [1], [0, 0, 1, 1], [], []>} : vector<28x3xf32>, vector<3x8xf32>, vector<28x8xf32> -> vector<28x8xf32>
      %102 = arith.addf %90, %101 : vector<28x8xf32>
      %c4_94 = arith.constant 4 : index
      %c0_95 = arith.constant 0 : index
      %c0_96 = arith.constant 0 : index
      %103 = vector.load %arg2[%c4_94, %c0_95, %c0_96] : memref<25x3x8xf32, #tpu.memory_space<vmem>>, vector<1x3x8xf32>
      %104 = vector.shape_cast %103 : vector<1x3x8xf32> to vector<3x8xf32>
      %cst_97 = arith.constant dense<0.000000e+00> : vector<28x8xf32>
      %105 = tpu.matmul %98, %104, %cst_97 {dimension_numbers = #tpu.dot_dimension_numbers<[1], [0], [0], [1], [0, 0, 1, 1], [], []>} : vector<28x3xf32>, vector<3x8xf32>, vector<28x8xf32> -> vector<28x8xf32>
      %106 = arith.addf %94, %105 : vector<28x8xf32>
      %c2_i32_98 = arith.constant 2 : i32
      %107 = arith.addi %4, %c2_i32_98 : i32
      %c0_99 = arith.constant 0 : index
      %108 = arith.index_cast %107 : i32 to index
      %c0_100 = arith.constant 0 : index
      %c0_101 = arith.constant 0 : index
      %109 = vector.load %arg1[%c0_99, %108, %c0_100, %c0_101] : memref<1x32x32x3xf32, #tpu.memory_space<vmem>>, vector<1x1x28x3xf32>
      %110 = vector.shape_cast %109 : vector<1x1x28x3xf32> to vector<28x3xf32>
      %c10 = arith.constant 10 : index
      %c0_102 = arith.constant 0 : index
      %c0_103 = arith.constant 0 : index
      %111 = vector.load %arg2[%c10, %c0_102, %c0_103] : memref<25x3x8xf32, #tpu.memory_space<vmem>>, vector<1x3x8xf32>
      %112 = vector.shape_cast %111 : vector<1x3x8xf32> to vector<3x8xf32>
      %cst_104 = arith.constant dense<0.000000e+00> : vector<28x8xf32>
      %113 = tpu.matmul %110, %112, %cst_104 {dimension_numbers = #tpu.dot_dimension_numbers<[1], [0], [0], [1], [0, 0, 1, 1], [], []>} : vector<28x3xf32>, vector<3x8xf32>, vector<28x8xf32> -> vector<28x8xf32>
      %114 = arith.addf %102, %113 : vector<28x8xf32>
      %c5_105 = arith.constant 5 : index
      %c0_106 = arith.constant 0 : index
      %c0_107 = arith.constant 0 : index
      %115 = vector.load %arg2[%c5_105, %c0_106, %c0_107] : memref<25x3x8xf32, #tpu.memory_space<vmem>>, vector<1x3x8xf32>
      %116 = vector.shape_cast %115 : vector<1x3x8xf32> to vector<3x8xf32>
      %cst_108 = arith.constant dense<0.000000e+00> : vector<28x8xf32>
      %117 = tpu.matmul %110, %116, %cst_108 {dimension_numbers = #tpu.dot_dimension_numbers<[1], [0], [0], [1], [0, 0, 1, 1], [], []>} : vector<28x3xf32>, vector<3x8xf32>, vector<28x8xf32> -> vector<28x8xf32>
      %118 = arith.addf %106, %117 : vector<28x8xf32>
      %c2_i32_109 = arith.constant 2 : i32
      %119 = arith.addi %4, %c2_i32_109 : i32
      %c0_110 = arith.constant 0 : index
      %120 = arith.index_cast %119 : i32 to index
      %c1_111 = arith.constant 1 : index
      %c0_112 = arith.constant 0 : index
      %121 = vector.load %arg1[%c0_110, %120, %c1_111, %c0_112] : memref<1x32x32x3xf32, #tpu.memory_space<vmem>>, vector<1x1x28x3xf32>
      %122 = vector.shape_cast %121 : vector<1x1x28x3xf32> to vector<28x3xf32>
      %c11 = arith.constant 11 : index
      %c0_113 = arith.constant 0 : index
      %c0_114 = arith.constant 0 : index
      %123 = vector.load %arg2[%c11, %c0_113, %c0_114] : memref<25x3x8xf32, #tpu.memory_space<vmem>>, vector<1x3x8xf32>
      %124 = vector.shape_cast %123 : vector<1x3x8xf32> to vector<3x8xf32>
      %cst_115 = arith.constant dense<0.000000e+00> : vector<28x8xf32>
      %125 = tpu.matmul %122, %124, %cst_115 {dimension_numbers = #tpu.dot_dimension_numbers<[1], [0], [0], [1], [0, 0, 1, 1], [], []>} : vector<28x3xf32>, vector<3x8xf32>, vector<28x8xf32> -> vector<28x8xf32>
      %126 = arith.addf %114, %125 : vector<28x8xf32>
      %c6_116 = arith.constant 6 : index
      %c0_117 = arith.constant 0 : index
      %c0_118 = arith.constant 0 : index
      %127 = vector.load %arg2[%c6_116, %c0_117, %c0_118] : memref<25x3x8xf32, #tpu.memory_space<vmem>>, vector<1x3x8xf32>
      %128 = vector.shape_cast %127 : vector<1x3x8xf32> to vector<3x8xf32>
      %cst_119 = arith.constant dense<0.000000e+00> : vector<28x8xf32>
      %129 = tpu.matmul %122, %128, %cst_119 {dimension_numbers = #tpu.dot_dimension_numbers<[1], [0], [0], [1], [0, 0, 1, 1], [], []>} : vector<28x3xf32>, vector<3x8xf32>, vector<28x8xf32> -> vector<28x8xf32>
      %130 = arith.addf %118, %129 : vector<28x8xf32>
      %c2_i32_120 = arith.constant 2 : i32
      %131 = arith.addi %4, %c2_i32_120 : i32
      %c0_121 = arith.constant 0 : index
      %132 = arith.index_cast %131 : i32 to index
      %c2_122 = arith.constant 2 : index
      %c0_123 = arith.constant 0 : index
      %133 = vector.load %arg1[%c0_121, %132, %c2_122, %c0_123] : memref<1x32x32x3xf32, #tpu.memory_space<vmem>>, vector<1x1x28x3xf32>
      %134 = vector.shape_cast %133 : vector<1x1x28x3xf32> to vector<28x3xf32>
      %c12 = arith.constant 12 : index
      %c0_124 = arith.constant 0 : index
      %c0_125 = arith.constant 0 : index
      %135 = vector.load %arg2[%c12, %c0_124, %c0_125] : memref<25x3x8xf32, #tpu.memory_space<vmem>>, vector<1x3x8xf32>
      %136 = vector.shape_cast %135 : vector<1x3x8xf32> to vector<3x8xf32>
      %cst_126 = arith.constant dense<0.000000e+00> : vector<28x8xf32>
      %137 = tpu.matmul %134, %136, %cst_126 {dimension_numbers = #tpu.dot_dimension_numbers<[1], [0], [0], [1], [0, 0, 1, 1], [], []>} : vector<28x3xf32>, vector<3x8xf32>, vector<28x8xf32> -> vector<28x8xf32>
      %138 = arith.addf %126, %137 : vector<28x8xf32>
      %c7_127 = arith.constant 7 : index
      %c0_128 = arith.constant 0 : index
      %c0_129 = arith.constant 0 : index
      %139 = vector.load %arg2[%c7_127, %c0_128, %c0_129] : memref<25x3x8xf32, #tpu.memory_space<vmem>>, vector<1x3x8xf32>
      %140 = vector.shape_cast %139 : vector<1x3x8xf32> to vector<3x8xf32>
      %cst_130 = arith.constant dense<0.000000e+00> : vector<28x8xf32>
      %141 = tpu.matmul %134, %140, %cst_130 {dimension_numbers = #tpu.dot_dimension_numbers<[1], [0], [0], [1], [0, 0, 1, 1], [], []>} : vector<28x3xf32>, vector<3x8xf32>, vector<28x8xf32> -> vector<28x8xf32>
      %142 = arith.addf %130, %141 : vector<28x8xf32>
      %c2_i32_131 = arith.constant 2 : i32
      %143 = arith.addi %4, %c2_i32_131 : i32
      %c0_132 = arith.constant 0 : index
      %144 = arith.index_cast %143 : i32 to index
      %c3_133 = arith.constant 3 : index
      %c0_134 = arith.constant 0 : index
      %145 = vector.load %arg1[%c0_132, %144, %c3_133, %c0_134] : memref<1x32x32x3xf32, #tpu.memory_space<vmem>>, vector<1x1x28x3xf32>
      %146 = vector.shape_cast %145 : vector<1x1x28x3xf32> to vector<28x3xf32>
      %c13 = arith.constant 13 : index
      %c0_135 = arith.constant 0 : index
      %c0_136 = arith.constant 0 : index
      %147 = vector.load %arg2[%c13, %c0_135, %c0_136] : memref<25x3x8xf32, #tpu.memory_space<vmem>>, vector<1x3x8xf32>
      %148 = vector.shape_cast %147 : vector<1x3x8xf32> to vector<3x8xf32>
      %cst_137 = arith.constant dense<0.000000e+00> : vector<28x8xf32>
      %149 = tpu.matmul %146, %148, %cst_137 {dimension_numbers = #tpu.dot_dimension_numbers<[1], [0], [0], [1], [0, 0, 1, 1], [], []>} : vector<28x3xf32>, vector<3x8xf32>, vector<28x8xf32> -> vector<28x8xf32>
      %150 = arith.addf %138, %149 : vector<28x8xf32>
      %c8_138 = arith.constant 8 : index
      %c0_139 = arith.constant 0 : index
      %c0_140 = arith.constant 0 : index
      %151 = vector.load %arg2[%c8_138, %c0_139, %c0_140] : memref<25x3x8xf32, #tpu.memory_space<vmem>>, vector<1x3x8xf32>
      %152 = vector.shape_cast %151 : vector<1x3x8xf32> to vector<3x8xf32>
      %cst_141 = arith.constant dense<0.000000e+00> : vector<28x8xf32>
      %153 = tpu.matmul %146, %152, %cst_141 {dimension_numbers = #tpu.dot_dimension_numbers<[1], [0], [0], [1], [0, 0, 1, 1], [], []>} : vector<28x3xf32>, vector<3x8xf32>, vector<28x8xf32> -> vector<28x8xf32>
      %154 = arith.addf %142, %153 : vector<28x8xf32>
      %c2_i32_142 = arith.constant 2 : i32
      %155 = arith.addi %4, %c2_i32_142 : i32
      %c0_143 = arith.constant 0 : index
      %156 = arith.index_cast %155 : i32 to index
      %c4_144 = arith.constant 4 : index
      %c0_145 = arith.constant 0 : index
      %157 = vector.load %arg1[%c0_143, %156, %c4_144, %c0_145] : memref<1x32x32x3xf32, #tpu.memory_space<vmem>>, vector<1x1x28x3xf32>
      %158 = vector.shape_cast %157 : vector<1x1x28x3xf32> to vector<28x3xf32>
      %c14 = arith.constant 14 : index
      %c0_146 = arith.constant 0 : index
      %c0_147 = arith.constant 0 : index
      %159 = vector.load %arg2[%c14, %c0_146, %c0_147] : memref<25x3x8xf32, #tpu.memory_space<vmem>>, vector<1x3x8xf32>
      %160 = vector.shape_cast %159 : vector<1x3x8xf32> to vector<3x8xf32>
      %cst_148 = arith.constant dense<0.000000e+00> : vector<28x8xf32>
      %161 = tpu.matmul %158, %160, %cst_148 {dimension_numbers = #tpu.dot_dimension_numbers<[1], [0], [0], [1], [0, 0, 1, 1], [], []>} : vector<28x3xf32>, vector<3x8xf32>, vector<28x8xf32> -> vector<28x8xf32>
      %162 = arith.addf %150, %161 : vector<28x8xf32>
      %c9_149 = arith.constant 9 : index
      %c0_150 = arith.constant 0 : index
      %c0_151 = arith.constant 0 : index
      %163 = vector.load %arg2[%c9_149, %c0_150, %c0_151] : memref<25x3x8xf32, #tpu.memory_space<vmem>>, vector<1x3x8xf32>
      %164 = vector.shape_cast %163 : vector<1x3x8xf32> to vector<3x8xf32>
      %cst_152 = arith.constant dense<0.000000e+00> : vector<28x8xf32>
      %165 = tpu.matmul %158, %164, %cst_152 {dimension_numbers = #tpu.dot_dimension_numbers<[1], [0], [0], [1], [0, 0, 1, 1], [], []>} : vector<28x3xf32>, vector<3x8xf32>, vector<28x8xf32> -> vector<28x8xf32>
      %166 = arith.addf %154, %165 : vector<28x8xf32>
      %c3_i32 = arith.constant 3 : i32
      %167 = arith.addi %4, %c3_i32 : i32
      %c0_153 = arith.constant 0 : index
      %168 = arith.index_cast %167 : i32 to index
      %c0_154 = arith.constant 0 : index
      %c0_155 = arith.constant 0 : index
      %169 = vector.load %arg1[%c0_153, %168, %c0_154, %c0_155] : memref<1x32x32x3xf32, #tpu.memory_space<vmem>>, vector<1x1x28x3xf32>
      %170 = vector.shape_cast %169 : vector<1x1x28x3xf32> to vector<28x3xf32>
      %c15 = arith.constant 15 : index
      %c0_156 = arith.constant 0 : index
      %c0_157 = arith.constant 0 : index
      %171 = vector.load %arg2[%c15, %c0_156, %c0_157] : memref<25x3x8xf32, #tpu.memory_space<vmem>>, vector<1x3x8xf32>
      %172 = vector.shape_cast %171 : vector<1x3x8xf32> to vector<3x8xf32>
      %cst_158 = arith.constant dense<0.000000e+00> : vector<28x8xf32>
      %173 = tpu.matmul %170, %172, %cst_158 {dimension_numbers = #tpu.dot_dimension_numbers<[1], [0], [0], [1], [0, 0, 1, 1], [], []>} : vector<28x3xf32>, vector<3x8xf32>, vector<28x8xf32> -> vector<28x8xf32>
      %174 = arith.addf %162, %173 : vector<28x8xf32>
      %c10_159 = arith.constant 10 : index
      %c0_160 = arith.constant 0 : index
      %c0_161 = arith.constant 0 : index
      %175 = vector.load %arg2[%c10_159, %c0_160, %c0_161] : memref<25x3x8xf32, #tpu.memory_space<vmem>>, vector<1x3x8xf32>
      %176 = vector.shape_cast %175 : vector<1x3x8xf32> to vector<3x8xf32>
      %cst_162 = arith.constant dense<0.000000e+00> : vector<28x8xf32>
      %177 = tpu.matmul %170, %176, %cst_162 {dimension_numbers = #tpu.dot_dimension_numbers<[1], [0], [0], [1], [0, 0, 1, 1], [], []>} : vector<28x3xf32>, vector<3x8xf32>, vector<28x8xf32> -> vector<28x8xf32>
      %178 = arith.addf %166, %177 : vector<28x8xf32>
      %c3_i32_163 = arith.constant 3 : i32
      %179 = arith.addi %4, %c3_i32_163 : i32
      %c0_164 = arith.constant 0 : index
      %180 = arith.index_cast %179 : i32 to index
      %c1_165 = arith.constant 1 : index
      %c0_166 = arith.constant 0 : index
      %181 = vector.load %arg1[%c0_164, %180, %c1_165, %c0_166] : memref<1x32x32x3xf32, #tpu.memory_space<vmem>>, vector<1x1x28x3xf32>
      %182 = vector.shape_cast %181 : vector<1x1x28x3xf32> to vector<28x3xf32>
      %c16 = arith.constant 16 : index
      %c0_167 = arith.constant 0 : index
      %c0_168 = arith.constant 0 : index
      %183 = vector.load %arg2[%c16, %c0_167, %c0_168] : memref<25x3x8xf32, #tpu.memory_space<vmem>>, vector<1x3x8xf32>
      %184 = vector.shape_cast %183 : vector<1x3x8xf32> to vector<3x8xf32>
      %cst_169 = arith.constant dense<0.000000e+00> : vector<28x8xf32>
      %185 = tpu.matmul %182, %184, %cst_169 {dimension_numbers = #tpu.dot_dimension_numbers<[1], [0], [0], [1], [0, 0, 1, 1], [], []>} : vector<28x3xf32>, vector<3x8xf32>, vector<28x8xf32> -> vector<28x8xf32>
      %186 = arith.addf %174, %185 : vector<28x8xf32>
      %c11_170 = arith.constant 11 : index
      %c0_171 = arith.constant 0 : index
      %c0_172 = arith.constant 0 : index
      %187 = vector.load %arg2[%c11_170, %c0_171, %c0_172] : memref<25x3x8xf32, #tpu.memory_space<vmem>>, vector<1x3x8xf32>
      %188 = vector.shape_cast %187 : vector<1x3x8xf32> to vector<3x8xf32>
      %cst_173 = arith.constant dense<0.000000e+00> : vector<28x8xf32>
      %189 = tpu.matmul %182, %188, %cst_173 {dimension_numbers = #tpu.dot_dimension_numbers<[1], [0], [0], [1], [0, 0, 1, 1], [], []>} : vector<28x3xf32>, vector<3x8xf32>, vector<28x8xf32> -> vector<28x8xf32>
      %190 = arith.addf %178, %189 : vector<28x8xf32>
      %c3_i32_174 = arith.constant 3 : i32
      %191 = arith.addi %4, %c3_i32_174 : i32
      %c0_175 = arith.constant 0 : index
      %192 = arith.index_cast %191 : i32 to index
      %c2_176 = arith.constant 2 : index
      %c0_177 = arith.constant 0 : index
      %193 = vector.load %arg1[%c0_175, %192, %c2_176, %c0_177] : memref<1x32x32x3xf32, #tpu.memory_space<vmem>>, vector<1x1x28x3xf32>
      %194 = vector.shape_cast %193 : vector<1x1x28x3xf32> to vector<28x3xf32>
      %c17 = arith.constant 17 : index
      %c0_178 = arith.constant 0 : index
      %c0_179 = arith.constant 0 : index
      %195 = vector.load %arg2[%c17, %c0_178, %c0_179] : memref<25x3x8xf32, #tpu.memory_space<vmem>>, vector<1x3x8xf32>
      %196 = vector.shape_cast %195 : vector<1x3x8xf32> to vector<3x8xf32>
      %cst_180 = arith.constant dense<0.000000e+00> : vector<28x8xf32>
      %197 = tpu.matmul %194, %196, %cst_180 {dimension_numbers = #tpu.dot_dimension_numbers<[1], [0], [0], [1], [0, 0, 1, 1], [], []>} : vector<28x3xf32>, vector<3x8xf32>, vector<28x8xf32> -> vector<28x8xf32>
      %198 = arith.addf %186, %197 : vector<28x8xf32>
      %c12_181 = arith.constant 12 : index
      %c0_182 = arith.constant 0 : index
      %c0_183 = arith.constant 0 : index
      %199 = vector.load %arg2[%c12_181, %c0_182, %c0_183] : memref<25x3x8xf32, #tpu.memory_space<vmem>>, vector<1x3x8xf32>
      %200 = vector.shape_cast %199 : vector<1x3x8xf32> to vector<3x8xf32>
      %cst_184 = arith.constant dense<0.000000e+00> : vector<28x8xf32>
      %201 = tpu.matmul %194, %200, %cst_184 {dimension_numbers = #tpu.dot_dimension_numbers<[1], [0], [0], [1], [0, 0, 1, 1], [], []>} : vector<28x3xf32>, vector<3x8xf32>, vector<28x8xf32> -> vector<28x8xf32>
      %202 = arith.addf %190, %201 : vector<28x8xf32>
      %c3_i32_185 = arith.constant 3 : i32
      %203 = arith.addi %4, %c3_i32_185 : i32
      %c0_186 = arith.constant 0 : index
      %204 = arith.index_cast %203 : i32 to index
      %c3_187 = arith.constant 3 : index
      %c0_188 = arith.constant 0 : index
      %205 = vector.load %arg1[%c0_186, %204, %c3_187, %c0_188] : memref<1x32x32x3xf32, #tpu.memory_space<vmem>>, vector<1x1x28x3xf32>
      %206 = vector.shape_cast %205 : vector<1x1x28x3xf32> to vector<28x3xf32>
      %c18 = arith.constant 18 : index
      %c0_189 = arith.constant 0 : index
      %c0_190 = arith.constant 0 : index
      %207 = vector.load %arg2[%c18, %c0_189, %c0_190] : memref<25x3x8xf32, #tpu.memory_space<vmem>>, vector<1x3x8xf32>
      %208 = vector.shape_cast %207 : vector<1x3x8xf32> to vector<3x8xf32>
      %cst_191 = arith.constant dense<0.000000e+00> : vector<28x8xf32>
      %209 = tpu.matmul %206, %208, %cst_191 {dimension_numbers = #tpu.dot_dimension_numbers<[1], [0], [0], [1], [0, 0, 1, 1], [], []>} : vector<28x3xf32>, vector<3x8xf32>, vector<28x8xf32> -> vector<28x8xf32>
      %210 = arith.addf %198, %209 : vector<28x8xf32>
      %c13_192 = arith.constant 13 : index
      %c0_193 = arith.constant 0 : index
      %c0_194 = arith.constant 0 : index
      %211 = vector.load %arg2[%c13_192, %c0_193, %c0_194] : memref<25x3x8xf32, #tpu.memory_space<vmem>>, vector<1x3x8xf32>
      %212 = vector.shape_cast %211 : vector<1x3x8xf32> to vector<3x8xf32>
      %cst_195 = arith.constant dense<0.000000e+00> : vector<28x8xf32>
      %213 = tpu.matmul %206, %212, %cst_195 {dimension_numbers = #tpu.dot_dimension_numbers<[1], [0], [0], [1], [0, 0, 1, 1], [], []>} : vector<28x3xf32>, vector<3x8xf32>, vector<28x8xf32> -> vector<28x8xf32>
      %214 = arith.addf %202, %213 : vector<28x8xf32>
      %c3_i32_196 = arith.constant 3 : i32
      %215 = arith.addi %4, %c3_i32_196 : i32
      %c0_197 = arith.constant 0 : index
      %216 = arith.index_cast %215 : i32 to index
      %c4_198 = arith.constant 4 : index
      %c0_199 = arith.constant 0 : index
      %217 = vector.load %arg1[%c0_197, %216, %c4_198, %c0_199] : memref<1x32x32x3xf32, #tpu.memory_space<vmem>>, vector<1x1x28x3xf32>
      %218 = vector.shape_cast %217 : vector<1x1x28x3xf32> to vector<28x3xf32>
      %c19 = arith.constant 19 : index
      %c0_200 = arith.constant 0 : index
      %c0_201 = arith.constant 0 : index
      %219 = vector.load %arg2[%c19, %c0_200, %c0_201] : memref<25x3x8xf32, #tpu.memory_space<vmem>>, vector<1x3x8xf32>
      %220 = vector.shape_cast %219 : vector<1x3x8xf32> to vector<3x8xf32>
      %cst_202 = arith.constant dense<0.000000e+00> : vector<28x8xf32>
      %221 = tpu.matmul %218, %220, %cst_202 {dimension_numbers = #tpu.dot_dimension_numbers<[1], [0], [0], [1], [0, 0, 1, 1], [], []>} : vector<28x3xf32>, vector<3x8xf32>, vector<28x8xf32> -> vector<28x8xf32>
      %222 = arith.addf %210, %221 : vector<28x8xf32>
      %c14_203 = arith.constant 14 : index
      %c0_204 = arith.constant 0 : index
      %c0_205 = arith.constant 0 : index
      %223 = vector.load %arg2[%c14_203, %c0_204, %c0_205] : memref<25x3x8xf32, #tpu.memory_space<vmem>>, vector<1x3x8xf32>
      %224 = vector.shape_cast %223 : vector<1x3x8xf32> to vector<3x8xf32>
      %cst_206 = arith.constant dense<0.000000e+00> : vector<28x8xf32>
      %225 = tpu.matmul %218, %224, %cst_206 {dimension_numbers = #tpu.dot_dimension_numbers<[1], [0], [0], [1], [0, 0, 1, 1], [], []>} : vector<28x3xf32>, vector<3x8xf32>, vector<28x8xf32> -> vector<28x8xf32>
      %226 = arith.addf %214, %225 : vector<28x8xf32>
      %c4_i32 = arith.constant 4 : i32
      %227 = arith.addi %4, %c4_i32 : i32
      %c0_207 = arith.constant 0 : index
      %228 = arith.index_cast %227 : i32 to index
      %c0_208 = arith.constant 0 : index
      %c0_209 = arith.constant 0 : index
      %229 = vector.load %arg1[%c0_207, %228, %c0_208, %c0_209] : memref<1x32x32x3xf32, #tpu.memory_space<vmem>>, vector<1x1x28x3xf32>
      %230 = vector.shape_cast %229 : vector<1x1x28x3xf32> to vector<28x3xf32>
      %c20 = arith.constant 20 : index
      %c0_210 = arith.constant 0 : index
      %c0_211 = arith.constant 0 : index
      %231 = vector.load %arg2[%c20, %c0_210, %c0_211] : memref<25x3x8xf32, #tpu.memory_space<vmem>>, vector<1x3x8xf32>
      %232 = vector.shape_cast %231 : vector<1x3x8xf32> to vector<3x8xf32>
      %cst_212 = arith.constant dense<0.000000e+00> : vector<28x8xf32>
      %233 = tpu.matmul %230, %232, %cst_212 {dimension_numbers = #tpu.dot_dimension_numbers<[1], [0], [0], [1], [0, 0, 1, 1], [], []>} : vector<28x3xf32>, vector<3x8xf32>, vector<28x8xf32> -> vector<28x8xf32>
      %234 = arith.addf %222, %233 : vector<28x8xf32>
      %c15_213 = arith.constant 15 : index
      %c0_214 = arith.constant 0 : index
      %c0_215 = arith.constant 0 : index
      %235 = vector.load %arg2[%c15_213, %c0_214, %c0_215] : memref<25x3x8xf32, #tpu.memory_space<vmem>>, vector<1x3x8xf32>
      %236 = vector.shape_cast %235 : vector<1x3x8xf32> to vector<3x8xf32>
      %cst_216 = arith.constant dense<0.000000e+00> : vector<28x8xf32>
      %237 = tpu.matmul %230, %236, %cst_216 {dimension_numbers = #tpu.dot_dimension_numbers<[1], [0], [0], [1], [0, 0, 1, 1], [], []>} : vector<28x3xf32>, vector<3x8xf32>, vector<28x8xf32> -> vector<28x8xf32>
      %238 = arith.addf %226, %237 : vector<28x8xf32>
      %c4_i32_217 = arith.constant 4 : i32
      %239 = arith.addi %4, %c4_i32_217 : i32
      %c0_218 = arith.constant 0 : index
      %240 = arith.index_cast %239 : i32 to index
      %c1_219 = arith.constant 1 : index
      %c0_220 = arith.constant 0 : index
      %241 = vector.load %arg1[%c0_218, %240, %c1_219, %c0_220] : memref<1x32x32x3xf32, #tpu.memory_space<vmem>>, vector<1x1x28x3xf32>
      %242 = vector.shape_cast %241 : vector<1x1x28x3xf32> to vector<28x3xf32>
      %c21 = arith.constant 21 : index
      %c0_221 = arith.constant 0 : index
      %c0_222 = arith.constant 0 : index
      %243 = vector.load %arg2[%c21, %c0_221, %c0_222] : memref<25x3x8xf32, #tpu.memory_space<vmem>>, vector<1x3x8xf32>
      %244 = vector.shape_cast %243 : vector<1x3x8xf32> to vector<3x8xf32>
      %cst_223 = arith.constant dense<0.000000e+00> : vector<28x8xf32>
      %245 = tpu.matmul %242, %244, %cst_223 {dimension_numbers = #tpu.dot_dimension_numbers<[1], [0], [0], [1], [0, 0, 1, 1], [], []>} : vector<28x3xf32>, vector<3x8xf32>, vector<28x8xf32> -> vector<28x8xf32>
      %246 = arith.addf %234, %245 : vector<28x8xf32>
      %c16_224 = arith.constant 16 : index
      %c0_225 = arith.constant 0 : index
      %c0_226 = arith.constant 0 : index
      %247 = vector.load %arg2[%c16_224, %c0_225, %c0_226] : memref<25x3x8xf32, #tpu.memory_space<vmem>>, vector<1x3x8xf32>
      %248 = vector.shape_cast %247 : vector<1x3x8xf32> to vector<3x8xf32>
      %cst_227 = arith.constant dense<0.000000e+00> : vector<28x8xf32>
      %249 = tpu.matmul %242, %248, %cst_227 {dimension_numbers = #tpu.dot_dimension_numbers<[1], [0], [0], [1], [0, 0, 1, 1], [], []>} : vector<28x3xf32>, vector<3x8xf32>, vector<28x8xf32> -> vector<28x8xf32>
      %250 = arith.addf %238, %249 : vector<28x8xf32>
      %c4_i32_228 = arith.constant 4 : i32
      %251 = arith.addi %4, %c4_i32_228 : i32
      %c0_229 = arith.constant 0 : index
      %252 = arith.index_cast %251 : i32 to index
      %c2_230 = arith.constant 2 : index
      %c0_231 = arith.constant 0 : index
      %253 = vector.load %arg1[%c0_229, %252, %c2_230, %c0_231] : memref<1x32x32x3xf32, #tpu.memory_space<vmem>>, vector<1x1x28x3xf32>
      %254 = vector.shape_cast %253 : vector<1x1x28x3xf32> to vector<28x3xf32>
      %c22 = arith.constant 22 : index
      %c0_232 = arith.constant 0 : index
      %c0_233 = arith.constant 0 : index
      %255 = vector.load %arg2[%c22, %c0_232, %c0_233] : memref<25x3x8xf32, #tpu.memory_space<vmem>>, vector<1x3x8xf32>
      %256 = vector.shape_cast %255 : vector<1x3x8xf32> to vector<3x8xf32>
      %cst_234 = arith.constant dense<0.000000e+00> : vector<28x8xf32>
      %257 = tpu.matmul %254, %256, %cst_234 {dimension_numbers = #tpu.dot_dimension_numbers<[1], [0], [0], [1], [0, 0, 1, 1], [], []>} : vector<28x3xf32>, vector<3x8xf32>, vector<28x8xf32> -> vector<28x8xf32>
      %258 = arith.addf %246, %257 : vector<28x8xf32>
      %c17_235 = arith.constant 17 : index
      %c0_236 = arith.constant 0 : index
      %c0_237 = arith.constant 0 : index
      %259 = vector.load %arg2[%c17_235, %c0_236, %c0_237] : memref<25x3x8xf32, #tpu.memory_space<vmem>>, vector<1x3x8xf32>
      %260 = vector.shape_cast %259 : vector<1x3x8xf32> to vector<3x8xf32>
      %cst_238 = arith.constant dense<0.000000e+00> : vector<28x8xf32>
      %261 = tpu.matmul %254, %260, %cst_238 {dimension_numbers = #tpu.dot_dimension_numbers<[1], [0], [0], [1], [0, 0, 1, 1], [], []>} : vector<28x3xf32>, vector<3x8xf32>, vector<28x8xf32> -> vector<28x8xf32>
      %262 = arith.addf %250, %261 : vector<28x8xf32>
      %c4_i32_239 = arith.constant 4 : i32
      %263 = arith.addi %4, %c4_i32_239 : i32
      %c0_240 = arith.constant 0 : index
      %264 = arith.index_cast %263 : i32 to index
      %c3_241 = arith.constant 3 : index
      %c0_242 = arith.constant 0 : index
      %265 = vector.load %arg1[%c0_240, %264, %c3_241, %c0_242] : memref<1x32x32x3xf32, #tpu.memory_space<vmem>>, vector<1x1x28x3xf32>
      %266 = vector.shape_cast %265 : vector<1x1x28x3xf32> to vector<28x3xf32>
      %c23 = arith.constant 23 : index
      %c0_243 = arith.constant 0 : index
      %c0_244 = arith.constant 0 : index
      %267 = vector.load %arg2[%c23, %c0_243, %c0_244] : memref<25x3x8xf32, #tpu.memory_space<vmem>>, vector<1x3x8xf32>
      %268 = vector.shape_cast %267 : vector<1x3x8xf32> to vector<3x8xf32>
      %cst_245 = arith.constant dense<0.000000e+00> : vector<28x8xf32>
      %269 = tpu.matmul %266, %268, %cst_245 {dimension_numbers = #tpu.dot_dimension_numbers<[1], [0], [0], [1], [0, 0, 1, 1], [], []>} : vector<28x3xf32>, vector<3x8xf32>, vector<28x8xf32> -> vector<28x8xf32>
      %270 = arith.addf %258, %269 : vector<28x8xf32>
      %c18_246 = arith.constant 18 : index
      %c0_247 = arith.constant 0 : index
      %c0_248 = arith.constant 0 : index
      %271 = vector.load %arg2[%c18_246, %c0_247, %c0_248] : memref<25x3x8xf32, #tpu.memory_space<vmem>>, vector<1x3x8xf32>
      %272 = vector.shape_cast %271 : vector<1x3x8xf32> to vector<3x8xf32>
      %cst_249 = arith.constant dense<0.000000e+00> : vector<28x8xf32>
      %273 = tpu.matmul %266, %272, %cst_249 {dimension_numbers = #tpu.dot_dimension_numbers<[1], [0], [0], [1], [0, 0, 1, 1], [], []>} : vector<28x3xf32>, vector<3x8xf32>, vector<28x8xf32> -> vector<28x8xf32>
      %274 = arith.addf %262, %273 : vector<28x8xf32>
      %c4_i32_250 = arith.constant 4 : i32
      %275 = arith.addi %4, %c4_i32_250 : i32
      %c0_251 = arith.constant 0 : index
      %276 = arith.index_cast %275 : i32 to index
      %c4_252 = arith.constant 4 : index
      %c0_253 = arith.constant 0 : index
      %277 = vector.load %arg1[%c0_251, %276, %c4_252, %c0_253] : memref<1x32x32x3xf32, #tpu.memory_space<vmem>>, vector<1x1x28x3xf32>
      %278 = vector.shape_cast %277 : vector<1x1x28x3xf32> to vector<28x3xf32>
      %c24 = arith.constant 24 : index
      %c0_254 = arith.constant 0 : index
      %c0_255 = arith.constant 0 : index
      %279 = vector.load %arg2[%c24, %c0_254, %c0_255] : memref<25x3x8xf32, #tpu.memory_space<vmem>>, vector<1x3x8xf32>
      %280 = vector.shape_cast %279 : vector<1x3x8xf32> to vector<3x8xf32>
      %cst_256 = arith.constant dense<0.000000e+00> : vector<28x8xf32>
      %281 = tpu.matmul %278, %280, %cst_256 {dimension_numbers = #tpu.dot_dimension_numbers<[1], [0], [0], [1], [0, 0, 1, 1], [], []>} : vector<28x3xf32>, vector<3x8xf32>, vector<28x8xf32> -> vector<28x8xf32>
      %282 = arith.addf %270, %281 : vector<28x8xf32>
      %c19_257 = arith.constant 19 : index
      %c0_258 = arith.constant 0 : index
      %c0_259 = arith.constant 0 : index
      %283 = vector.load %arg2[%c19_257, %c0_258, %c0_259] : memref<25x3x8xf32, #tpu.memory_space<vmem>>, vector<1x3x8xf32>
      %284 = vector.shape_cast %283 : vector<1x3x8xf32> to vector<3x8xf32>
      %cst_260 = arith.constant dense<0.000000e+00> : vector<28x8xf32>
      %285 = tpu.matmul %278, %284, %cst_260 {dimension_numbers = #tpu.dot_dimension_numbers<[1], [0], [0], [1], [0, 0, 1, 1], [], []>} : vector<28x3xf32>, vector<3x8xf32>, vector<28x8xf32> -> vector<28x8xf32>
      %286 = arith.addf %274, %285 : vector<28x8xf32>
      %c5_i32 = arith.constant 5 : i32
      %287 = arith.addi %4, %c5_i32 : i32
      %c0_261 = arith.constant 0 : index
      %288 = arith.index_cast %287 : i32 to index
      %c0_262 = arith.constant 0 : index
      %c0_263 = arith.constant 0 : index
      %289 = vector.load %arg1[%c0_261, %288, %c0_262, %c0_263] : memref<1x32x32x3xf32, #tpu.memory_space<vmem>>, vector<1x1x28x3xf32>
      %290 = vector.shape_cast %289 : vector<1x1x28x3xf32> to vector<28x3xf32>
      %c20_264 = arith.constant 20 : index
      %c0_265 = arith.constant 0 : index
      %c0_266 = arith.constant 0 : index
      %291 = vector.load %arg2[%c20_264, %c0_265, %c0_266] : memref<25x3x8xf32, #tpu.memory_space<vmem>>, vector<1x3x8xf32>
      %292 = vector.shape_cast %291 : vector<1x3x8xf32> to vector<3x8xf32>
      %cst_267 = arith.constant dense<0.000000e+00> : vector<28x8xf32>
      %293 = tpu.matmul %290, %292, %cst_267 {dimension_numbers = #tpu.dot_dimension_numbers<[1], [0], [0], [1], [0, 0, 1, 1], [], []>} : vector<28x3xf32>, vector<3x8xf32>, vector<28x8xf32> -> vector<28x8xf32>
      %294 = arith.addf %286, %293 : vector<28x8xf32>
      %c5_i32_268 = arith.constant 5 : i32
      %295 = arith.addi %4, %c5_i32_268 : i32
      %c0_269 = arith.constant 0 : index
      %296 = arith.index_cast %295 : i32 to index
      %c1_270 = arith.constant 1 : index
      %c0_271 = arith.constant 0 : index
      %297 = vector.load %arg1[%c0_269, %296, %c1_270, %c0_271] : memref<1x32x32x3xf32, #tpu.memory_space<vmem>>, vector<1x1x28x3xf32>
      %298 = vector.shape_cast %297 : vector<1x1x28x3xf32> to vector<28x3xf32>
      %c21_272 = arith.constant 21 : index
      %c0_273 = arith.constant 0 : index
      %c0_274 = arith.constant 0 : index
      %299 = vector.load %arg2[%c21_272, %c0_273, %c0_274] : memref<25x3x8xf32, #tpu.memory_space<vmem>>, vector<1x3x8xf32>
      %300 = vector.shape_cast %299 : vector<1x3x8xf32> to vector<3x8xf32>
      %cst_275 = arith.constant dense<0.000000e+00> : vector<28x8xf32>
      %301 = tpu.matmul %298, %300, %cst_275 {dimension_numbers = #tpu.dot_dimension_numbers<[1], [0], [0], [1], [0, 0, 1, 1], [], []>} : vector<28x3xf32>, vector<3x8xf32>, vector<28x8xf32> -> vector<28x8xf32>
      %302 = arith.addf %294, %301 : vector<28x8xf32>
      %c5_i32_276 = arith.constant 5 : i32
      %303 = arith.addi %4, %c5_i32_276 : i32
      %c0_277 = arith.constant 0 : index
      %304 = arith.index_cast %303 : i32 to index
      %c2_278 = arith.constant 2 : index
      %c0_279 = arith.constant 0 : index
      %305 = vector.load %arg1[%c0_277, %304, %c2_278, %c0_279] : memref<1x32x32x3xf32, #tpu.memory_space<vmem>>, vector<1x1x28x3xf32>
      %306 = vector.shape_cast %305 : vector<1x1x28x3xf32> to vector<28x3xf32>
      %c22_280 = arith.constant 22 : index
      %c0_281 = arith.constant 0 : index
      %c0_282 = arith.constant 0 : index
      %307 = vector.load %arg2[%c22_280, %c0_281, %c0_282] : memref<25x3x8xf32, #tpu.memory_space<vmem>>, vector<1x3x8xf32>
      %308 = vector.shape_cast %307 : vector<1x3x8xf32> to vector<3x8xf32>
      %cst_283 = arith.constant dense<0.000000e+00> : vector<28x8xf32>
      %309 = tpu.matmul %306, %308, %cst_283 {dimension_numbers = #tpu.dot_dimension_numbers<[1], [0], [0], [1], [0, 0, 1, 1], [], []>} : vector<28x3xf32>, vector<3x8xf32>, vector<28x8xf32> -> vector<28x8xf32>
      %310 = arith.addf %302, %309 : vector<28x8xf32>
      %c5_i32_284 = arith.constant 5 : i32
      %311 = arith.addi %4, %c5_i32_284 : i32
      %c0_285 = arith.constant 0 : index
      %312 = arith.index_cast %311 : i32 to index
      %c3_286 = arith.constant 3 : index
      %c0_287 = arith.constant 0 : index
      %313 = vector.load %arg1[%c0_285, %312, %c3_286, %c0_287] : memref<1x32x32x3xf32, #tpu.memory_space<vmem>>, vector<1x1x28x3xf32>
      %314 = vector.shape_cast %313 : vector<1x1x28x3xf32> to vector<28x3xf32>
      %c23_288 = arith.constant 23 : index
      %c0_289 = arith.constant 0 : index
      %c0_290 = arith.constant 0 : index
      %315 = vector.load %arg2[%c23_288, %c0_289, %c0_290] : memref<25x3x8xf32, #tpu.memory_space<vmem>>, vector<1x3x8xf32>
      %316 = vector.shape_cast %315 : vector<1x3x8xf32> to vector<3x8xf32>
      %cst_291 = arith.constant dense<0.000000e+00> : vector<28x8xf32>
      %317 = tpu.matmul %314, %316, %cst_291 {dimension_numbers = #tpu.dot_dimension_numbers<[1], [0], [0], [1], [0, 0, 1, 1], [], []>} : vector<28x3xf32>, vector<3x8xf32>, vector<28x8xf32> -> vector<28x8xf32>
      %318 = arith.addf %310, %317 : vector<28x8xf32>
      %c5_i32_292 = arith.constant 5 : i32
      %319 = arith.addi %4, %c5_i32_292 : i32
      %c0_293 = arith.constant 0 : index
      %320 = arith.index_cast %319 : i32 to index
      %c4_294 = arith.constant 4 : index
      %c0_295 = arith.constant 0 : index
      %321 = vector.load %arg1[%c0_293, %320, %c4_294, %c0_295] : memref<1x32x32x3xf32, #tpu.memory_space<vmem>>, vector<1x1x28x3xf32>
      %322 = vector.shape_cast %321 : vector<1x1x28x3xf32> to vector<28x3xf32>
      %c24_296 = arith.constant 24 : index
      %c0_297 = arith.constant 0 : index
      %c0_298 = arith.constant 0 : index
      %323 = vector.load %arg2[%c24_296, %c0_297, %c0_298] : memref<25x3x8xf32, #tpu.memory_space<vmem>>, vector<1x3x8xf32>
      %324 = vector.shape_cast %323 : vector<1x3x8xf32> to vector<3x8xf32>
      %cst_299 = arith.constant dense<0.000000e+00> : vector<28x8xf32>
      %325 = tpu.matmul %322, %324, %cst_299 {dimension_numbers = #tpu.dot_dimension_numbers<[1], [0], [0], [1], [0, 0, 1, 1], [], []>} : vector<28x3xf32>, vector<3x8xf32>, vector<28x8xf32> -> vector<28x8xf32>
      %326 = arith.addf %318, %325 : vector<28x8xf32>
      %327 = arith.maximumf %282, %326 : vector<28x8xf32>
      %cst_300 = arith.constant dense<0.000000e+00> : vector<14x8xf32>
      %328 = tpu.matmul %1, %327, %cst_300 {dimension_numbers = #tpu.dot_dimension_numbers<[1], [0], [0], [1], [0, 0, 1, 1], [], []>} : vector<14x28xf32>, vector<28x8xf32>, vector<14x8xf32> -> vector<14x8xf32>
      %cst_301 = arith.constant dense<0.000000e+00> : vector<14x8xf32>
      %329 = tpu.matmul %2, %327, %cst_301 {dimension_numbers = #tpu.dot_dimension_numbers<[1], [0], [0], [1], [0, 0, 1, 1], [], []>} : vector<14x28xf32>, vector<28x8xf32>, vector<14x8xf32> -> vector<14x8xf32>
      %330 = arith.maximumf %328, %329 : vector<14x8xf32>
      %331 = vector.broadcast %0 : vector<1x8xf32> to vector<14x8xf32>
      %332 = arith.addf %330, %331 : vector<14x8xf32>
      %cst_302 = arith.constant 0.000000e+00 : f32
      %333 = vector.broadcast %cst_302 : f32 to vector<14x8xf32>
      %334 = arith.maximumf %332, %333 : vector<14x8xf32>
      %c0_303 = arith.constant 0 : index
      %335 = arith.index_cast %arg7 : i32 to index
      %c0_304 = arith.constant 0 : index
      %c0_305 = arith.constant 0 : index
      %336 = vector.load %arg6[%c0_303, %335, %c0_304, %c0_305] : memref<1x14x14x8xf32, #tpu.memory_space<vmem>>, vector<1x1x14x8xf32>
      %337 = vector.shape_cast %336 : vector<1x1x14x8xf32> to vector<14x8xf32>
      %338 = vector.shape_cast %334 : vector<14x8xf32> to vector<1x1x14x8xf32>
      tpu.vector_store %arg6[%c0_303, %335, %c0_304, %c0_305], %338 {strides = array<i32>} : memref<1x14x14x8xf32, #tpu.memory_space<vmem>>, vector<1x1x14x8xf32>,
    }
    %c14_i32_5 = arith.constant 14 : i32
    return
  }
  func.func @transform_0(%arg0: i32) -> (i32, i32, i32, i32) {
    %c0_i32 = arith.constant 0 : i32
    %c0_i32_0 = arith.constant 0 : i32
    %c0_i32_1 = arith.constant 0 : i32
    %c0_i32_2 = arith.constant 0 : i32
    return %arg0, %c0_i32, %c0_i32_0, %c0_i32_1 : i32, i32, i32, i32
  }
  func.func @transform_1(%arg0: i32) -> (i32, i32, i32) {
    %c0_i32 = arith.constant 0 : i32
    %c0_i32_0 = arith.constant 0 : i32
    %c0_i32_1 = arith.constant 0 : i32
    %c0_i32_2 = arith.constant 0 : i32
    return %c0_i32, %c0_i32_0, %c0_i32_1 : i32, i32, i32
  }
  func.func @transform_2(%arg0: i32) -> (i32, i32) {
    %c0_i32 = arith.constant 0 : i32
    %c0_i32_0 = arith.constant 0 : i32
    %c0_i32_1 = arith.constant 0 : i32
    return %c0_i32, %c0_i32_0 : i32, i32
  }
  func.func @transform_3(%arg0: i32) -> (i32, i32) {
    %c0_i32 = arith.constant 0 : i32
    %c0_i32_0 = arith.constant 0 : i32
    %c0_i32_1 = arith.constant 0 : i32
    return %c0_i32, %c0_i32_0 : i32, i32
  }
  func.func @transform_4(%arg0: i32) -> (i32, i32) {
    %c0_i32 = arith.constant 0 : i32
    %c0_i32_0 = arith.constant 0 : i32
    %c0_i32_1 = arith.constant 0 : i32
    return %c0_i32, %c0_i32_0 : i32, i32
  }
  func.func @transform_5(%arg0: i32) -> (i32, i32, i32, i32) {
    %c0_i32 = arith.constant 0 : i32
    %c0_i32_0 = arith.constant 0 : i32
    %c0_i32_1 = arith.constant 0 : i32
    %c0_i32_2 = arith.constant 0 : i32
    return %arg0, %c0_i32, %c0_i32_0, %c0_i32_1 : i32, i32, i32, i32
  }
}

module attributes {stable_mosaic.version = 11 : i64} {
  func.func @_conv_relu_pool_kernel(%arg0: i32, %arg1: memref<1x14x14x8xf32, #tpu.memory_space<vmem>>, %arg2: memref<25x8x16xf32, #tpu.memory_space<vmem>>, %arg3: memref<1x16xf32, #tpu.memory_space<vmem>>, %arg4: memref<5x10xf32, #tpu.memory_space<vmem>>, %arg5: memref<5x10xf32, #tpu.memory_space<vmem>>, %arg6: memref<1x5x5x16xf32, #tpu.memory_space<vmem>>) attributes {dimension_semantics = [#tpu.dimension_semantics<parallel>], iteration_bounds = array<i64: 2>, scalar_prefetch = 0 : i64, scratch_operands = 0 : i64, tpu.core_type = #tpu.core_type<tc>, window_params = [{transform_indices = @transform_0, window_bounds = array<i64: 1, 14, 14, 8>}, {pipeline_mode = #tpu.pipeline_mode<synchronous>, transform_indices = @transform_1, window_bounds = array<i64: 25, 8, 16>}, {pipeline_mode = #tpu.pipeline_mode<synchronous>, transform_indices = @transform_2, window_bounds = array<i64: 1, 16>}, {pipeline_mode = #tpu.pipeline_mode<synchronous>, transform_indices = @transform_3, window_bounds = array<i64: 5, 10>}, {pipeline_mode = #tpu.pipeline_mode<synchronous>, transform_indices = @transform_4, window_bounds = array<i64: 5, 10>}, {transform_indices = @transform_5, window_bounds = array<i64: 1, 5, 5, 16>}]} {
    %c0 = arith.constant 0 : index
    %c0_0 = arith.constant 0 : index
    %0 = vector.load %arg3[%c0, %c0_0] : memref<1x16xf32, #tpu.memory_space<vmem>>, vector<1x16xf32>
    %c0_1 = arith.constant 0 : index
    %c0_2 = arith.constant 0 : index
    %1 = vector.load %arg4[%c0_1, %c0_2] : memref<5x10xf32, #tpu.memory_space<vmem>>, vector<5x10xf32>
    %c0_3 = arith.constant 0 : index
    %c0_4 = arith.constant 0 : index
    %2 = vector.load %arg5[%c0_3, %c0_4] : memref<5x10xf32, #tpu.memory_space<vmem>>, vector<5x10xf32>
    %c0_i32 = arith.constant 0 : i32
    %c5_i32 = arith.constant 5 : i32
    %3 = arith.addi %c0_i32, %c5_i32 : i32
    %c1_i32 = arith.constant 1 : i32
    scf.for %arg7 = %c0_i32 to %3 step %c1_i32  : i32 {
      %c2_i32 = arith.constant 2 : i32
      %4 = arith.muli %c2_i32, %arg7 : i32
      %cst = arith.constant 0.000000e+00 : f32
      %5 = vector.broadcast %cst : f32 to vector<10x16xf32>
      %cst_6 = arith.constant 0.000000e+00 : f32
      %6 = vector.broadcast %cst_6 : f32 to vector<10x16xf32>
      %c0_i32_7 = arith.constant 0 : i32
      %7 = arith.addi %4, %c0_i32_7 : i32
      %c0_8 = arith.constant 0 : index
      %8 = arith.index_cast %7 : i32 to index
      %c0_9 = arith.constant 0 : index
      %c0_10 = arith.constant 0 : index
      %9 = vector.load %arg1[%c0_8, %8, %c0_9, %c0_10] : memref<1x14x14x8xf32, #tpu.memory_space<vmem>>, vector<1x1x10x8xf32>
      %10 = vector.shape_cast %9 : vector<1x1x10x8xf32> to vector<10x8xf32>
      %c0_11 = arith.constant 0 : index
      %c0_12 = arith.constant 0 : index
      %c0_13 = arith.constant 0 : index
      %11 = vector.load %arg2[%c0_11, %c0_12, %c0_13] : memref<25x8x16xf32, #tpu.memory_space<vmem>>, vector<1x8x16xf32>
      %12 = vector.shape_cast %11 : vector<1x8x16xf32> to vector<8x16xf32>
      %cst_14 = arith.constant dense<0.000000e+00> : vector<10x16xf32>
      %13 = tpu.matmul %10, %12, %cst_14 {dimension_numbers = #tpu.dot_dimension_numbers<[1], [0], [0], [1], [0, 0, 1, 1], [], []>} : vector<10x8xf32>, vector<8x16xf32>, vector<10x16xf32> -> vector<10x16xf32>
      %14 = arith.addf %5, %13 : vector<10x16xf32>
      %c0_i32_15 = arith.constant 0 : i32
      %15 = arith.addi %4, %c0_i32_15 : i32
      %c0_16 = arith.constant 0 : index
      %16 = arith.index_cast %15 : i32 to index
      %c1 = arith.constant 1 : index
      %c0_17 = arith.constant 0 : index
      %17 = vector.load %arg1[%c0_16, %16, %c1, %c0_17] : memref<1x14x14x8xf32, #tpu.memory_space<vmem>>, vector<1x1x10x8xf32>
      %18 = vector.shape_cast %17 : vector<1x1x10x8xf32> to vector<10x8xf32>
      %c1_18 = arith.constant 1 : index
      %c0_19 = arith.constant 0 : index
      %c0_20 = arith.constant 0 : index
      %19 = vector.load %arg2[%c1_18, %c0_19, %c0_20] : memref<25x8x16xf32, #tpu.memory_space<vmem>>, vector<1x8x16xf32>
      %20 = vector.shape_cast %19 : vector<1x8x16xf32> to vector<8x16xf32>
      %cst_21 = arith.constant dense<0.000000e+00> : vector<10x16xf32>
      %21 = tpu.matmul %18, %20, %cst_21 {dimension_numbers = #tpu.dot_dimension_numbers<[1], [0], [0], [1], [0, 0, 1, 1], [], []>} : vector<10x8xf32>, vector<8x16xf32>, vector<10x16xf32> -> vector<10x16xf32>
      %22 = arith.addf %14, %21 : vector<10x16xf32>
      %c0_i32_22 = arith.constant 0 : i32
      %23 = arith.addi %4, %c0_i32_22 : i32
      %c0_23 = arith.constant 0 : index
      %24 = arith.index_cast %23 : i32 to index
      %c2 = arith.constant 2 : index
      %c0_24 = arith.constant 0 : index
      %25 = vector.load %arg1[%c0_23, %24, %c2, %c0_24] : memref<1x14x14x8xf32, #tpu.memory_space<vmem>>, vector<1x1x10x8xf32>
      %26 = vector.shape_cast %25 : vector<1x1x10x8xf32> to vector<10x8xf32>
      %c2_25 = arith.constant 2 : index
      %c0_26 = arith.constant 0 : index
      %c0_27 = arith.constant 0 : index
      %27 = vector.load %arg2[%c2_25, %c0_26, %c0_27] : memref<25x8x16xf32, #tpu.memory_space<vmem>>, vector<1x8x16xf32>
      %28 = vector.shape_cast %27 : vector<1x8x16xf32> to vector<8x16xf32>
      %cst_28 = arith.constant dense<0.000000e+00> : vector<10x16xf32>
      %29 = tpu.matmul %26, %28, %cst_28 {dimension_numbers = #tpu.dot_dimension_numbers<[1], [0], [0], [1], [0, 0, 1, 1], [], []>} : vector<10x8xf32>, vector<8x16xf32>, vector<10x16xf32> -> vector<10x16xf32>
      %30 = arith.addf %22, %29 : vector<10x16xf32>
      %c0_i32_29 = arith.constant 0 : i32
      %31 = arith.addi %4, %c0_i32_29 : i32
      %c0_30 = arith.constant 0 : index
      %32 = arith.index_cast %31 : i32 to index
      %c3 = arith.constant 3 : index
      %c0_31 = arith.constant 0 : index
      %33 = vector.load %arg1[%c0_30, %32, %c3, %c0_31] : memref<1x14x14x8xf32, #tpu.memory_space<vmem>>, vector<1x1x10x8xf32>
      %34 = vector.shape_cast %33 : vector<1x1x10x8xf32> to vector<10x8xf32>
      %c3_32 = arith.constant 3 : index
      %c0_33 = arith.constant 0 : index
      %c0_34 = arith.constant 0 : index
      %35 = vector.load %arg2[%c3_32, %c0_33, %c0_34] : memref<25x8x16xf32, #tpu.memory_space<vmem>>, vector<1x8x16xf32>
      %36 = vector.shape_cast %35 : vector<1x8x16xf32> to vector<8x16xf32>
      %cst_35 = arith.constant dense<0.000000e+00> : vector<10x16xf32>
      %37 = tpu.matmul %34, %36, %cst_35 {dimension_numbers = #tpu.dot_dimension_numbers<[1], [0], [0], [1], [0, 0, 1, 1], [], []>} : vector<10x8xf32>, vector<8x16xf32>, vector<10x16xf32> -> vector<10x16xf32>
      %38 = arith.addf %30, %37 : vector<10x16xf32>
      %c0_i32_36 = arith.constant 0 : i32
      %39 = arith.addi %4, %c0_i32_36 : i32
      %c0_37 = arith.constant 0 : index
      %40 = arith.index_cast %39 : i32 to index
      %c4 = arith.constant 4 : index
      %c0_38 = arith.constant 0 : index
      %41 = vector.load %arg1[%c0_37, %40, %c4, %c0_38] : memref<1x14x14x8xf32, #tpu.memory_space<vmem>>, vector<1x1x10x8xf32>
      %42 = vector.shape_cast %41 : vector<1x1x10x8xf32> to vector<10x8xf32>
      %c4_39 = arith.constant 4 : index
      %c0_40 = arith.constant 0 : index
      %c0_41 = arith.constant 0 : index
      %43 = vector.load %arg2[%c4_39, %c0_40, %c0_41] : memref<25x8x16xf32, #tpu.memory_space<vmem>>, vector<1x8x16xf32>
      %44 = vector.shape_cast %43 : vector<1x8x16xf32> to vector<8x16xf32>
      %cst_42 = arith.constant dense<0.000000e+00> : vector<10x16xf32>
      %45 = tpu.matmul %42, %44, %cst_42 {dimension_numbers = #tpu.dot_dimension_numbers<[1], [0], [0], [1], [0, 0, 1, 1], [], []>} : vector<10x8xf32>, vector<8x16xf32>, vector<10x16xf32> -> vector<10x16xf32>
      %46 = arith.addf %38, %45 : vector<10x16xf32>
      %c1_i32_43 = arith.constant 1 : i32
      %47 = arith.addi %4, %c1_i32_43 : i32
      %c0_44 = arith.constant 0 : index
      %48 = arith.index_cast %47 : i32 to index
      %c0_45 = arith.constant 0 : index
      %c0_46 = arith.constant 0 : index
      %49 = vector.load %arg1[%c0_44, %48, %c0_45, %c0_46] : memref<1x14x14x8xf32, #tpu.memory_space<vmem>>, vector<1x1x10x8xf32>
      %50 = vector.shape_cast %49 : vector<1x1x10x8xf32> to vector<10x8xf32>
      %c5 = arith.constant 5 : index
      %c0_47 = arith.constant 0 : index
      %c0_48 = arith.constant 0 : index
      %51 = vector.load %arg2[%c5, %c0_47, %c0_48] : memref<25x8x16xf32, #tpu.memory_space<vmem>>, vector<1x8x16xf32>
      %52 = vector.shape_cast %51 : vector<1x8x16xf32> to vector<8x16xf32>
      %cst_49 = arith.constant dense<0.000000e+00> : vector<10x16xf32>
      %53 = tpu.matmul %50, %52, %cst_49 {dimension_numbers = #tpu.dot_dimension_numbers<[1], [0], [0], [1], [0, 0, 1, 1], [], []>} : vector<10x8xf32>, vector<8x16xf32>, vector<10x16xf32> -> vector<10x16xf32>
      %54 = arith.addf %46, %53 : vector<10x16xf32>
      %c0_50 = arith.constant 0 : index
      %c0_51 = arith.constant 0 : index
      %c0_52 = arith.constant 0 : index
      %55 = vector.load %arg2[%c0_50, %c0_51, %c0_52] : memref<25x8x16xf32, #tpu.memory_space<vmem>>, vector<1x8x16xf32>
      %56 = vector.shape_cast %55 : vector<1x8x16xf32> to vector<8x16xf32>
      %cst_53 = arith.constant dense<0.000000e+00> : vector<10x16xf32>
      %57 = tpu.matmul %50, %56, %cst_53 {dimension_numbers = #tpu.dot_dimension_numbers<[1], [0], [0], [1], [0, 0, 1, 1], [], []>} : vector<10x8xf32>, vector<8x16xf32>, vector<10x16xf32> -> vector<10x16xf32>
      %58 = arith.addf %6, %57 : vector<10x16xf32>
      %c1_i32_54 = arith.constant 1 : i32
      %59 = arith.addi %4, %c1_i32_54 : i32
      %c0_55 = arith.constant 0 : index
      %60 = arith.index_cast %59 : i32 to index
      %c1_56 = arith.constant 1 : index
      %c0_57 = arith.constant 0 : index
      %61 = vector.load %arg1[%c0_55, %60, %c1_56, %c0_57] : memref<1x14x14x8xf32, #tpu.memory_space<vmem>>, vector<1x1x10x8xf32>
      %62 = vector.shape_cast %61 : vector<1x1x10x8xf32> to vector<10x8xf32>
      %c6 = arith.constant 6 : index
      %c0_58 = arith.constant 0 : index
      %c0_59 = arith.constant 0 : index
      %63 = vector.load %arg2[%c6, %c0_58, %c0_59] : memref<25x8x16xf32, #tpu.memory_space<vmem>>, vector<1x8x16xf32>
      %64 = vector.shape_cast %63 : vector<1x8x16xf32> to vector<8x16xf32>
      %cst_60 = arith.constant dense<0.000000e+00> : vector<10x16xf32>
      %65 = tpu.matmul %62, %64, %cst_60 {dimension_numbers = #tpu.dot_dimension_numbers<[1], [0], [0], [1], [0, 0, 1, 1], [], []>} : vector<10x8xf32>, vector<8x16xf32>, vector<10x16xf32> -> vector<10x16xf32>
      %66 = arith.addf %54, %65 : vector<10x16xf32>
      %c1_61 = arith.constant 1 : index
      %c0_62 = arith.constant 0 : index
      %c0_63 = arith.constant 0 : index
      %67 = vector.load %arg2[%c1_61, %c0_62, %c0_63] : memref<25x8x16xf32, #tpu.memory_space<vmem>>, vector<1x8x16xf32>
      %68 = vector.shape_cast %67 : vector<1x8x16xf32> to vector<8x16xf32>
      %cst_64 = arith.constant dense<0.000000e+00> : vector<10x16xf32>
      %69 = tpu.matmul %62, %68, %cst_64 {dimension_numbers = #tpu.dot_dimension_numbers<[1], [0], [0], [1], [0, 0, 1, 1], [], []>} : vector<10x8xf32>, vector<8x16xf32>, vector<10x16xf32> -> vector<10x16xf32>
      %70 = arith.addf %58, %69 : vector<10x16xf32>
      %c1_i32_65 = arith.constant 1 : i32
      %71 = arith.addi %4, %c1_i32_65 : i32
      %c0_66 = arith.constant 0 : index
      %72 = arith.index_cast %71 : i32 to index
      %c2_67 = arith.constant 2 : index
      %c0_68 = arith.constant 0 : index
      %73 = vector.load %arg1[%c0_66, %72, %c2_67, %c0_68] : memref<1x14x14x8xf32, #tpu.memory_space<vmem>>, vector<1x1x10x8xf32>
      %74 = vector.shape_cast %73 : vector<1x1x10x8xf32> to vector<10x8xf32>
      %c7 = arith.constant 7 : index
      %c0_69 = arith.constant 0 : index
      %c0_70 = arith.constant 0 : index
      %75 = vector.load %arg2[%c7, %c0_69, %c0_70] : memref<25x8x16xf32, #tpu.memory_space<vmem>>, vector<1x8x16xf32>
      %76 = vector.shape_cast %75 : vector<1x8x16xf32> to vector<8x16xf32>
      %cst_71 = arith.constant dense<0.000000e+00> : vector<10x16xf32>
      %77 = tpu.matmul %74, %76, %cst_71 {dimension_numbers = #tpu.dot_dimension_numbers<[1], [0], [0], [1], [0, 0, 1, 1], [], []>} : vector<10x8xf32>, vector<8x16xf32>, vector<10x16xf32> -> vector<10x16xf32>
      %78 = arith.addf %66, %77 : vector<10x16xf32>
      %c2_72 = arith.constant 2 : index
      %c0_73 = arith.constant 0 : index
      %c0_74 = arith.constant 0 : index
      %79 = vector.load %arg2[%c2_72, %c0_73, %c0_74] : memref<25x8x16xf32, #tpu.memory_space<vmem>>, vector<1x8x16xf32>
      %80 = vector.shape_cast %79 : vector<1x8x16xf32> to vector<8x16xf32>
      %cst_75 = arith.constant dense<0.000000e+00> : vector<10x16xf32>
      %81 = tpu.matmul %74, %80, %cst_75 {dimension_numbers = #tpu.dot_dimension_numbers<[1], [0], [0], [1], [0, 0, 1, 1], [], []>} : vector<10x8xf32>, vector<8x16xf32>, vector<10x16xf32> -> vector<10x16xf32>
      %82 = arith.addf %70, %81 : vector<10x16xf32>
      %c1_i32_76 = arith.constant 1 : i32
      %83 = arith.addi %4, %c1_i32_76 : i32
      %c0_77 = arith.constant 0 : index
      %84 = arith.index_cast %83 : i32 to index
      %c3_78 = arith.constant 3 : index
      %c0_79 = arith.constant 0 : index
      %85 = vector.load %arg1[%c0_77, %84, %c3_78, %c0_79] : memref<1x14x14x8xf32, #tpu.memory_space<vmem>>, vector<1x1x10x8xf32>
      %86 = vector.shape_cast %85 : vector<1x1x10x8xf32> to vector<10x8xf32>
      %c8 = arith.constant 8 : index
      %c0_80 = arith.constant 0 : index
      %c0_81 = arith.constant 0 : index
      %87 = vector.load %arg2[%c8, %c0_80, %c0_81] : memref<25x8x16xf32, #tpu.memory_space<vmem>>, vector<1x8x16xf32>
      %88 = vector.shape_cast %87 : vector<1x8x16xf32> to vector<8x16xf32>
      %cst_82 = arith.constant dense<0.000000e+00> : vector<10x16xf32>
      %89 = tpu.matmul %86, %88, %cst_82 {dimension_numbers = #tpu.dot_dimension_numbers<[1], [0], [0], [1], [0, 0, 1, 1], [], []>} : vector<10x8xf32>, vector<8x16xf32>, vector<10x16xf32> -> vector<10x16xf32>
      %90 = arith.addf %78, %89 : vector<10x16xf32>
      %c3_83 = arith.constant 3 : index
      %c0_84 = arith.constant 0 : index
      %c0_85 = arith.constant 0 : index
      %91 = vector.load %arg2[%c3_83, %c0_84, %c0_85] : memref<25x8x16xf32, #tpu.memory_space<vmem>>, vector<1x8x16xf32>
      %92 = vector.shape_cast %91 : vector<1x8x16xf32> to vector<8x16xf32>
      %cst_86 = arith.constant dense<0.000000e+00> : vector<10x16xf32>
      %93 = tpu.matmul %86, %92, %cst_86 {dimension_numbers = #tpu.dot_dimension_numbers<[1], [0], [0], [1], [0, 0, 1, 1], [], []>} : vector<10x8xf32>, vector<8x16xf32>, vector<10x16xf32> -> vector<10x16xf32>
      %94 = arith.addf %82, %93 : vector<10x16xf32>
      %c1_i32_87 = arith.constant 1 : i32
      %95 = arith.addi %4, %c1_i32_87 : i32
      %c0_88 = arith.constant 0 : index
      %96 = arith.index_cast %95 : i32 to index
      %c4_89 = arith.constant 4 : index
      %c0_90 = arith.constant 0 : index
      %97 = vector.load %arg1[%c0_88, %96, %c4_89, %c0_90] : memref<1x14x14x8xf32, #tpu.memory_space<vmem>>, vector<1x1x10x8xf32>
      %98 = vector.shape_cast %97 : vector<1x1x10x8xf32> to vector<10x8xf32>
      %c9 = arith.constant 9 : index
      %c0_91 = arith.constant 0 : index
      %c0_92 = arith.constant 0 : index
      %99 = vector.load %arg2[%c9, %c0_91, %c0_92] : memref<25x8x16xf32, #tpu.memory_space<vmem>>, vector<1x8x16xf32>
      %100 = vector.shape_cast %99 : vector<1x8x16xf32> to vector<8x16xf32>
      %cst_93 = arith.constant dense<0.000000e+00> : vector<10x16xf32>
      %101 = tpu.matmul %98, %100, %cst_93 {dimension_numbers = #tpu.dot_dimension_numbers<[1], [0], [0], [1], [0, 0, 1, 1], [], []>} : vector<10x8xf32>, vector<8x16xf32>, vector<10x16xf32> -> vector<10x16xf32>
      %102 = arith.addf %90, %101 : vector<10x16xf32>
      %c4_94 = arith.constant 4 : index
      %c0_95 = arith.constant 0 : index
      %c0_96 = arith.constant 0 : index
      %103 = vector.load %arg2[%c4_94, %c0_95, %c0_96] : memref<25x8x16xf32, #tpu.memory_space<vmem>>, vector<1x8x16xf32>
      %104 = vector.shape_cast %103 : vector<1x8x16xf32> to vector<8x16xf32>
      %cst_97 = arith.constant dense<0.000000e+00> : vector<10x16xf32>
      %105 = tpu.matmul %98, %104, %cst_97 {dimension_numbers = #tpu.dot_dimension_numbers<[1], [0], [0], [1], [0, 0, 1, 1], [], []>} : vector<10x8xf32>, vector<8x16xf32>, vector<10x16xf32> -> vector<10x16xf32>
      %106 = arith.addf %94, %105 : vector<10x16xf32>
      %c2_i32_98 = arith.constant 2 : i32
      %107 = arith.addi %4, %c2_i32_98 : i32
      %c0_99 = arith.constant 0 : index
      %108 = arith.index_cast %107 : i32 to index
      %c0_100 = arith.constant 0 : index
      %c0_101 = arith.constant 0 : index
      %109 = vector.load %arg1[%c0_99, %108, %c0_100, %c0_101] : memref<1x14x14x8xf32, #tpu.memory_space<vmem>>, vector<1x1x10x8xf32>
      %110 = vector.shape_cast %109 : vector<1x1x10x8xf32> to vector<10x8xf32>
      %c10 = arith.constant 10 : index
      %c0_102 = arith.constant 0 : index
      %c0_103 = arith.constant 0 : index
      %111 = vector.load %arg2[%c10, %c0_102, %c0_103] : memref<25x8x16xf32, #tpu.memory_space<vmem>>, vector<1x8x16xf32>
      %112 = vector.shape_cast %111 : vector<1x8x16xf32> to vector<8x16xf32>
      %cst_104 = arith.constant dense<0.000000e+00> : vector<10x16xf32>
      %113 = tpu.matmul %110, %112, %cst_104 {dimension_numbers = #tpu.dot_dimension_numbers<[1], [0], [0], [1], [0, 0, 1, 1], [], []>} : vector<10x8xf32>, vector<8x16xf32>, vector<10x16xf32> -> vector<10x16xf32>
      %114 = arith.addf %102, %113 : vector<10x16xf32>
      %c5_105 = arith.constant 5 : index
      %c0_106 = arith.constant 0 : index
      %c0_107 = arith.constant 0 : index
      %115 = vector.load %arg2[%c5_105, %c0_106, %c0_107] : memref<25x8x16xf32, #tpu.memory_space<vmem>>, vector<1x8x16xf32>
      %116 = vector.shape_cast %115 : vector<1x8x16xf32> to vector<8x16xf32>
      %cst_108 = arith.constant dense<0.000000e+00> : vector<10x16xf32>
      %117 = tpu.matmul %110, %116, %cst_108 {dimension_numbers = #tpu.dot_dimension_numbers<[1], [0], [0], [1], [0, 0, 1, 1], [], []>} : vector<10x8xf32>, vector<8x16xf32>, vector<10x16xf32> -> vector<10x16xf32>
      %118 = arith.addf %106, %117 : vector<10x16xf32>
      %c2_i32_109 = arith.constant 2 : i32
      %119 = arith.addi %4, %c2_i32_109 : i32
      %c0_110 = arith.constant 0 : index
      %120 = arith.index_cast %119 : i32 to index
      %c1_111 = arith.constant 1 : index
      %c0_112 = arith.constant 0 : index
      %121 = vector.load %arg1[%c0_110, %120, %c1_111, %c0_112] : memref<1x14x14x8xf32, #tpu.memory_space<vmem>>, vector<1x1x10x8xf32>
      %122 = vector.shape_cast %121 : vector<1x1x10x8xf32> to vector<10x8xf32>
      %c11 = arith.constant 11 : index
      %c0_113 = arith.constant 0 : index
      %c0_114 = arith.constant 0 : index
      %123 = vector.load %arg2[%c11, %c0_113, %c0_114] : memref<25x8x16xf32, #tpu.memory_space<vmem>>, vector<1x8x16xf32>
      %124 = vector.shape_cast %123 : vector<1x8x16xf32> to vector<8x16xf32>
      %cst_115 = arith.constant dense<0.000000e+00> : vector<10x16xf32>
      %125 = tpu.matmul %122, %124, %cst_115 {dimension_numbers = #tpu.dot_dimension_numbers<[1], [0], [0], [1], [0, 0, 1, 1], [], []>} : vector<10x8xf32>, vector<8x16xf32>, vector<10x16xf32> -> vector<10x16xf32>
      %126 = arith.addf %114, %125 : vector<10x16xf32>
      %c6_116 = arith.constant 6 : index
      %c0_117 = arith.constant 0 : index
      %c0_118 = arith.constant 0 : index
      %127 = vector.load %arg2[%c6_116, %c0_117, %c0_118] : memref<25x8x16xf32, #tpu.memory_space<vmem>>, vector<1x8x16xf32>
      %128 = vector.shape_cast %127 : vector<1x8x16xf32> to vector<8x16xf32>
      %cst_119 = arith.constant dense<0.000000e+00> : vector<10x16xf32>
      %129 = tpu.matmul %122, %128, %cst_119 {dimension_numbers = #tpu.dot_dimension_numbers<[1], [0], [0], [1], [0, 0, 1, 1], [], []>} : vector<10x8xf32>, vector<8x16xf32>, vector<10x16xf32> -> vector<10x16xf32>
      %130 = arith.addf %118, %129 : vector<10x16xf32>
      %c2_i32_120 = arith.constant 2 : i32
      %131 = arith.addi %4, %c2_i32_120 : i32
      %c0_121 = arith.constant 0 : index
      %132 = arith.index_cast %131 : i32 to index
      %c2_122 = arith.constant 2 : index
      %c0_123 = arith.constant 0 : index
      %133 = vector.load %arg1[%c0_121, %132, %c2_122, %c0_123] : memref<1x14x14x8xf32, #tpu.memory_space<vmem>>, vector<1x1x10x8xf32>
      %134 = vector.shape_cast %133 : vector<1x1x10x8xf32> to vector<10x8xf32>
      %c12 = arith.constant 12 : index
      %c0_124 = arith.constant 0 : index
      %c0_125 = arith.constant 0 : index
      %135 = vector.load %arg2[%c12, %c0_124, %c0_125] : memref<25x8x16xf32, #tpu.memory_space<vmem>>, vector<1x8x16xf32>
      %136 = vector.shape_cast %135 : vector<1x8x16xf32> to vector<8x16xf32>
      %cst_126 = arith.constant dense<0.000000e+00> : vector<10x16xf32>
      %137 = tpu.matmul %134, %136, %cst_126 {dimension_numbers = #tpu.dot_dimension_numbers<[1], [0], [0], [1], [0, 0, 1, 1], [], []>} : vector<10x8xf32>, vector<8x16xf32>, vector<10x16xf32> -> vector<10x16xf32>
      %138 = arith.addf %126, %137 : vector<10x16xf32>
      %c7_127 = arith.constant 7 : index
      %c0_128 = arith.constant 0 : index
      %c0_129 = arith.constant 0 : index
      %139 = vector.load %arg2[%c7_127, %c0_128, %c0_129] : memref<25x8x16xf32, #tpu.memory_space<vmem>>, vector<1x8x16xf32>
      %140 = vector.shape_cast %139 : vector<1x8x16xf32> to vector<8x16xf32>
      %cst_130 = arith.constant dense<0.000000e+00> : vector<10x16xf32>
      %141 = tpu.matmul %134, %140, %cst_130 {dimension_numbers = #tpu.dot_dimension_numbers<[1], [0], [0], [1], [0, 0, 1, 1], [], []>} : vector<10x8xf32>, vector<8x16xf32>, vector<10x16xf32> -> vector<10x16xf32>
      %142 = arith.addf %130, %141 : vector<10x16xf32>
      %c2_i32_131 = arith.constant 2 : i32
      %143 = arith.addi %4, %c2_i32_131 : i32
      %c0_132 = arith.constant 0 : index
      %144 = arith.index_cast %143 : i32 to index
      %c3_133 = arith.constant 3 : index
      %c0_134 = arith.constant 0 : index
      %145 = vector.load %arg1[%c0_132, %144, %c3_133, %c0_134] : memref<1x14x14x8xf32, #tpu.memory_space<vmem>>, vector<1x1x10x8xf32>
      %146 = vector.shape_cast %145 : vector<1x1x10x8xf32> to vector<10x8xf32>
      %c13 = arith.constant 13 : index
      %c0_135 = arith.constant 0 : index
      %c0_136 = arith.constant 0 : index
      %147 = vector.load %arg2[%c13, %c0_135, %c0_136] : memref<25x8x16xf32, #tpu.memory_space<vmem>>, vector<1x8x16xf32>
      %148 = vector.shape_cast %147 : vector<1x8x16xf32> to vector<8x16xf32>
      %cst_137 = arith.constant dense<0.000000e+00> : vector<10x16xf32>
      %149 = tpu.matmul %146, %148, %cst_137 {dimension_numbers = #tpu.dot_dimension_numbers<[1], [0], [0], [1], [0, 0, 1, 1], [], []>} : vector<10x8xf32>, vector<8x16xf32>, vector<10x16xf32> -> vector<10x16xf32>
      %150 = arith.addf %138, %149 : vector<10x16xf32>
      %c8_138 = arith.constant 8 : index
      %c0_139 = arith.constant 0 : index
      %c0_140 = arith.constant 0 : index
      %151 = vector.load %arg2[%c8_138, %c0_139, %c0_140] : memref<25x8x16xf32, #tpu.memory_space<vmem>>, vector<1x8x16xf32>
      %152 = vector.shape_cast %151 : vector<1x8x16xf32> to vector<8x16xf32>
      %cst_141 = arith.constant dense<0.000000e+00> : vector<10x16xf32>
      %153 = tpu.matmul %146, %152, %cst_141 {dimension_numbers = #tpu.dot_dimension_numbers<[1], [0], [0], [1], [0, 0, 1, 1], [], []>} : vector<10x8xf32>, vector<8x16xf32>, vector<10x16xf32> -> vector<10x16xf32>
      %154 = arith.addf %142, %153 : vector<10x16xf32>
      %c2_i32_142 = arith.constant 2 : i32
      %155 = arith.addi %4, %c2_i32_142 : i32
      %c0_143 = arith.constant 0 : index
      %156 = arith.index_cast %155 : i32 to index
      %c4_144 = arith.constant 4 : index
      %c0_145 = arith.constant 0 : index
      %157 = vector.load %arg1[%c0_143, %156, %c4_144, %c0_145] : memref<1x14x14x8xf32, #tpu.memory_space<vmem>>, vector<1x1x10x8xf32>
      %158 = vector.shape_cast %157 : vector<1x1x10x8xf32> to vector<10x8xf32>
      %c14 = arith.constant 14 : index
      %c0_146 = arith.constant 0 : index
      %c0_147 = arith.constant 0 : index
      %159 = vector.load %arg2[%c14, %c0_146, %c0_147] : memref<25x8x16xf32, #tpu.memory_space<vmem>>, vector<1x8x16xf32>
      %160 = vector.shape_cast %159 : vector<1x8x16xf32> to vector<8x16xf32>
      %cst_148 = arith.constant dense<0.000000e+00> : vector<10x16xf32>
      %161 = tpu.matmul %158, %160, %cst_148 {dimension_numbers = #tpu.dot_dimension_numbers<[1], [0], [0], [1], [0, 0, 1, 1], [], []>} : vector<10x8xf32>, vector<8x16xf32>, vector<10x16xf32> -> vector<10x16xf32>
      %162 = arith.addf %150, %161 : vector<10x16xf32>
      %c9_149 = arith.constant 9 : index
      %c0_150 = arith.constant 0 : index
      %c0_151 = arith.constant 0 : index
      %163 = vector.load %arg2[%c9_149, %c0_150, %c0_151] : memref<25x8x16xf32, #tpu.memory_space<vmem>>, vector<1x8x16xf32>
      %164 = vector.shape_cast %163 : vector<1x8x16xf32> to vector<8x16xf32>
      %cst_152 = arith.constant dense<0.000000e+00> : vector<10x16xf32>
      %165 = tpu.matmul %158, %164, %cst_152 {dimension_numbers = #tpu.dot_dimension_numbers<[1], [0], [0], [1], [0, 0, 1, 1], [], []>} : vector<10x8xf32>, vector<8x16xf32>, vector<10x16xf32> -> vector<10x16xf32>
      %166 = arith.addf %154, %165 : vector<10x16xf32>
      %c3_i32 = arith.constant 3 : i32
      %167 = arith.addi %4, %c3_i32 : i32
      %c0_153 = arith.constant 0 : index
      %168 = arith.index_cast %167 : i32 to index
      %c0_154 = arith.constant 0 : index
      %c0_155 = arith.constant 0 : index
      %169 = vector.load %arg1[%c0_153, %168, %c0_154, %c0_155] : memref<1x14x14x8xf32, #tpu.memory_space<vmem>>, vector<1x1x10x8xf32>
      %170 = vector.shape_cast %169 : vector<1x1x10x8xf32> to vector<10x8xf32>
      %c15 = arith.constant 15 : index
      %c0_156 = arith.constant 0 : index
      %c0_157 = arith.constant 0 : index
      %171 = vector.load %arg2[%c15, %c0_156, %c0_157] : memref<25x8x16xf32, #tpu.memory_space<vmem>>, vector<1x8x16xf32>
      %172 = vector.shape_cast %171 : vector<1x8x16xf32> to vector<8x16xf32>
      %cst_158 = arith.constant dense<0.000000e+00> : vector<10x16xf32>
      %173 = tpu.matmul %170, %172, %cst_158 {dimension_numbers = #tpu.dot_dimension_numbers<[1], [0], [0], [1], [0, 0, 1, 1], [], []>} : vector<10x8xf32>, vector<8x16xf32>, vector<10x16xf32> -> vector<10x16xf32>
      %174 = arith.addf %162, %173 : vector<10x16xf32>
      %c10_159 = arith.constant 10 : index
      %c0_160 = arith.constant 0 : index
      %c0_161 = arith.constant 0 : index
      %175 = vector.load %arg2[%c10_159, %c0_160, %c0_161] : memref<25x8x16xf32, #tpu.memory_space<vmem>>, vector<1x8x16xf32>
      %176 = vector.shape_cast %175 : vector<1x8x16xf32> to vector<8x16xf32>
      %cst_162 = arith.constant dense<0.000000e+00> : vector<10x16xf32>
      %177 = tpu.matmul %170, %176, %cst_162 {dimension_numbers = #tpu.dot_dimension_numbers<[1], [0], [0], [1], [0, 0, 1, 1], [], []>} : vector<10x8xf32>, vector<8x16xf32>, vector<10x16xf32> -> vector<10x16xf32>
      %178 = arith.addf %166, %177 : vector<10x16xf32>
      %c3_i32_163 = arith.constant 3 : i32
      %179 = arith.addi %4, %c3_i32_163 : i32
      %c0_164 = arith.constant 0 : index
      %180 = arith.index_cast %179 : i32 to index
      %c1_165 = arith.constant 1 : index
      %c0_166 = arith.constant 0 : index
      %181 = vector.load %arg1[%c0_164, %180, %c1_165, %c0_166] : memref<1x14x14x8xf32, #tpu.memory_space<vmem>>, vector<1x1x10x8xf32>
      %182 = vector.shape_cast %181 : vector<1x1x10x8xf32> to vector<10x8xf32>
      %c16 = arith.constant 16 : index
      %c0_167 = arith.constant 0 : index
      %c0_168 = arith.constant 0 : index
      %183 = vector.load %arg2[%c16, %c0_167, %c0_168] : memref<25x8x16xf32, #tpu.memory_space<vmem>>, vector<1x8x16xf32>
      %184 = vector.shape_cast %183 : vector<1x8x16xf32> to vector<8x16xf32>
      %cst_169 = arith.constant dense<0.000000e+00> : vector<10x16xf32>
      %185 = tpu.matmul %182, %184, %cst_169 {dimension_numbers = #tpu.dot_dimension_numbers<[1], [0], [0], [1], [0, 0, 1, 1], [], []>} : vector<10x8xf32>, vector<8x16xf32>, vector<10x16xf32> -> vector<10x16xf32>
      %186 = arith.addf %174, %185 : vector<10x16xf32>
      %c11_170 = arith.constant 11 : index
      %c0_171 = arith.constant 0 : index
      %c0_172 = arith.constant 0 : index
      %187 = vector.load %arg2[%c11_170, %c0_171, %c0_172] : memref<25x8x16xf32, #tpu.memory_space<vmem>>, vector<1x8x16xf32>
      %188 = vector.shape_cast %187 : vector<1x8x16xf32> to vector<8x16xf32>
      %cst_173 = arith.constant dense<0.000000e+00> : vector<10x16xf32>
      %189 = tpu.matmul %182, %188, %cst_173 {dimension_numbers = #tpu.dot_dimension_numbers<[1], [0], [0], [1], [0, 0, 1, 1], [], []>} : vector<10x8xf32>, vector<8x16xf32>, vector<10x16xf32> -> vector<10x16xf32>
      %190 = arith.addf %178, %189 : vector<10x16xf32>
      %c3_i32_174 = arith.constant 3 : i32
      %191 = arith.addi %4, %c3_i32_174 : i32
      %c0_175 = arith.constant 0 : index
      %192 = arith.index_cast %191 : i32 to index
      %c2_176 = arith.constant 2 : index
      %c0_177 = arith.constant 0 : index
      %193 = vector.load %arg1[%c0_175, %192, %c2_176, %c0_177] : memref<1x14x14x8xf32, #tpu.memory_space<vmem>>, vector<1x1x10x8xf32>
      %194 = vector.shape_cast %193 : vector<1x1x10x8xf32> to vector<10x8xf32>
      %c17 = arith.constant 17 : index
      %c0_178 = arith.constant 0 : index
      %c0_179 = arith.constant 0 : index
      %195 = vector.load %arg2[%c17, %c0_178, %c0_179] : memref<25x8x16xf32, #tpu.memory_space<vmem>>, vector<1x8x16xf32>
      %196 = vector.shape_cast %195 : vector<1x8x16xf32> to vector<8x16xf32>
      %cst_180 = arith.constant dense<0.000000e+00> : vector<10x16xf32>
      %197 = tpu.matmul %194, %196, %cst_180 {dimension_numbers = #tpu.dot_dimension_numbers<[1], [0], [0], [1], [0, 0, 1, 1], [], []>} : vector<10x8xf32>, vector<8x16xf32>, vector<10x16xf32> -> vector<10x16xf32>
      %198 = arith.addf %186, %197 : vector<10x16xf32>
      %c12_181 = arith.constant 12 : index
      %c0_182 = arith.constant 0 : index
      %c0_183 = arith.constant 0 : index
      %199 = vector.load %arg2[%c12_181, %c0_182, %c0_183] : memref<25x8x16xf32, #tpu.memory_space<vmem>>, vector<1x8x16xf32>
      %200 = vector.shape_cast %199 : vector<1x8x16xf32> to vector<8x16xf32>
      %cst_184 = arith.constant dense<0.000000e+00> : vector<10x16xf32>
      %201 = tpu.matmul %194, %200, %cst_184 {dimension_numbers = #tpu.dot_dimension_numbers<[1], [0], [0], [1], [0, 0, 1, 1], [], []>} : vector<10x8xf32>, vector<8x16xf32>, vector<10x16xf32> -> vector<10x16xf32>
      %202 = arith.addf %190, %201 : vector<10x16xf32>
      %c3_i32_185 = arith.constant 3 : i32
      %203 = arith.addi %4, %c3_i32_185 : i32
      %c0_186 = arith.constant 0 : index
      %204 = arith.index_cast %203 : i32 to index
      %c3_187 = arith.constant 3 : index
      %c0_188 = arith.constant 0 : index
      %205 = vector.load %arg1[%c0_186, %204, %c3_187, %c0_188] : memref<1x14x14x8xf32, #tpu.memory_space<vmem>>, vector<1x1x10x8xf32>
      %206 = vector.shape_cast %205 : vector<1x1x10x8xf32> to vector<10x8xf32>
      %c18 = arith.constant 18 : index
      %c0_189 = arith.constant 0 : index
      %c0_190 = arith.constant 0 : index
      %207 = vector.load %arg2[%c18, %c0_189, %c0_190] : memref<25x8x16xf32, #tpu.memory_space<vmem>>, vector<1x8x16xf32>
      %208 = vector.shape_cast %207 : vector<1x8x16xf32> to vector<8x16xf32>
      %cst_191 = arith.constant dense<0.000000e+00> : vector<10x16xf32>
      %209 = tpu.matmul %206, %208, %cst_191 {dimension_numbers = #tpu.dot_dimension_numbers<[1], [0], [0], [1], [0, 0, 1, 1], [], []>} : vector<10x8xf32>, vector<8x16xf32>, vector<10x16xf32> -> vector<10x16xf32>
      %210 = arith.addf %198, %209 : vector<10x16xf32>
      %c13_192 = arith.constant 13 : index
      %c0_193 = arith.constant 0 : index
      %c0_194 = arith.constant 0 : index
      %211 = vector.load %arg2[%c13_192, %c0_193, %c0_194] : memref<25x8x16xf32, #tpu.memory_space<vmem>>, vector<1x8x16xf32>
      %212 = vector.shape_cast %211 : vector<1x8x16xf32> to vector<8x16xf32>
      %cst_195 = arith.constant dense<0.000000e+00> : vector<10x16xf32>
      %213 = tpu.matmul %206, %212, %cst_195 {dimension_numbers = #tpu.dot_dimension_numbers<[1], [0], [0], [1], [0, 0, 1, 1], [], []>} : vector<10x8xf32>, vector<8x16xf32>, vector<10x16xf32> -> vector<10x16xf32>
      %214 = arith.addf %202, %213 : vector<10x16xf32>
      %c3_i32_196 = arith.constant 3 : i32
      %215 = arith.addi %4, %c3_i32_196 : i32
      %c0_197 = arith.constant 0 : index
      %216 = arith.index_cast %215 : i32 to index
      %c4_198 = arith.constant 4 : index
      %c0_199 = arith.constant 0 : index
      %217 = vector.load %arg1[%c0_197, %216, %c4_198, %c0_199] : memref<1x14x14x8xf32, #tpu.memory_space<vmem>>, vector<1x1x10x8xf32>
      %218 = vector.shape_cast %217 : vector<1x1x10x8xf32> to vector<10x8xf32>
      %c19 = arith.constant 19 : index
      %c0_200 = arith.constant 0 : index
      %c0_201 = arith.constant 0 : index
      %219 = vector.load %arg2[%c19, %c0_200, %c0_201] : memref<25x8x16xf32, #tpu.memory_space<vmem>>, vector<1x8x16xf32>
      %220 = vector.shape_cast %219 : vector<1x8x16xf32> to vector<8x16xf32>
      %cst_202 = arith.constant dense<0.000000e+00> : vector<10x16xf32>
      %221 = tpu.matmul %218, %220, %cst_202 {dimension_numbers = #tpu.dot_dimension_numbers<[1], [0], [0], [1], [0, 0, 1, 1], [], []>} : vector<10x8xf32>, vector<8x16xf32>, vector<10x16xf32> -> vector<10x16xf32>
      %222 = arith.addf %210, %221 : vector<10x16xf32>
      %c14_203 = arith.constant 14 : index
      %c0_204 = arith.constant 0 : index
      %c0_205 = arith.constant 0 : index
      %223 = vector.load %arg2[%c14_203, %c0_204, %c0_205] : memref<25x8x16xf32, #tpu.memory_space<vmem>>, vector<1x8x16xf32>
      %224 = vector.shape_cast %223 : vector<1x8x16xf32> to vector<8x16xf32>
      %cst_206 = arith.constant dense<0.000000e+00> : vector<10x16xf32>
      %225 = tpu.matmul %218, %224, %cst_206 {dimension_numbers = #tpu.dot_dimension_numbers<[1], [0], [0], [1], [0, 0, 1, 1], [], []>} : vector<10x8xf32>, vector<8x16xf32>, vector<10x16xf32> -> vector<10x16xf32>
      %226 = arith.addf %214, %225 : vector<10x16xf32>
      %c4_i32 = arith.constant 4 : i32
      %227 = arith.addi %4, %c4_i32 : i32
      %c0_207 = arith.constant 0 : index
      %228 = arith.index_cast %227 : i32 to index
      %c0_208 = arith.constant 0 : index
      %c0_209 = arith.constant 0 : index
      %229 = vector.load %arg1[%c0_207, %228, %c0_208, %c0_209] : memref<1x14x14x8xf32, #tpu.memory_space<vmem>>, vector<1x1x10x8xf32>
      %230 = vector.shape_cast %229 : vector<1x1x10x8xf32> to vector<10x8xf32>
      %c20 = arith.constant 20 : index
      %c0_210 = arith.constant 0 : index
      %c0_211 = arith.constant 0 : index
      %231 = vector.load %arg2[%c20, %c0_210, %c0_211] : memref<25x8x16xf32, #tpu.memory_space<vmem>>, vector<1x8x16xf32>
      %232 = vector.shape_cast %231 : vector<1x8x16xf32> to vector<8x16xf32>
      %cst_212 = arith.constant dense<0.000000e+00> : vector<10x16xf32>
      %233 = tpu.matmul %230, %232, %cst_212 {dimension_numbers = #tpu.dot_dimension_numbers<[1], [0], [0], [1], [0, 0, 1, 1], [], []>} : vector<10x8xf32>, vector<8x16xf32>, vector<10x16xf32> -> vector<10x16xf32>
      %234 = arith.addf %222, %233 : vector<10x16xf32>
      %c15_213 = arith.constant 15 : index
      %c0_214 = arith.constant 0 : index
      %c0_215 = arith.constant 0 : index
      %235 = vector.load %arg2[%c15_213, %c0_214, %c0_215] : memref<25x8x16xf32, #tpu.memory_space<vmem>>, vector<1x8x16xf32>
      %236 = vector.shape_cast %235 : vector<1x8x16xf32> to vector<8x16xf32>
      %cst_216 = arith.constant dense<0.000000e+00> : vector<10x16xf32>
      %237 = tpu.matmul %230, %236, %cst_216 {dimension_numbers = #tpu.dot_dimension_numbers<[1], [0], [0], [1], [0, 0, 1, 1], [], []>} : vector<10x8xf32>, vector<8x16xf32>, vector<10x16xf32> -> vector<10x16xf32>
      %238 = arith.addf %226, %237 : vector<10x16xf32>
      %c4_i32_217 = arith.constant 4 : i32
      %239 = arith.addi %4, %c4_i32_217 : i32
      %c0_218 = arith.constant 0 : index
      %240 = arith.index_cast %239 : i32 to index
      %c1_219 = arith.constant 1 : index
      %c0_220 = arith.constant 0 : index
      %241 = vector.load %arg1[%c0_218, %240, %c1_219, %c0_220] : memref<1x14x14x8xf32, #tpu.memory_space<vmem>>, vector<1x1x10x8xf32>
      %242 = vector.shape_cast %241 : vector<1x1x10x8xf32> to vector<10x8xf32>
      %c21 = arith.constant 21 : index
      %c0_221 = arith.constant 0 : index
      %c0_222 = arith.constant 0 : index
      %243 = vector.load %arg2[%c21, %c0_221, %c0_222] : memref<25x8x16xf32, #tpu.memory_space<vmem>>, vector<1x8x16xf32>
      %244 = vector.shape_cast %243 : vector<1x8x16xf32> to vector<8x16xf32>
      %cst_223 = arith.constant dense<0.000000e+00> : vector<10x16xf32>
      %245 = tpu.matmul %242, %244, %cst_223 {dimension_numbers = #tpu.dot_dimension_numbers<[1], [0], [0], [1], [0, 0, 1, 1], [], []>} : vector<10x8xf32>, vector<8x16xf32>, vector<10x16xf32> -> vector<10x16xf32>
      %246 = arith.addf %234, %245 : vector<10x16xf32>
      %c16_224 = arith.constant 16 : index
      %c0_225 = arith.constant 0 : index
      %c0_226 = arith.constant 0 : index
      %247 = vector.load %arg2[%c16_224, %c0_225, %c0_226] : memref<25x8x16xf32, #tpu.memory_space<vmem>>, vector<1x8x16xf32>
      %248 = vector.shape_cast %247 : vector<1x8x16xf32> to vector<8x16xf32>
      %cst_227 = arith.constant dense<0.000000e+00> : vector<10x16xf32>
      %249 = tpu.matmul %242, %248, %cst_227 {dimension_numbers = #tpu.dot_dimension_numbers<[1], [0], [0], [1], [0, 0, 1, 1], [], []>} : vector<10x8xf32>, vector<8x16xf32>, vector<10x16xf32> -> vector<10x16xf32>
      %250 = arith.addf %238, %249 : vector<10x16xf32>
      %c4_i32_228 = arith.constant 4 : i32
      %251 = arith.addi %4, %c4_i32_228 : i32
      %c0_229 = arith.constant 0 : index
      %252 = arith.index_cast %251 : i32 to index
      %c2_230 = arith.constant 2 : index
      %c0_231 = arith.constant 0 : index
      %253 = vector.load %arg1[%c0_229, %252, %c2_230, %c0_231] : memref<1x14x14x8xf32, #tpu.memory_space<vmem>>, vector<1x1x10x8xf32>
      %254 = vector.shape_cast %253 : vector<1x1x10x8xf32> to vector<10x8xf32>
      %c22 = arith.constant 22 : index
      %c0_232 = arith.constant 0 : index
      %c0_233 = arith.constant 0 : index
      %255 = vector.load %arg2[%c22, %c0_232, %c0_233] : memref<25x8x16xf32, #tpu.memory_space<vmem>>, vector<1x8x16xf32>
      %256 = vector.shape_cast %255 : vector<1x8x16xf32> to vector<8x16xf32>
      %cst_234 = arith.constant dense<0.000000e+00> : vector<10x16xf32>
      %257 = tpu.matmul %254, %256, %cst_234 {dimension_numbers = #tpu.dot_dimension_numbers<[1], [0], [0], [1], [0, 0, 1, 1], [], []>} : vector<10x8xf32>, vector<8x16xf32>, vector<10x16xf32> -> vector<10x16xf32>
      %258 = arith.addf %246, %257 : vector<10x16xf32>
      %c17_235 = arith.constant 17 : index
      %c0_236 = arith.constant 0 : index
      %c0_237 = arith.constant 0 : index
      %259 = vector.load %arg2[%c17_235, %c0_236, %c0_237] : memref<25x8x16xf32, #tpu.memory_space<vmem>>, vector<1x8x16xf32>
      %260 = vector.shape_cast %259 : vector<1x8x16xf32> to vector<8x16xf32>
      %cst_238 = arith.constant dense<0.000000e+00> : vector<10x16xf32>
      %261 = tpu.matmul %254, %260, %cst_238 {dimension_numbers = #tpu.dot_dimension_numbers<[1], [0], [0], [1], [0, 0, 1, 1], [], []>} : vector<10x8xf32>, vector<8x16xf32>, vector<10x16xf32> -> vector<10x16xf32>
      %262 = arith.addf %250, %261 : vector<10x16xf32>
      %c4_i32_239 = arith.constant 4 : i32
      %263 = arith.addi %4, %c4_i32_239 : i32
      %c0_240 = arith.constant 0 : index
      %264 = arith.index_cast %263 : i32 to index
      %c3_241 = arith.constant 3 : index
      %c0_242 = arith.constant 0 : index
      %265 = vector.load %arg1[%c0_240, %264, %c3_241, %c0_242] : memref<1x14x14x8xf32, #tpu.memory_space<vmem>>, vector<1x1x10x8xf32>
      %266 = vector.shape_cast %265 : vector<1x1x10x8xf32> to vector<10x8xf32>
      %c23 = arith.constant 23 : index
      %c0_243 = arith.constant 0 : index
      %c0_244 = arith.constant 0 : index
      %267 = vector.load %arg2[%c23, %c0_243, %c0_244] : memref<25x8x16xf32, #tpu.memory_space<vmem>>, vector<1x8x16xf32>
      %268 = vector.shape_cast %267 : vector<1x8x16xf32> to vector<8x16xf32>
      %cst_245 = arith.constant dense<0.000000e+00> : vector<10x16xf32>
      %269 = tpu.matmul %266, %268, %cst_245 {dimension_numbers = #tpu.dot_dimension_numbers<[1], [0], [0], [1], [0, 0, 1, 1], [], []>} : vector<10x8xf32>, vector<8x16xf32>, vector<10x16xf32> -> vector<10x16xf32>
      %270 = arith.addf %258, %269 : vector<10x16xf32>
      %c18_246 = arith.constant 18 : index
      %c0_247 = arith.constant 0 : index
      %c0_248 = arith.constant 0 : index
      %271 = vector.load %arg2[%c18_246, %c0_247, %c0_248] : memref<25x8x16xf32, #tpu.memory_space<vmem>>, vector<1x8x16xf32>
      %272 = vector.shape_cast %271 : vector<1x8x16xf32> to vector<8x16xf32>
      %cst_249 = arith.constant dense<0.000000e+00> : vector<10x16xf32>
      %273 = tpu.matmul %266, %272, %cst_249 {dimension_numbers = #tpu.dot_dimension_numbers<[1], [0], [0], [1], [0, 0, 1, 1], [], []>} : vector<10x8xf32>, vector<8x16xf32>, vector<10x16xf32> -> vector<10x16xf32>
      %274 = arith.addf %262, %273 : vector<10x16xf32>
      %c4_i32_250 = arith.constant 4 : i32
      %275 = arith.addi %4, %c4_i32_250 : i32
      %c0_251 = arith.constant 0 : index
      %276 = arith.index_cast %275 : i32 to index
      %c4_252 = arith.constant 4 : index
      %c0_253 = arith.constant 0 : index
      %277 = vector.load %arg1[%c0_251, %276, %c4_252, %c0_253] : memref<1x14x14x8xf32, #tpu.memory_space<vmem>>, vector<1x1x10x8xf32>
      %278 = vector.shape_cast %277 : vector<1x1x10x8xf32> to vector<10x8xf32>
      %c24 = arith.constant 24 : index
      %c0_254 = arith.constant 0 : index
      %c0_255 = arith.constant 0 : index
      %279 = vector.load %arg2[%c24, %c0_254, %c0_255] : memref<25x8x16xf32, #tpu.memory_space<vmem>>, vector<1x8x16xf32>
      %280 = vector.shape_cast %279 : vector<1x8x16xf32> to vector<8x16xf32>
      %cst_256 = arith.constant dense<0.000000e+00> : vector<10x16xf32>
      %281 = tpu.matmul %278, %280, %cst_256 {dimension_numbers = #tpu.dot_dimension_numbers<[1], [0], [0], [1], [0, 0, 1, 1], [], []>} : vector<10x8xf32>, vector<8x16xf32>, vector<10x16xf32> -> vector<10x16xf32>
      %282 = arith.addf %270, %281 : vector<10x16xf32>
      %c19_257 = arith.constant 19 : index
      %c0_258 = arith.constant 0 : index
      %c0_259 = arith.constant 0 : index
      %283 = vector.load %arg2[%c19_257, %c0_258, %c0_259] : memref<25x8x16xf32, #tpu.memory_space<vmem>>, vector<1x8x16xf32>
      %284 = vector.shape_cast %283 : vector<1x8x16xf32> to vector<8x16xf32>
      %cst_260 = arith.constant dense<0.000000e+00> : vector<10x16xf32>
      %285 = tpu.matmul %278, %284, %cst_260 {dimension_numbers = #tpu.dot_dimension_numbers<[1], [0], [0], [1], [0, 0, 1, 1], [], []>} : vector<10x8xf32>, vector<8x16xf32>, vector<10x16xf32> -> vector<10x16xf32>
      %286 = arith.addf %274, %285 : vector<10x16xf32>
      %c5_i32_261 = arith.constant 5 : i32
      %287 = arith.addi %4, %c5_i32_261 : i32
      %c0_262 = arith.constant 0 : index
      %288 = arith.index_cast %287 : i32 to index
      %c0_263 = arith.constant 0 : index
      %c0_264 = arith.constant 0 : index
      %289 = vector.load %arg1[%c0_262, %288, %c0_263, %c0_264] : memref<1x14x14x8xf32, #tpu.memory_space<vmem>>, vector<1x1x10x8xf32>
      %290 = vector.shape_cast %289 : vector<1x1x10x8xf32> to vector<10x8xf32>
      %c20_265 = arith.constant 20 : index
      %c0_266 = arith.constant 0 : index
      %c0_267 = arith.constant 0 : index
      %291 = vector.load %arg2[%c20_265, %c0_266, %c0_267] : memref<25x8x16xf32, #tpu.memory_space<vmem>>, vector<1x8x16xf32>
      %292 = vector.shape_cast %291 : vector<1x8x16xf32> to vector<8x16xf32>
      %cst_268 = arith.constant dense<0.000000e+00> : vector<10x16xf32>
      %293 = tpu.matmul %290, %292, %cst_268 {dimension_numbers = #tpu.dot_dimension_numbers<[1], [0], [0], [1], [0, 0, 1, 1], [], []>} : vector<10x8xf32>, vector<8x16xf32>, vector<10x16xf32> -> vector<10x16xf32>
      %294 = arith.addf %286, %293 : vector<10x16xf32>
      %c5_i32_269 = arith.constant 5 : i32
      %295 = arith.addi %4, %c5_i32_269 : i32
      %c0_270 = arith.constant 0 : index
      %296 = arith.index_cast %295 : i32 to index
      %c1_271 = arith.constant 1 : index
      %c0_272 = arith.constant 0 : index
      %297 = vector.load %arg1[%c0_270, %296, %c1_271, %c0_272] : memref<1x14x14x8xf32, #tpu.memory_space<vmem>>, vector<1x1x10x8xf32>
      %298 = vector.shape_cast %297 : vector<1x1x10x8xf32> to vector<10x8xf32>
      %c21_273 = arith.constant 21 : index
      %c0_274 = arith.constant 0 : index
      %c0_275 = arith.constant 0 : index
      %299 = vector.load %arg2[%c21_273, %c0_274, %c0_275] : memref<25x8x16xf32, #tpu.memory_space<vmem>>, vector<1x8x16xf32>
      %300 = vector.shape_cast %299 : vector<1x8x16xf32> to vector<8x16xf32>
      %cst_276 = arith.constant dense<0.000000e+00> : vector<10x16xf32>
      %301 = tpu.matmul %298, %300, %cst_276 {dimension_numbers = #tpu.dot_dimension_numbers<[1], [0], [0], [1], [0, 0, 1, 1], [], []>} : vector<10x8xf32>, vector<8x16xf32>, vector<10x16xf32> -> vector<10x16xf32>
      %302 = arith.addf %294, %301 : vector<10x16xf32>
      %c5_i32_277 = arith.constant 5 : i32
      %303 = arith.addi %4, %c5_i32_277 : i32
      %c0_278 = arith.constant 0 : index
      %304 = arith.index_cast %303 : i32 to index
      %c2_279 = arith.constant 2 : index
      %c0_280 = arith.constant 0 : index
      %305 = vector.load %arg1[%c0_278, %304, %c2_279, %c0_280] : memref<1x14x14x8xf32, #tpu.memory_space<vmem>>, vector<1x1x10x8xf32>
      %306 = vector.shape_cast %305 : vector<1x1x10x8xf32> to vector<10x8xf32>
      %c22_281 = arith.constant 22 : index
      %c0_282 = arith.constant 0 : index
      %c0_283 = arith.constant 0 : index
      %307 = vector.load %arg2[%c22_281, %c0_282, %c0_283] : memref<25x8x16xf32, #tpu.memory_space<vmem>>, vector<1x8x16xf32>
      %308 = vector.shape_cast %307 : vector<1x8x16xf32> to vector<8x16xf32>
      %cst_284 = arith.constant dense<0.000000e+00> : vector<10x16xf32>
      %309 = tpu.matmul %306, %308, %cst_284 {dimension_numbers = #tpu.dot_dimension_numbers<[1], [0], [0], [1], [0, 0, 1, 1], [], []>} : vector<10x8xf32>, vector<8x16xf32>, vector<10x16xf32> -> vector<10x16xf32>
      %310 = arith.addf %302, %309 : vector<10x16xf32>
      %c5_i32_285 = arith.constant 5 : i32
      %311 = arith.addi %4, %c5_i32_285 : i32
      %c0_286 = arith.constant 0 : index
      %312 = arith.index_cast %311 : i32 to index
      %c3_287 = arith.constant 3 : index
      %c0_288 = arith.constant 0 : index
      %313 = vector.load %arg1[%c0_286, %312, %c3_287, %c0_288] : memref<1x14x14x8xf32, #tpu.memory_space<vmem>>, vector<1x1x10x8xf32>
      %314 = vector.shape_cast %313 : vector<1x1x10x8xf32> to vector<10x8xf32>
      %c23_289 = arith.constant 23 : index
      %c0_290 = arith.constant 0 : index
      %c0_291 = arith.constant 0 : index
      %315 = vector.load %arg2[%c23_289, %c0_290, %c0_291] : memref<25x8x16xf32, #tpu.memory_space<vmem>>, vector<1x8x16xf32>
      %316 = vector.shape_cast %315 : vector<1x8x16xf32> to vector<8x16xf32>
      %cst_292 = arith.constant dense<0.000000e+00> : vector<10x16xf32>
      %317 = tpu.matmul %314, %316, %cst_292 {dimension_numbers = #tpu.dot_dimension_numbers<[1], [0], [0], [1], [0, 0, 1, 1], [], []>} : vector<10x8xf32>, vector<8x16xf32>, vector<10x16xf32> -> vector<10x16xf32>
      %318 = arith.addf %310, %317 : vector<10x16xf32>
      %c5_i32_293 = arith.constant 5 : i32
      %319 = arith.addi %4, %c5_i32_293 : i32
      %c0_294 = arith.constant 0 : index
      %320 = arith.index_cast %319 : i32 to index
      %c4_295 = arith.constant 4 : index
      %c0_296 = arith.constant 0 : index
      %321 = vector.load %arg1[%c0_294, %320, %c4_295, %c0_296] : memref<1x14x14x8xf32, #tpu.memory_space<vmem>>, vector<1x1x10x8xf32>
      %322 = vector.shape_cast %321 : vector<1x1x10x8xf32> to vector<10x8xf32>
      %c24_297 = arith.constant 24 : index
      %c0_298 = arith.constant 0 : index
      %c0_299 = arith.constant 0 : index
      %323 = vector.load %arg2[%c24_297, %c0_298, %c0_299] : memref<25x8x16xf32, #tpu.memory_space<vmem>>, vector<1x8x16xf32>
      %324 = vector.shape_cast %323 : vector<1x8x16xf32> to vector<8x16xf32>
      %cst_300 = arith.constant dense<0.000000e+00> : vector<10x16xf32>
      %325 = tpu.matmul %322, %324, %cst_300 {dimension_numbers = #tpu.dot_dimension_numbers<[1], [0], [0], [1], [0, 0, 1, 1], [], []>} : vector<10x8xf32>, vector<8x16xf32>, vector<10x16xf32> -> vector<10x16xf32>
      %326 = arith.addf %318, %325 : vector<10x16xf32>
      %327 = arith.maximumf %282, %326 : vector<10x16xf32>
      %cst_301 = arith.constant dense<0.000000e+00> : vector<5x16xf32>
      %328 = tpu.matmul %1, %327, %cst_301 {dimension_numbers = #tpu.dot_dimension_numbers<[1], [0], [0], [1], [0, 0, 1, 1], [], []>} : vector<5x10xf32>, vector<10x16xf32>, vector<5x16xf32> -> vector<5x16xf32>
      %cst_302 = arith.constant dense<0.000000e+00> : vector<5x16xf32>
      %329 = tpu.matmul %2, %327, %cst_302 {dimension_numbers = #tpu.dot_dimension_numbers<[1], [0], [0], [1], [0, 0, 1, 1], [], []>} : vector<5x10xf32>, vector<10x16xf32>, vector<5x16xf32> -> vector<5x16xf32>
      %330 = arith.maximumf %328, %329 : vector<5x16xf32>
      %331 = vector.broadcast %0 : vector<1x16xf32> to vector<5x16xf32>
      %332 = arith.addf %330, %331 : vector<5x16xf32>
      %cst_303 = arith.constant 0.000000e+00 : f32
      %333 = vector.broadcast %cst_303 : f32 to vector<5x16xf32>
      %334 = arith.maximumf %332, %333 : vector<5x16xf32>
      %c0_304 = arith.constant 0 : index
      %335 = arith.index_cast %arg7 : i32 to index
      %c0_305 = arith.constant 0 : index
      %c0_306 = arith.constant 0 : index
      %336 = vector.load %arg6[%c0_304, %335, %c0_305, %c0_306] : memref<1x5x5x16xf32, #tpu.memory_space<vmem>>, vector<1x1x5x16xf32>
      %337 = vector.shape_cast %336 : vector<1x1x5x16xf32> to vector<5x16xf32>
      %338 = vector.shape_cast %334 : vector<5x16xf32> to vector<1x1x5x16xf32>
      tpu.vector_store %arg6[%c0_304, %335, %c0_305, %c0_306], %338 {strides = array<i32>} : memref<1x5x5x16xf32, #tpu.memory_space<vmem>>, vector<1x1x5x16xf32>,
    }
    %c5_i32_5 = arith.constant 5 : i32
    return
  }
  func.func @transform_0(%arg0: i32) -> (i32, i32, i32, i32) {
    %c0_i32 = arith.constant 0 : i32
    %c0_i32_0 = arith.constant 0 : i32
    %c0_i32_1 = arith.constant 0 : i32
    %c0_i32_2 = arith.constant 0 : i32
    return %arg0, %c0_i32, %c0_i32_0, %c0_i32_1 : i32, i32, i32, i32
  }
  func.func @transform_1(%arg0: i32) -> (i32, i32, i32) {
    %c0_i32 = arith.constant 0 : i32
    %c0_i32_0 = arith.constant 0 : i32
    %c0_i32_1 = arith.constant 0 : i32
    %c0_i32_2 = arith.constant 0 : i32
    return %c0_i32, %c0_i32_0, %c0_i32_1 : i32, i32, i32
  }
  func.func @transform_2(%arg0: i32) -> (i32, i32) {
    %c0_i32 = arith.constant 0 : i32
    %c0_i32_0 = arith.constant 0 : i32
    %c0_i32_1 = arith.constant 0 : i32
    return %c0_i32, %c0_i32_0 : i32, i32
  }
  func.func @transform_3(%arg0: i32) -> (i32, i32) {
    %c0_i32 = arith.constant 0 : i32
    %c0_i32_0 = arith.constant 0 : i32
    %c0_i32_1 = arith.constant 0 : i32
    return %c0_i32, %c0_i32_0 : i32, i32
  }
  func.func @transform_4(%arg0: i32) -> (i32, i32) {
    %c0_i32 = arith.constant 0 : i32
    %c0_i32_0 = arith.constant 0 : i32
    %c0_i32_1 = arith.constant 0 : i32
    return %c0_i32, %c0_i32_0 : i32, i32
  }
  func.func @transform_5(%arg0: i32) -> (i32, i32, i32, i32) {
    %c0_i32 = arith.constant 0 : i32
    %c0_i32_0 = arith.constant 0 : i32
    %c0_i32_1 = arith.constant 0 : i32
    %c0_i32_2 = arith.constant 0 : i32
    return %arg0, %c0_i32, %c0_i32_0, %c0_i32_1 : i32, i32, i32, i32
  }
}

module attributes {stable_mosaic.version = 11 : i64} {
  func.func @_fc_chain_kernel(%arg0: memref<2x400xf32, #tpu.memory_space<vmem>>, %arg1: memref<400x128xf32, #tpu.memory_space<vmem>>, %arg2: memref<1x128xf32, #tpu.memory_space<vmem>>, %arg3: memref<128x128xf32, #tpu.memory_space<vmem>>, %arg4: memref<1x128xf32, #tpu.memory_space<vmem>>, %arg5: memref<128x10xf32, #tpu.memory_space<vmem>>, %arg6: memref<1x10xf32, #tpu.memory_space<vmem>>, %arg7: memref<2x10xf32, #tpu.memory_space<vmem>>) attributes {dimension_semantics = [], scalar_prefetch = 0 : i64, scratch_operands = 0 : i64, tpu.core_type = #tpu.core_type<tc>} {
    %c0 = arith.constant 0 : index
    %c0_0 = arith.constant 0 : index
    %0 = vector.load %arg0[%c0, %c0_0] : memref<2x400xf32, #tpu.memory_space<vmem>>, vector<2x400xf32>
    %c0_1 = arith.constant 0 : index
    %c0_2 = arith.constant 0 : index
    %1 = vector.load %arg1[%c0_1, %c0_2] : memref<400x128xf32, #tpu.memory_space<vmem>>, vector<400x128xf32>
    %cst = arith.constant dense<0.000000e+00> : vector<2x128xf32>
    %2 = tpu.matmul %0, %1, %cst {dimension_numbers = #tpu.dot_dimension_numbers<[1], [0], [0], [1], [0, 0, 1, 1], [], []>} : vector<2x400xf32>, vector<400x128xf32>, vector<2x128xf32> -> vector<2x128xf32>
    %c0_3 = arith.constant 0 : index
    %c0_4 = arith.constant 0 : index
    %3 = vector.load %arg2[%c0_3, %c0_4] : memref<1x128xf32, #tpu.memory_space<vmem>>, vector<1x128xf32>
    %4 = vector.broadcast %3 : vector<1x128xf32> to vector<2x128xf32>
    %5 = arith.addf %2, %4 : vector<2x128xf32>
    %cst_5 = arith.constant 0.000000e+00 : f32
    %6 = vector.broadcast %cst_5 : f32 to vector<2x128xf32>
    %7 = arith.maximumf %5, %6 : vector<2x128xf32>
    %c0_6 = arith.constant 0 : index
    %c0_7 = arith.constant 0 : index
    %8 = vector.load %arg3[%c0_6, %c0_7] : memref<128x128xf32, #tpu.memory_space<vmem>>, vector<128x128xf32>
    %cst_8 = arith.constant dense<0.000000e+00> : vector<2x128xf32>
    %9 = tpu.matmul %7, %8, %cst_8 {dimension_numbers = #tpu.dot_dimension_numbers<[1], [0], [0], [1], [0, 0, 1, 1], [], []>} : vector<2x128xf32>, vector<128x128xf32>, vector<2x128xf32> -> vector<2x128xf32>
    %c0_9 = arith.constant 0 : index
    %c0_10 = arith.constant 0 : index
    %10 = vector.load %arg4[%c0_9, %c0_10] : memref<1x128xf32, #tpu.memory_space<vmem>>, vector<1x128xf32>
    %11 = vector.broadcast %10 : vector<1x128xf32> to vector<2x128xf32>
    %12 = arith.addf %9, %11 : vector<2x128xf32>
    %cst_11 = arith.constant 0.000000e+00 : f32
    %13 = vector.broadcast %cst_11 : f32 to vector<2x128xf32>
    %14 = arith.maximumf %12, %13 : vector<2x128xf32>
    %c0_12 = arith.constant 0 : index
    %c0_13 = arith.constant 0 : index
    %15 = vector.load %arg5[%c0_12, %c0_13] : memref<128x10xf32, #tpu.memory_space<vmem>>, vector<128x10xf32>
    %cst_14 = arith.constant dense<0.000000e+00> : vector<2x10xf32>
    %16 = tpu.matmul %14, %15, %cst_14 {dimension_numbers = #tpu.dot_dimension_numbers<[1], [0], [0], [1], [0, 0, 1, 1], [], []>} : vector<2x128xf32>, vector<128x10xf32>, vector<2x10xf32> -> vector<2x10xf32>
    %c0_15 = arith.constant 0 : index
    %c0_16 = arith.constant 0 : index
    %17 = vector.load %arg6[%c0_15, %c0_16] : memref<1x10xf32, #tpu.memory_space<vmem>>, vector<1x10xf32>
    %18 = vector.broadcast %17 : vector<1x10xf32> to vector<2x10xf32>
    %19 = arith.addf %16, %18 : vector<2x10xf32>
    %c0_17 = arith.constant 0 : index
    %c0_18 = arith.constant 0 : index
    %20 = vector.load %arg7[%c0_17, %c0_18] : memref<2x10xf32, #tpu.memory_space<vmem>>, vector<2x10xf32>
    tpu.vector_store %arg7[%c0_17, %c0_18], %19 {strides = array<i32>} : memref<2x10xf32, #tpu.memory_space<vmem>>, vector<2x10xf32>,
    return
  }
}

</mosaic_0001>

<bundles_post_ra>
// kernel: net_forward.5
= control target key start
LH: loop header
LB: loop body
LE: loop exit
PB: predicated region body
PF: predicated region fallthrough
CT: control target
= control target key end

     0   :  { %v733_v4 = vmov 0.0|0.0   ;;  %v734_v26 = vmov 1983009808   ;;  %v90_v28 = vlaneseq  ;;  %vm106_vm0 = vcmask 130048   ;;  %s1073_s0 = inlined_call_operand.vmem [shape: f32[2,400], index: 0, kind: input, shape index: {}]   ;;  %s1074_s1 = inlined_call_operand.vmem [shape: f32[400,128], index: 1, kind: input, shape index: {}]   ;;  %s1075_s2 = inlined_call_operand.vmem [shape: f32[1,128], index: 2, kind: input, shape index: {}]   ;;  %s1076_s3 = inlined_call_operand.vmem [shape: f32[128,128], index: 3, kind: input, shape index: {}]   ;;  %s1077_s4 = inlined_call_operand.vmem [shape: f32[1,128], index: 4, kind: input, shape index: {}]   ;;  %s1078_s5 = inlined_call_operand.vmem [shape: f32[128,10], index: 5, kind: input, shape index: {}]   ;;  %s1079_s6 = inlined_call_operand.vmem [shape: f32[1,10], index: 6, kind: input, shape index: {}]   ;;  %s1080_s7 = inlined_call_operand.hbm [shape: f32[2,10], index: 7, kind: output, shape index: {}]  }
   0x1   :  { %v44_v0 = vld [vmem:[%s1074_s1 + $0x80] sm:$0xff]  ;;  %v45_v1 = vld [vmem:[%s1074_s1 + $0x88] sm:$0xff]  ;;  %628 = vmatprep.subr.bf16.mxu1 %v733_v4  ;;  %v46_v10 = vld [vmem:[%s1074_s1 + $0x90] sm:$0xff]  ;;  %v88_v27 = vunpack.c.l.s4 %v734_v26 }
   0x2   :  { %v28_v2 = vld [vmem:[%s1074_s1] sm:$0xff]  ;;  %v596_v3 = vpack.c.bf16 %v45_v1, %v44_v0  ;;  %v29_v5 = vld [vmem:[%s1074_s1 + $0x8] sm:$0xff]  ;;  %v47_v11 = vld [vmem:[%s1074_s1 + $0x98] sm:$0xff]  ;;  %v91_v39 = vshrl.u32 %v90_v28, 7 }
   0x3   :  { %v60_v6 = vld [vmem:[%s1074_s1 + $0x100] sm:$0xff]  ;;  %v61_v7 = vld [vmem:[%s1074_s1 + $0x108] sm:$0xff]  ;;  %v598_v8 = vpack.c.bf16 %v29_v5, %v28_v2  ;;  %v30_v12 = vld [vmem:[%s1074_s1 + $0x10] sm:$0xff]  ;;  %v600_v13 = vpack.c.bf16 %v47_v11, %v46_v10  ;;  %v89_v38 = vunpack.c.0.s8 %v88_v27 }
   0x4   :  { %v629_v9 = vpack.c.bf16 %v61_v7, %v60_v6  ;;  %597 = vmatprep.subr.bf16.mxu0 %v596_v3  ;;  %v31_v14 = vld [vmem:[%s1074_s1 + $0x18] sm:$0xff]  ;;  %v62_v15 = vld [vmem:[%s1074_s1 + $0x110] sm:$0xff]  ;;  %v48_v19 = vld [vmem:[%s1074_s1 + $0xa0] sm:$0xff] }
   0x5   :  { %v63_v16 = vld [vmem:[%s1074_s1 + $0x118] sm:$0xff]  ;;  %599 = vmatpush3.bf16.msra.mxu0 %v598_v8  ;;  %v602_v17 = vpack.c.bf16 %v31_v14, %v30_v12  ;;  %v49_v20 = vld [vmem:[%s1074_s1 + $0xa8] sm:$0xff]  ;;  %v32_v21 = vld [vmem:[%s1074_s1 + $0x20] sm:$0xff]  ;;  %v92_v49 = vsub.s32 %v89_v38, %v91_v39 }
   0x6   :  { %630 = vmatpush1.bf16.msra.mxu1 %v629_v9  ;;  %v632_v18 = vpack.c.bf16 %v63_v16, %v62_v15  ;;  %601 = vmatprep.subr.bf16.mxu0 %v600_v13  ;;  %v604_v22 = vpack.c.bf16 %v49_v20, %v48_v19  ;;  %v33_v23 = vld [vmem:[%s1074_s1 + $0x28] sm:$0xff]  ;;  %v64_v24 = vld [vmem:[%s1074_s1 + $0x120] sm:$0xff]  ;;  %v50_v29 = vld [vmem:[%s1074_s1 + $0xb0] sm:$0xff] }
   0x7   :  { %631 = vmatprep.subr.bf16.mxu1 %v733_v4  ;;  %v65_v25 = vld [vmem:[%s1074_s1 + $0x128] sm:$0xff]  ;;  %v51_v30 = vld [vmem:[%s1074_s1 + $0xb8] sm:$0xff]  ;;  %v606_v31 = vpack.c.bf16 %v33_v23, %v32_v21  ;;  %v34_v33 = vld [vmem:[%s1074_s1 + $0x30] sm:$0xff] }
   0x8   :  { %v635_v32 = vpack.c.bf16 %v65_v25, %v64_v24  ;;  %v608_v34 = vpack.c.bf16 %v51_v30, %v50_v29  ;;  %v35_v35 = vld [vmem:[%s1074_s1 + $0x38] sm:$0xff]  ;;  %v66_v36 = vld [vmem:[%s1074_s1 + $0x130] sm:$0xff]  ;;  %v52_v40 = vld [vmem:[%s1074_s1 + $0xc0] sm:$0xff] }
   0x9   :  { %603 = vmatpush3.bf16.msra.mxu0 %v602_v17  ;;  %v67_v37 = vld [vmem:[%s1074_s1 + $0x138] sm:$0xff]  ;;  %v53_v41 = vld [vmem:[%s1074_s1 + $0xc8] sm:$0xff]  ;;  %v610_v42 = vpack.c.bf16 %v35_v35, %v34_v33  ;;  %v36_v44 = vld [vmem:[%s1074_s1 + $0x40] sm:$0xff] }
   0xa   :  { %633 = vmatpush1.bf16.msra.mxu1 %v632_v18  ;;  %605 = vmatprep.subr.bf16.mxu0 %v604_v22  ;;  %v638_v43 = vpack.c.bf16 %v67_v37, %v66_v36  ;;  %v612_v45 = vpack.c.bf16 %v53_v41, %v52_v40  ;;  %v37_v46 = vld [vmem:[%s1074_s1 + $0x48] sm:$0xff]  ;;  %v68_v47 = vld [vmem:[%s1074_s1 + $0x140] sm:$0xff]  ;;  %v54_v50 = vld [vmem:[%s1074_s1 + $0xd0] sm:$0xff] }
   0xb   :  { %634 = vmatprep.subr.bf16.mxu1 %v733_v4  ;;  %v69_v48 = vld [vmem:[%s1074_s1 + $0x148] sm:$0xff]  ;;  %v55_v51 = vld [vmem:[%s1074_s1 + $0xd8] sm:$0xff]  ;;  %v614_v52 = vpack.c.bf16 %v37_v46, %v36_v44  ;;  %v38_v54 = vld [vmem:[%s1074_s1 + $0x50] sm:$0xff] }
   0xc   :  { %v641_v53 = vpack.c.bf16 %v69_v48, %v68_v47  ;;  %v27_v55 = vld [vmem:[%s1073_s0] sm:$0xff]  ;;  %v616_v56 = vpack.c.bf16 %v55_v51, %v54_v50  ;;  %v39_v57 = vld [vmem:[%s1074_s1 + $0x58] sm:$0xff]  ;;  %v70_v58 = vld [vmem:[%s1074_s1 + $0x150] sm:$0xff] }
   0xd   :  { %607 = vmatpush3.bf16.msra.mxu0 %v606_v31  ;;  %v71_v59 = vld [vmem:[%s1074_s1 + $0x158] sm:$0xff]  ;;  %v86_v60 = vcombine.high %v27_v55, %v27_v55  ;;  %v93_v61 = vrot.slane %v27_v55, %v92_v49  ;;  %v56_v62 = vld [vmem:[%s1074_s1 + $0xe0] sm:$0xff]  ;;  %v57_v63 = vld [vmem:[%s1074_s1 + $0xe8] sm:$0xff]  ;;  %v618_v2 = vpack.c.bf16 %v39_v57, %v38_v54 }
   0xe   :  { %636 = vmatpush1.bf16.msra.mxu1 %v635_v32  ;;  %609 = vmatprep.subr.bf16.mxu0 %v608_v34  ;;  %v644_v3 = vpack.c.bf16 %v71_v59, %v70_v58  ;;  %v40_v5 = vld [vmem:[%s1074_s1 + $0x60] sm:$0xff]  ;;  %v41_v6 = vld [vmem:[%s1074_s1 + $0x68] sm:$0xff]  ;;  %v620_v7 = vpack.c.bf16 %v57_v63, %v56_v62 }
   0xf   :  { %637 = vmatprep.subr.bf16.mxu1 %v733_v4  ;;  %v101_v0 = vcombine.high %v93_v61, %v93_v61  ;;  %v100_v1 = vrot.slane %v86_v60, %v92_v49  ;;  %v72_v8 = vld [vmem:[%s1074_s1 + $0x160] sm:$0xff]  ;;  %v73_v9 = vld [vmem:[%s1074_s1 + $0x168] sm:$0xff] }
  0x11   :  { %611 = vmatpush3.bf16.msra.mxu0 %v610_v42  ;;  %v102_v10 = vcombine.high %v100_v1, %v100_v1 }
  0x12   :  { %639 = vmatpush1.bf16.msra.mxu1 %v638_v43  ;;  %613 = vmatprep.subr.bf16.mxu0 %v612_v45 }
  0x13   :  { %640 = vmatprep.subr.bf16.mxu1 %v733_v4 }
  0x15   :  { %615 = vmatpush3.bf16.msra.mxu0 %v614_v52 }
  0x16   :  { %642 = vmatpush1.bf16.msra.mxu1 %v641_v53  ;;  %617 = vmatprep.subr.bf16.mxu0 %v616_v56 }
  0x17   :  { %643 = vmatprep.subr.bf16.mxu1 %v733_v4 }
  0x18   :  { %12 = vsyncpa [#allocation3], 0  ;;  %v58_v11 = vld [vmem:[%s1074_s1 + $0xf0] sm:$0xff]  ;;  %v59_v12 = vld [vmem:[%s1074_s1 + $0xf8] sm:$0xff]  ;;  %173 = vmatprep.mubr.f32.mxu0 %v101_v0  ;;  %454 = vmatprep.mubr.msk.f32.mxu1 %vm106_vm0, %v102_v10  ;;  %v622_v13 = vpack.c.bf16 %v41_v6, %v40_v5  ;;  %v647_v14 = vpack.c.bf16 %v73_v9, %v72_v8  ;;  %vm735_vm1 = vmmov 0   ;;  %v736_v49 = vmov 0.0  }
  0x19   :  { %619 = vmatpush3.bf16.msra.mxu0 %v618_v2  ;;  %v42_v15 = vld [vmem:[%s1074_s1 + $0x70] sm:$0xff]  ;;  %v624_v16 = vpack.c.bf16 %v59_v12, %v58_v11  ;;  %v43_v17 = vld [vmem:[%s1074_s1 + $0x78] sm:$0xff]  ;;  %v76_v22 = vld [vmem:[%s1074_s1 + $0x180] sm:$0xff]  ;;  %s737_s25 = smov [#allocation2]   ;;  %vm437_vm2 = vcmask 74752  }
  0x1a   :  { %645 = vmatpush1.bf16.msra.mxu1 %v644_v3  ;;  %621 = vmatprep.subr.bf16.mxu0 %v620_v7  ;;  %v74_v18 = vld [vmem:[%s1074_s1 + $0x170] sm:$0xff]  ;;  %v75_v19 = vld [vmem:[%s1074_s1 + $0x178] sm:$0xff]  ;;  %v626_v20 = vpack.c.bf16 %v43_v17, %v42_v15  ;;  %v77_v23 = vld [vmem:[%s1074_s1 + $0x188] sm:$0xff]  ;;  %s445_s26 = sshll.u32 %s737_s25, 4  ;;  %s446_s26 = int_to_ptr.vmem [resolvable:$true] %s445_s26 }
  0x1b   :  { %646 = vmatprep.subr.bf16.mxu1 %v733_v4  ;;  %v650_v21 = vpack.c.bf16 %v75_v19, %v74_v18  ;;  %v250_v24 = vld [vmem:[%s1076_s3] sm:$0xff]  ;;  %v251_v25 = vld [vmem:[%s1076_s3 + $0x8] sm:$0xff]  ;;  %v653_v26 = vpack.c.bf16 %v77_v23, %v76_v22  ;;  %v252_v28 = vld [vmem:[%s1076_s3 + $0x10] sm:$0xff]  ;;  %p714_p1 = scmp.lt.s32.totalorder %s446_s26, %s446_s26 }
  0x1c   :  { %v656_v27 = vpack.c.bf16 %v251_v25, %v250_v24  ;;  %v253_v29 = vld [vmem:[%s1076_s3 + $0x18] sm:$0xff]  ;;  %v254_v31 = vld [vmem:[%s1076_s3 + $0x20] sm:$0xff]  ;;  %v255_v32 = vld [vmem:[%s1076_s3 + $0x28] sm:$0xff] }
  0x1d   :  { %623 = vmatpush3.bf16.msra.mxu0 %v622_v13  ;;  %v659_v30 = vpack.c.bf16 %v253_v29, %v252_v28  ;;  %v662_v33 = vpack.c.bf16 %v255_v32, %v254_v31  ;;  %v256_v34 = vld [vmem:[%s1076_s3 + $0x30] sm:$0xff]  ;;  %v257_v35 = vld [vmem:[%s1076_s3 + $0x38] sm:$0xff]  ;;  %v258_v37 = vld [vmem:[%s1076_s3 + $0x40] sm:$0xff] }
  0x1e   :  { %648 = vmatpush1.bf16.msra.mxu1 %v647_v14  ;;  %625 = vmatprep.subr.bf16.mxu0 %v624_v16  ;;  %v665_v36 = vpack.c.bf16 %v257_v35, %v256_v34  ;;  %v259_v38 = vld [vmem:[%s1076_s3 + $0x48] sm:$0xff]  ;;  %v260_v40 = vld [vmem:[%s1076_s3 + $0x50] sm:$0xff]  ;;  %v261_v41 = vld [vmem:[%s1076_s3 + $0x58] sm:$0xff] }
  0x1f   :  { %649 = vmatprep.subr.bf16.mxu1 %v733_v4  ;;  %v668_v39 = vpack.c.bf16 %v259_v38, %v258_v37  ;;  %v671_v42 = vpack.c.bf16 %v261_v41, %v260_v40  ;;  %v262_v43 = vld [vmem:[%s1076_s3 + $0x60] sm:$0xff]  ;;  %v263_v44 = vld [vmem:[%s1076_s3 + $0x68] sm:$0xff]  ;;  %v264_v46 = vld [vmem:[%s1076_s3 + $0x70] sm:$0xff] }
  0x20   :  { %v674_v45 = vpack.c.bf16 %v263_v44, %v262_v43  ;;  %v265_v47 = vld [vmem:[%s1076_s3 + $0x78] sm:$0xff]  ;;  %v344_v50 = vld [vmem:[%s1078_s5] sm:$0xff]  ;;  %v345_v51 = vld [vmem:[%s1078_s5 + $0x8] sm:$0xff] }
  0x21   :  { %627 = vmatpush3.bf16.msra.mxu0 %v626_v20  ;;  %v677_v48 = vpack.c.bf16 %v265_v47, %v264_v46  ;;  %v346_v52 = vld [vmem:[%s1078_s5 + $0x10] sm:$0xff]  ;;  %v680_v53 = vpack.c.bf16 %v345_v51, %v344_v50  ;;  %v347_v54 = vld [vmem:[%s1078_s5 + $0x18] sm:$0xff]  ;;  %v348_v56 = vld [vmem:[%s1078_s5 + $0x20] sm:$0xff] }
  0x22   :  { %651 = vmatpush1.bf16.msra.mxu1 %v650_v21  ;;  %655 = vmatprep.subr.bf16.mxu0 %v733_v4  ;;  %v683_v55 = vpack.c.bf16 %v347_v54, %v346_v52  ;;  %v349_v57 = vld [vmem:[%s1078_s5 + $0x28] sm:$0xff]  ;;  %v350_v59 = vld [vmem:[%s1078_s5 + $0x30] sm:$0xff]  ;;  %v351_v60 = vld [vmem:[%s1078_s5 + $0x38] sm:$0xff] }
  0x23   :  { %652 = vmatprep.subr.bf16.mxu1 %v733_v4  ;;  %v686_v58 = vpack.c.bf16 %v349_v57, %v348_v56  ;;  %v352_v62 = vld [vmem:[%s1078_s5 + $0x40] sm:$0xff]  ;;  %v353_v63 = vld [vmem:[%s1078_s5 + $0x48] sm:$0xff]  ;;  %v355_v2 = vld [vmem:[%s1078_s5 + $0x58] sm:$0xff] }
  0x24   :  { %174 = vmatmul.mubr.f32.vlgmr.msra.gmra.mrb[0].mxu0 %v93_v61  ;;  %v689_v61 = vpack.c.bf16 %v351_v60, %v350_v59  ;;  %v692_v0 = vpack.c.bf16 %v353_v63, %v352_v62  ;;  %v356_v5 = vld [vmem:[%s1078_s5 + $0x60] sm:$0xff]  ;;  %v357_v6 = vld [vmem:[%s1078_s5 + $0x68] sm:$0xff]  ;;  %v358_v17 = vld [vmem:[%s1078_s5 + $0x70] sm:$0xff] }
  0x25   :  { %657 = vmatpush3.bf16.msra.mxu0 %v656_v27  ;;  %558 = vmatprep.mubr.msk.f32.mxu0 %vm735_vm1, %v736_v49  ;;  %v698_v7 = vpack.c.bf16 %v357_v6, %v356_v5  ;;  %v453_v10 = vld [vmem:[%s1075_s2] ss:$0 sm:$0xff] }
  0x26   :  { %654 = vmatpush1.bf16.msra.mxu1 %v653_v26  ;;  %658 = vmatprep.subr.bf16.mxu0 %v733_v4  ;;  %v455_v19 = vld [vmem:[%s1077_s4] ss:$0 sm:$0xff] }
  0x27   :  { %679 = vmatprep.subr.bf16.mxu1 %v733_v4  ;;  %v456_v24 = vld [vmem:[%s1079_s6] ss:$0 sm:$0xff] }
  0x29   :  { %244 = vmatmul.mubr.f32.vlgmr.msra.gmra.mrb[0].mxu1 %v100_v1  ;;  %660 = vmatpush3.bf16.msra.mxu0 %v659_v30  ;;  %v354_v1 = vld [vmem:[%s1078_s5 + $0x50] sm:$0xff] }
  0x2a   :  { %661 = vmatprep.subr.bf16.mxu0 %v733_v4  ;;  %593 = vmatprep.mubr.msk.f32.mxu1 %vm735_vm1, %v736_v49  ;;  %v695_v3 = vpack.c.bf16 %v355_v2, %v354_v1 }
  0x2b   :  { %681 = vmatpush3.bf16.msra.mxu1 %v680_v53 }
  0x2c   :  { %682 = vmatprep.subr.bf16.mxu1 %v733_v4 }
  0x2d   :  { %663 = vmatpush3.bf16.msra.mxu0 %v662_v33 }
  0x2e   :  { %664 = vmatprep.subr.bf16.mxu0 %v733_v4 }
  0x2f   :  { %684 = vmatpush3.bf16.msra.mxu1 %v683_v55 }
  0x30   :  { %685 = vmatprep.subr.bf16.mxu1 %v733_v4 }
  0x31   :  { %666 = vmatpush3.bf16.msra.mxu0 %v665_v36 }
  0x32   :  { %667 = vmatprep.subr.bf16.mxu0 %v733_v4 }
  0x33   :  { %687 = vmatpush3.bf16.msra.mxu1 %v686_v58 }
  0x34   :  { %688 = vmatprep.subr.bf16.mxu1 %v733_v4 }
  0x35   :  { %669 = vmatpush3.bf16.msra.mxu0 %v668_v39 }
  0x36   :  { %670 = vmatprep.subr.bf16.mxu0 %v733_v4 }
  0x37   :  { %690 = vmatpush3.bf16.msra.mxu1 %v689_v61 }
  0x38   :  { %691 = vmatprep.subr.bf16.mxu1 %v733_v4 }
  0x39   :  { %672 = vmatpush3.bf16.msra.mxu0 %v671_v42 }
  0x3a   :  { %673 = vmatprep.subr.bf16.mxu0 %v733_v4 }
  0x3b   :  { %693 = vmatpush3.bf16.msra.mxu1 %v692_v0 }
  0x3c   :  { %694 = vmatprep.subr.bf16.mxu1 %v733_v4 }
  0x3d   :  { %675 = vmatpush3.bf16.msra.mxu0 %v674_v45 }
  0x3e   :  { %676 = vmatprep.subr.bf16.mxu0 %v733_v4 }
  0x3f   :  { %696 = vmatpush3.bf16.msra.mxu1 %v695_v3 }
  0x40   :  { %697 = vmatprep.subr.bf16.mxu1 %v733_v4 }
  0x41   :  { %678 = vmatpush3.bf16.msra.mxu0 %v677_v48 }
  0x43   :  { %699 = vmatpush3.bf16.msra.mxu1 %v698_v7 }
  0x44   :  { %700 = vmatprep.subr.bf16.mxu1 %v733_v4  ;;  %v359_v4 = vld [vmem:[%s1078_s5 + $0x78] sm:$0xff]  ;;  %s709_s5 = scalar_lea.vmem %s446_s26, 32 }
  0x45   :  { %v701_v18 = vpack.c.bf16 %v359_v4, %v358_v17  ;;  %p710_p0 = scmp.ne.s32.totalorder %s446_s26, %s709_s5  ;;  %p715_p2 = scmp.lt.s32.totalorder %s709_s5, %s709_s5 }
  0x47   :  { %702 = vmatpush3.bf16.msra.mxu1 %v701_v18  ;;  %p716_p3 = por %p715_p2, %p714_p1 }
  0x49   :  { %p717_p4 = pnand %p716_p3, %p710_p0 }
  0xf7   :  { %v489_v8 = vpop.f32.mrb[0].mxu0 }
  0xf8   :  { %v490_v9 = vpop.f32.mrb[1].mxu0 }
  0xf9   :  { %v491_v11 = vadd.f32 %v490_v9, %v489_v8 }
  0xfb   :  { %v176_v12 = vadd.f32 %v491_v11, %v453_v10 }
  0xfc   :  { %v245_v13 = vpop.f32.mrb[0].mxu1 }
  0xfd   :  { %v247_v14 = vpop.f32.mrb[1].mxu1  ;;  %v246_v15 = vadd.f32 %v245_v13, %v176_v12 }
  0xff   :  { %v249_v16 = vmax.f32 %v246_v15, 0.0 }
 0x101   :  { %559 = vmatmul.mubr.f32.vlgmr.msra.gmra.mrb[2].mxu0 %v249_v16 }
 0x1d4   :  { %v339_v20 = vpop.f32.mrb[2].mxu0 }
 0x1d5   :  { %v340_v21 = vadd.f32 %v455_v19, %v339_v20  ;;  %v560_v22 = vpop.f32.mrb[3].mxu0 }
 0x1d7   :  { %v343_v23 = vmax.f32 %v340_v21, 0.0 }
 0x1d9   :  { %594 = vmatmul.mubr.f32.vlgmr.msra.gmra.mrb[2].mxu1 %v343_v23 }
 0x2ac   :  { %v433_v25 = vpop.f32.mrb[2].mxu1 }
 0x2ad   :  { %v434_v26 = vadd.f32 %v456_v24, %v433_v25  ;;  %v595_v27 = vpop.f32.mrb[3].mxu1 }
 0x2af   :  { %438 = vst.msk [vmem:[#allocation2] sm:$0x3] %vm437_vm2, %v434_v26 }
 0x2b0   :  { %720 = shalt.err (!%p717_p4)
}
 0x2b1   :  { %s721_s28 = scalar_lea.hbm %s1080_s7, 32 }
 0x2b2   :  { %p722_p5 = scmp.ne.s32.totalorder %s1080_s7, %s721_s28  ;;  %p725_p6 = scmp.lt.u32.totalorder %s721_s28, %s1080_s7 }
 0x2b4   :  { %p727_p7 = pnand %p725_p6, %p722_p5 }
 0x2b6   :  { %730 = shalt.err (!%p727_p7)
}
 0x2b7   :  { %448 = dma.vmem_to_hbm [thread:$0]  %s446_s26, 32, %s1080_s7, [#allocation3]  }
 0x2b8   :  { %731 = dma.done.wait [#allocation3], 32  }
 0x2b9   :  { %732 = vsyncadd [#allocation3], 4294967264 }
 0x2ba   :  { %452 = vsyncpa [#allocation3], 1 }

// kernel: net_forward.4
= control target key start
LH: loop header
LB: loop body
LE: loop exit
PB: predicated region body
PF: predicated region fallthrough
CT: control target
= control target key end

     0   :  { %s5437_s18 = smov 0   ;;  %s5741_s0 = inlined_call_operand.vmem [shape: f32[2,14,14,8], index: 0, kind: input, shape index: {}]   ;;  %s5742_s1 = inlined_call_operand.vmem [shape: f32[25,8,16], index: 1, kind: input, shape index: {}]   ;;  %s5743_s2 = inlined_call_operand.vmem [shape: f32[1,16], index: 2, kind: input, shape index: {}]   ;;  %s5744_s3 = inlined_call_operand.vmem [shape: f32[5,10], index: 3, kind: input, shape index: {}]   ;;  %s5745_s4 = inlined_call_operand.vmem [shape: f32[5,10], index: 4, kind: input, shape index: {}]   ;;  %s5746_s5 = inlined_call_operand.vmem [shape: f32[2,5,5,16], index: 5, kind: output, shape index: {}]  }
   0x1 LB: > { %s4634_s19 = sadd.s32 4294967295, %s5397_s18   ;;  %p4638_p0 = scmp.ge.s32.totalorder %s5397_s18, 1  ;;  %s5397_s18 = sphi %s5437_s18, %s15_s18  }
   0x2   : > { %p187_p1 = scmp.lt.s32.totalorder %s5397_s18, 3 }
   0x4   : > { %p188_p2 = pnand %p4638_p0, %p187_p1 }
   0x5   : > { %p215_p3 = scmp.lt.s32.totalorder (!%p188_p2), %s4634_s19, 1  ;;  %v5448_v0 = vld [vmem:[%s5743_s2] ss:$0 sm:$0xff] (!%p188_p2)  ;;  %s5470_s9 = smov (!%p188_p2), 0  }
   0x6   : > { %191 = sbr.rel (%p188_p2) target bundleno = 654 (0x28e), region = 40  ;;  %v5453_v1 = vld [vmem:[%s5744_s3] sm:$0x1f] (!%p188_p2) }
   0x7   : > { %v5458_v2 = vld [vmem:[%s5745_s4] sm:$0x1f] (!%p188_p2) }
   0xd   : > { %s5748_s19 = smov (!%p215_p3, %s4634_s19), 1 }
   0xe   : > { %s5365_s26 = smul.u32 224, %s5748_s19 }
   0xf   : > { %s5366_s27 = smul.u32 40, %s5748_s19 }
  0x10   : > { %s5463_s30 = scalar_lea.vmem %s5741_s0, %s5365_s26 }
  0x11   : > { %s5468_s8 = scalar_lea.vmem %s5746_s5, %s5366_s27 }
  0x12 LB: >> { %v4643_v3 = vld [vmem:[%s5742_s1 + $0x8] sm:$0xff]  ;;  %v239_v4 = vld [vmem:[%s5742_s1] sm:$0xff]  ;;  %s4835_s14 = sshll.u32 %s5401_s9, 5  ;;  %vm244_vm0 = vcmask 64512   ;;  %v4648_v11 = vld [vmem:[%s5742_s1 + $0x10] sm:$0xff]  ;;  %vm5404_vm1 = vmmov 0   ;;  %s5401_s9 = sphi %s5470_s9, %s233_s9  }
  0x13   : >> { %4997 = vmatprep.subr.mxu0 %v4643_v3  ;;  %5032 = vmatprep.subr.mxu1 %v4643_v3  ;;  %s5483_s15 = scalar_lea.vmem %s5463_s30, %s4835_s14  ;;  %v4651_v16 = vld [vmem:[%s5742_s1 + $0x18] sm:$0xff]  ;;  %v4654_v21 = vld [vmem:[%s5742_s1 + $0x20] sm:$0xff]  ;;  %v4661_v26 = vld [vmem:[%s5742_s1 + $0x28] sm:$0xff]  ;;  %vm4390_vm2 = vcmask 1041408   ;;  %vm5406_vm3 = vmmov 1   ;;  %vm4386_vm5 = vcmask 80896  }
  0x14   : >> { %4998 = vmatpush3.msra.mxu0 %v4643_v3  ;;  %5033 = vmatpush3.msra.mxu1 %v4643_v3  ;;  %v240_v5 = vld [vmem:[%s5483_s15 + $0x1] sm:$0xff]  ;;  %v5487_v6 = vld [vmem:[%s5483_s15 + $0x11] sm:$0xff]  ;;  %v241_v7 = vld [vmem:[%s5483_s15 + $0x9] sm:$0x3]  ;;  %vm4548_vm6 = vcmask 126976  }
  0x15   : >> { %5002 = vmatprep.subr.mxu0 %v239_v4  ;;  %5037 = vmatprep.subr.mxu1 %v239_v4  ;;  %v5494_v8 = vld [vmem:[%s5483_s15 + $0x19] sm:$0x3]  ;;  %v237_v9 = vld [vmem:[%s5483_s15] sm:$0xff]  ;;  %v4659_v10 = vld [vmem:[%s5483_s15 + $0x10] sm:$0xff] }
  0x16   : >> { %4999 = vmatprep.mubr.msk.f32.mxu0 %vm244_vm0, %v240_v5  ;;  %5034 = vmatprep.mubr.msk.f32.mxu1 %vm244_vm0, %v5487_v6  ;;  %v238_v12 = vld [vmem:[%s5483_s15 + $0x8] sm:$0x3]  ;;  %v4660_v13 = vld [vmem:[%s5483_s15 + $0x18] sm:$0x3]  ;;  %v408_v17 = vld [vmem:[%s5483_s15 + $0xa] sm:$0x3] }
  0x17   : >> { %5000 = vmatmul.mubr.msk.f32.vlgmr.msra.gmra.mrb[0].mxu0 %vm244_vm0, %v241_v7  ;;  %5035 = vmatmul.mubr.msk.f32.vlgmr.msra.gmra.mrb[0].mxu1 %vm244_vm0, %v5494_v8  ;;  %v407_v14 = vld [vmem:[%s5483_s15 + $0x2] sm:$0xff]  ;;  %v5510_v15 = vld [vmem:[%s5483_s15 + $0x12] sm:$0xff]  ;;  %v4674_v18 = vld [vmem:[%s5483_s15 + $0x1a] sm:$0x3] }
  0x18   : >> { %5003 = vmatpush3.msra.mxu0 %v239_v4  ;;  %5038 = vmatpush3.msra.mxu1 %v239_v4  ;;  %v494_v19 = vld [vmem:[%s5483_s15 + $0x3] sm:$0xff]  ;;  %v5524_v20 = vld [vmem:[%s5483_s15 + $0x13] sm:$0xff]  ;;  %v495_v22 = vld [vmem:[%s5483_s15 + $0xb] sm:$0x3] }
  0x19   : >> { %5004 = vmatprep.mubr.msk.f32.mxu0 %vm244_vm0, %v237_v9  ;;  %5039 = vmatprep.mubr.msk.f32.mxu1 %vm244_vm0, %v4659_v10  ;;  %v4681_v23 = vld [vmem:[%s5483_s15 + $0x1b] sm:$0x3]  ;;  %v581_v24 = vld [vmem:[%s5483_s15 + $0x4] sm:$0xff]  ;;  %v582_v27 = vld [vmem:[%s5483_s15 + $0xc] sm:$0x3] }
  0x1a   : >> { %5007 = vmatprep.subr.mxu0 %v4648_v11  ;;  %5047 = vmatprep.subr.mxu1 %v4648_v11  ;;  %v4687_v25 = vld [vmem:[%s5483_s15 + $0x14] sm:$0xff]  ;;  %v4688_v28 = vld [vmem:[%s5483_s15 + $0x1c] sm:$0x3]  ;;  %v4696_v29 = vld [vmem:[%s5483_s15 + $0x20] sm:$0xff] }
  0x1b   : >> { %v4666_v30 = vld [vmem:[%s5742_s1 + $0x30] sm:$0xff]  ;;  %v4697_v31 = vld [vmem:[%s5483_s15 + $0x28] sm:$0x3]  ;;  %v4675_v33 = vld [vmem:[%s5742_s1 + $0x38] sm:$0xff] }
  0x1c   : >> { %v4703_v32 = vld [vmem:[%s5483_s15 + $0x21] sm:$0xff]  ;;  %v4704_v34 = vld [vmem:[%s5483_s15 + $0x29] sm:$0x3]  ;;  %v4718_v40 = vld [vmem:[%s5483_s15 + $0x2b] sm:$0x3] }
  0x1d   : >> { %v4710_v35 = vld [vmem:[%s5483_s15 + $0x22] sm:$0xff]  ;;  %v4711_v37 = vld [vmem:[%s5483_s15 + $0x2a] sm:$0x3]  ;;  %v4698_v42 = vld [vmem:[%s5742_s1 + $0x50] sm:$0xff] }
  0x1e   : >> { %v4682_v36 = vld [vmem:[%s5742_s1 + $0x40] sm:$0xff]  ;;  %v4689_v39 = vld [vmem:[%s5742_s1 + $0x48] sm:$0xff]  ;;  %v4733_v44 = vld [vmem:[%s5483_s15 + $0x30] sm:$0xff] }
  0x1f   : >> { %5005 = vmatmul.mubr.msk.f32.vlgmr.msra.gmra.mrb[0].mxu0 %vm244_vm0, %v238_v12  ;;  %5040 = vmatmul.mubr.msk.f32.vlgmr.msra.gmra.mrb[0].mxu1 %vm244_vm0, %v4660_v13  ;;  %v4717_v38 = vld [vmem:[%s5483_s15 + $0x23] sm:$0xff]  ;;  %v4725_v43 = vld [vmem:[%s5483_s15 + $0x2c] sm:$0x3]  ;;  %v4705_v45 = vld [vmem:[%s5742_s1 + $0x58] sm:$0xff] }
  0x20   : >> { %5008 = vmatpush3.msra.mxu0 %v4648_v11  ;;  %5048 = vmatpush3.msra.mxu1 %v4648_v11  ;;  %v4724_v41 = vld [vmem:[%s5483_s15 + $0x24] sm:$0xff]  ;;  %v4734_v46 = vld [vmem:[%s5483_s15 + $0x38] sm:$0x3]  ;;  %v4748_v52 = vld [vmem:[%s5483_s15 + $0x3a] sm:$0x3] }
  0x21   : >> { %5009 = vmatprep.mubr.msk.f32.mxu0 %vm244_vm0, %v407_v14  ;;  %5049 = vmatprep.mubr.msk.f32.mxu1 %vm244_vm0, %v5510_v15  ;;  %v4740_v47 = vld [vmem:[%s5483_s15 + $0x31] sm:$0xff]  ;;  %v4712_v48 = vld [vmem:[%s5742_s1 + $0x60] sm:$0xff]  ;;  %v4741_v49 = vld [vmem:[%s5483_s15 + $0x39] sm:$0x3] }
  0x22   : >> { %5012 = vmatprep.subr.mxu0 %v4651_v16  ;;  %5057 = vmatprep.subr.mxu1 %v4651_v16  ;;  %v4747_v50 = vld [vmem:[%s5483_s15 + $0x32] sm:$0xff]  ;;  %v4719_v51 = vld [vmem:[%s5742_s1 + $0x68] sm:$0xff]  ;;  %v4755_v55 = vld [vmem:[%s5483_s15 + $0x3b] sm:$0x3] }
  0x23   : >> { %v4754_v53 = vld [vmem:[%s5483_s15 + $0x33] sm:$0xff]  ;;  %v4762_v58 = vld [vmem:[%s5483_s15 + $0x3c] sm:$0x3]  ;;  %v4770_v59 = vld [vmem:[%s5483_s15 + $0x40] sm:$0xff] }
  0x24   : >> { %v4726_v54 = vld [vmem:[%s5742_s1 + $0x70] sm:$0xff]  ;;  %v4735_v57 = vld [vmem:[%s5742_s1 + $0x78] sm:$0xff]  ;;  %v4742_v60 = vld [vmem:[%s5742_s1 + $0x80] sm:$0xff] }
  0x25   : >> { %v4761_v56 = vld [vmem:[%s5483_s15 + $0x34] sm:$0xff]  ;;  %v4771_v61 = vld [vmem:[%s5483_s15 + $0x48] sm:$0x3]  ;;  %v4792_v9 = vld [vmem:[%s5483_s15 + $0x4b] sm:$0x3] }
  0x26   : >> { %v4777_v62 = vld [vmem:[%s5483_s15 + $0x41] sm:$0xff]  ;;  %v4778_v3 = vld [vmem:[%s5483_s15 + $0x49] sm:$0x3]  ;;  %v4756_v5 = vld [vmem:[%s5742_s1 + $0x90] sm:$0xff] }
  0x27   : >> { %5010 = vmatmul.mubr.msk.f32.vlgmr.msra.gmra.mrb[0].mxu0 %vm244_vm0, %v408_v17  ;;  %5050 = vmatmul.mubr.msk.f32.vlgmr.msra.gmra.mrb[0].mxu1 %vm244_vm0, %v4674_v18  ;;  %v4749_v63 = vld [vmem:[%s5742_s1 + $0x88] sm:$0xff]  ;;  %v4772_v11 = vld [vmem:[%s5742_s1 + $0xa0] sm:$0xff]  ;;  %v4786_v17 = vld [vmem:[%s5742_s1 + $0xb0] sm:$0xff] }
  0x28   : >> { %5013 = vmatpush3.msra.mxu0 %v4651_v16  ;;  %5058 = vmatpush3.msra.mxu1 %v4651_v16  ;;  %v4784_v4 = vld [vmem:[%s5483_s15 + $0x42] sm:$0xff]  ;;  %v4799_v12 = vld [vmem:[%s5483_s15 + $0x4c] sm:$0x3]  ;;  %v4811_v16 = vld [vmem:[%s5483_s15 + $0x51] sm:$0xff] }
  0x29   : >> { %5014 = vmatprep.mubr.msk.f32.mxu0 %vm244_vm0, %v494_v19  ;;  %5059 = vmatprep.mubr.msk.f32.mxu1 %vm244_vm0, %v5524_v20  ;;  %v4791_v7 = vld [vmem:[%s5483_s15 + $0x43] sm:$0xff]  ;;  %v4815_v19 = vld [vmem:[%s5483_s15 + $0x52] sm:$0xff]  ;;  %vm5263_vm4 = vmpackc.low %vm4390_vm2, %vm5406_vm3 }
  0x2a   : >> { %5017 = vmatprep.subr.mxu0 %v4654_v21  ;;  %5067 = vmatprep.subr.mxu1 %v4654_v21  ;;  %v4779_v14 = vld [vmem:[%s5742_s1 + $0xa8] sm:$0xff] }
  0x2f   : >> { %5015 = vmatmul.mubr.msk.f32.vlgmr.msra.gmra.mrb[0].mxu0 %vm244_vm0, %v495_v22  ;;  %5060 = vmatmul.mubr.msk.f32.vlgmr.msra.gmra.mrb[0].mxu1 %vm244_vm0, %v4681_v23  ;;  %v4819_v22 = vld [vmem:[%s5483_s15 + $0x53] sm:$0xff] }
  0x30   : >> { %5018 = vmatpush3.msra.mxu0 %v4654_v21  ;;  %5068 = vmatpush3.msra.mxu1 %v4654_v21  ;;  %v4816_v21 = vld [vmem:[%s5483_s15 + $0x5a] sm:$0x3] }
  0x31   : >> { %5019 = vmatprep.mubr.msk.f32.mxu0 %vm244_vm0, %v581_v24  ;;  %5069 = vmatprep.mubr.msk.f32.mxu1 %vm244_vm0, %v4687_v25  ;;  %v4820_v24 = vld [vmem:[%s5483_s15 + $0x5b] sm:$0x3] }
  0x32   : >> { %5022 = vmatprep.subr.mxu0 %v4661_v26  ;;  %5077 = vmatprep.subr.mxu1 %v4661_v26 }
  0x37   : >> { %5020 = vmatmul.mubr.msk.f32.vlgmr.msra.gmra.mrb[0].mxu0 %vm244_vm0, %v582_v27  ;;  %5070 = vmatmul.mubr.msk.f32.vlgmr.msra.gmra.mrb[0].mxu1 %vm244_vm0, %v4688_v28  ;;  %v5403_v27 = vmov 0.0|0.0  }
  0x38   : >> { %5023 = vmatpush3.msra.mxu0 %v4661_v26  ;;  %5078 = vmatpush3.msra.mxu1 %v4661_v26  ;;  %v4824_v26 = vld [vmem:[%s5483_s15 + $0x5c] sm:$0x3] }
  0x39   : >> { %5024 = vmatprep.mubr.msk.f32.mxu0 %vm244_vm0, %v4659_v10  ;;  %5079 = vmatprep.mubr.msk.f32.mxu1 %vm244_vm0, %v4696_v29  ;;  %v4798_v10 = vld [vmem:[%s5483_s15 + $0x44] sm:$0xff] }
  0x3a   : >> { %5027 = vmatprep.subr.mxu0 %v4666_v30  ;;  %5087 = vmatprep.subr.mxu1 %v4666_v30 }
  0x3f   : >> { %5025 = vmatmul.mubr.msk.f32.vlgmr.msra.gmra.mrb[0].mxu0 %vm244_vm0, %v4660_v13  ;;  %5080 = vmatmul.mubr.msk.f32.vlgmr.msra.gmra.mrb[0].mxu1 %vm244_vm0, %v4697_v31  ;;  %v4807_v13 = vld [vmem:[%s5483_s15 + $0x50] sm:$0xff] }
  0x40   : >> { %5028 = vmatpush3.msra.mxu0 %v4666_v30  ;;  %5088 = vmatpush3.msra.mxu1 %v4666_v30 }
  0x41   : >> { %5029 = vmatprep.mubr.msk.f32.mxu0 %vm244_vm0, %v5487_v6  ;;  %5089 = vmatprep.mubr.msk.f32.mxu1 %vm244_vm0, %v4703_v32  ;;  %v4785_v6 = vld [vmem:[%s5483_s15 + $0x4a] sm:$0x3] }
  0x42   : >> { %5042 = vmatprep.subr.mxu0 %v4675_v33  ;;  %5097 = vmatprep.subr.mxu1 %v4675_v33 }
  0x47   : >> { %5030 = vmatmul.mubr.msk.f32.vlgmr.msra.gmra.mrb[0].mxu0 %vm244_vm0, %v5494_v8  ;;  %5090 = vmatmul.mubr.msk.f32.vlgmr.msra.gmra.mrb[0].mxu1 %vm244_vm0, %v4704_v34  ;;  %v4763_v8 = vld [vmem:[%s5742_s1 + $0x98] sm:$0xff] }
  0x48   : >> { %5043 = vmatpush3.msra.mxu0 %v4675_v33  ;;  %5098 = vmatpush3.msra.mxu1 %v4675_v33 }
  0x49   : >> { %5044 = vmatprep.mubr.msk.f32.mxu0 %vm244_vm0, %v5510_v15  ;;  %5099 = vmatprep.mubr.msk.f32.mxu1 %vm244_vm0, %v4710_v35  ;;  %v4808_v15 = vld [vmem:[%s5483_s15 + $0x58] sm:$0x3] }
  0x4a   : >> { %5052 = vmatprep.subr.mxu0 %v4682_v36  ;;  %5107 = vmatprep.subr.mxu1 %v4682_v36 }
  0x4f   : >> { %5045 = vmatmul.mubr.msk.f32.vlgmr.msra.gmra.mrb[0].mxu0 %vm244_vm0, %v4674_v18  ;;  %5100 = vmatmul.mubr.msk.f32.vlgmr.msra.gmra.mrb[0].mxu1 %vm244_vm0, %v4711_v37  ;;  %v4812_v18 = vld [vmem:[%s5483_s15 + $0x59] sm:$0x3] }
  0x50   : >> { %5053 = vmatpush3.msra.mxu0 %v4682_v36  ;;  %5108 = vmatpush3.msra.mxu1 %v4682_v36 }
  0x51   : >> { %5054 = vmatprep.mubr.msk.f32.mxu0 %vm244_vm0, %v5524_v20  ;;  %5109 = vmatprep.mubr.msk.f32.mxu1 %vm244_vm0, %v4717_v38  ;;  %v4793_v20 = vld [vmem:[%s5742_s1 + $0xb8] sm:$0xff] }
  0x52   : >> { %5062 = vmatprep.subr.mxu0 %v4689_v39  ;;  %5117 = vmatprep.subr.mxu1 %v4689_v39 }
  0x57   : >> { %5055 = vmatmul.mubr.msk.f32.vlgmr.msra.gmra.mrb[0].mxu0 %vm244_vm0, %v4681_v23  ;;  %5110 = vmatmul.mubr.msk.f32.vlgmr.msra.gmra.mrb[0].mxu1 %vm244_vm0, %v4718_v40  ;;  %v4800_v23 = vld [vmem:[%s5742_s1 + $0xc0] sm:$0xff] }
  0x58   : >> { %5063 = vmatpush3.msra.mxu0 %v4689_v39  ;;  %5118 = vmatpush3.msra.mxu1 %v4689_v39 }
  0x59   : >> { %5064 = vmatprep.mubr.msk.f32.mxu0 %vm244_vm0, %v4687_v25  ;;  %5119 = vmatprep.mubr.msk.f32.mxu1 %vm244_vm0, %v4724_v41  ;;  %v4823_v25 = vld [vmem:[%s5483_s15 + $0x54] sm:$0xff]  ;;  %s4832_s15 = sshll.u32 %s5401_s9, 3  ;;  %s233_s9 = sadd.s32 1, %s5401_s9  }
  0x5a   : >> { %5072 = vmatprep.subr.mxu0 %v4698_v42  ;;  %5127 = vmatprep.subr.mxu1 %v4698_v42  ;;  %s4547_s23 = scalar_lea.vmem %s5468_s8, %s4832_s15  ;;  %p230_p4 = scmp.ge.s32.totalorder %s233_s9, 5  }
  0x5f   : >> { %5065 = vmatmul.mubr.msk.f32.vlgmr.msra.gmra.mrb[0].mxu0 %vm244_vm0, %v4688_v28  ;;  %5120 = vmatmul.mubr.msk.f32.vlgmr.msra.gmra.mrb[0].mxu1 %vm244_vm0, %v4725_v43  ;;  %v5405_v28 = vmov 0.0  }
  0x60   : >> { %5073 = vmatpush3.msra.mxu0 %v4698_v42  ;;  %5128 = vmatpush3.msra.mxu1 %v4698_v42 }
  0x61   : >> { %5074 = vmatprep.mubr.msk.f32.mxu0 %vm244_vm0, %v4696_v29  ;;  %5129 = vmatprep.mubr.msk.f32.mxu1 %vm244_vm0, %v4733_v44 }
  0x62   : >> { %5082 = vmatprep.subr.mxu0 %v4705_v45  ;;  %5137 = vmatprep.subr.mxu1 %v4705_v45 }
  0x67   : >> { %5075 = vmatmul.mubr.msk.f32.vlgmr.msra.gmra.mrb[0].mxu0 %vm244_vm0, %v4697_v31  ;;  %5130 = vmatmul.mubr.msk.f32.vlgmr.msra.gmra.mrb[0].mxu1 %vm244_vm0, %v4734_v46 }
  0x68   : >> { %5083 = vmatpush3.msra.mxu0 %v4705_v45  ;;  %5138 = vmatpush3.msra.mxu1 %v4705_v45 }
  0x69   : >> { %5084 = vmatprep.mubr.msk.f32.mxu0 %vm244_vm0, %v4703_v32  ;;  %5139 = vmatprep.mubr.msk.f32.mxu1 %vm244_vm0, %v4740_v47 }
  0x6a   : >> { %5092 = vmatprep.subr.mxu0 %v4712_v48  ;;  %5147 = vmatprep.subr.mxu1 %v4712_v48 }
  0x6f   : >> { %5085 = vmatmul.mubr.msk.f32.vlgmr.msra.gmra.mrb[0].mxu0 %vm244_vm0, %v4704_v34  ;;  %5140 = vmatmul.mubr.msk.f32.vlgmr.msra.gmra.mrb[0].mxu1 %vm244_vm0, %v4741_v49 }
  0x70   : >> { %5093 = vmatpush3.msra.mxu0 %v4712_v48  ;;  %5148 = vmatpush3.msra.mxu1 %v4712_v48 }
  0x71   : >> { %5094 = vmatprep.mubr.msk.f32.mxu0 %vm244_vm0, %v4710_v35  ;;  %5149 = vmatprep.mubr.msk.f32.mxu1 %vm244_vm0, %v4747_v50 }
  0x72   : >> { %5102 = vmatprep.subr.mxu0 %v4719_v51  ;;  %5157 = vmatprep.subr.mxu1 %v4719_v51 }
  0x77   : >> { %5095 = vmatmul.mubr.msk.f32.vlgmr.msra.gmra.mrb[0].mxu0 %vm244_vm0, %v4711_v37  ;;  %5150 = vmatmul.mubr.msk.f32.vlgmr.msra.gmra.mrb[0].mxu1 %vm244_vm0, %v4748_v52 }
  0x78   : >> { %5103 = vmatpush3.msra.mxu0 %v4719_v51  ;;  %5158 = vmatpush3.msra.mxu1 %v4719_v51 }
  0x79   : >> { %5104 = vmatprep.mubr.msk.f32.mxu0 %vm244_vm0, %v4717_v38  ;;  %5159 = vmatprep.mubr.msk.f32.mxu1 %vm244_vm0, %v4754_v53 }
  0x7a   : >> { %5112 = vmatprep.subr.mxu0 %v4726_v54  ;;  %5167 = vmatprep.subr.mxu1 %v4726_v54 }
  0x7f   : >> { %5105 = vmatmul.mubr.msk.f32.vlgmr.msra.gmra.mrb[0].mxu0 %vm244_vm0, %v4718_v40  ;;  %5160 = vmatmul.mubr.msk.f32.vlgmr.msra.gmra.mrb[0].mxu1 %vm244_vm0, %v4755_v55 }
  0x80   : >> { %5113 = vmatpush3.msra.mxu0 %v4726_v54  ;;  %5168 = vmatpush3.msra.mxu1 %v4726_v54 }
  0x81   : >> { %5114 = vmatprep.mubr.msk.f32.mxu0 %vm244_vm0, %v4724_v41  ;;  %5169 = vmatprep.mubr.msk.f32.mxu1 %vm244_vm0, %v4761_v56 }
  0x82   : >> { %5122 = vmatprep.subr.mxu0 %v4735_v57  ;;  %5177 = vmatprep.subr.mxu1 %v4735_v57 }
  0x87   : >> { %5115 = vmatmul.mubr.msk.f32.vlgmr.msra.gmra.mrb[0].mxu0 %vm244_vm0, %v4725_v43  ;;  %5170 = vmatmul.mubr.msk.f32.vlgmr.msra.gmra.mrb[0].mxu1 %vm244_vm0, %v4762_v58 }
  0x88   : >> { %5123 = vmatpush3.msra.mxu0 %v4735_v57  ;;  %5178 = vmatpush3.msra.mxu1 %v4735_v57 }
  0x89   : >> { %5124 = vmatprep.mubr.msk.f32.mxu0 %vm244_vm0, %v4733_v44  ;;  %5179 = vmatprep.mubr.msk.f32.mxu1 %vm244_vm0, %v4770_v59 }
  0x8a   : >> { %5132 = vmatprep.subr.mxu0 %v4742_v60  ;;  %5187 = vmatprep.subr.mxu1 %v4742_v60 }
  0x8f   : >> { %5125 = vmatmul.mubr.msk.f32.vlgmr.msra.gmra.mrb[0].mxu0 %vm244_vm0, %v4734_v46  ;;  %5180 = vmatmul.mubr.msk.f32.vlgmr.msra.gmra.mrb[0].mxu1 %vm244_vm0, %v4771_v61 }
  0x90   : >> { %5133 = vmatpush3.msra.mxu0 %v4742_v60  ;;  %5188 = vmatpush3.msra.mxu1 %v4742_v60 }
  0x91   : >> { %5134 = vmatprep.mubr.msk.f32.mxu0 %vm244_vm0, %v4740_v47  ;;  %5189 = vmatprep.mubr.msk.f32.mxu1 %vm244_vm0, %v4777_v62 }
  0x92   : >> { %5142 = vmatprep.subr.mxu0 %v4749_v63  ;;  %5197 = vmatprep.subr.mxu1 %v4749_v63 }
  0x97   : >> { %5135 = vmatmul.mubr.msk.f32.vlgmr.msra.gmra.mrb[0].mxu0 %vm244_vm0, %v4741_v49  ;;  %5190 = vmatmul.mubr.msk.f32.vlgmr.msra.gmra.mrb[0].mxu1 %vm244_vm0, %v4778_v3 }
  0x98   : >> { %5143 = vmatpush3.msra.mxu0 %v4749_v63  ;;  %5198 = vmatpush3.msra.mxu1 %v4749_v63 }
  0x99   : >> { %5144 = vmatprep.mubr.msk.f32.mxu0 %vm244_vm0, %v4747_v50  ;;  %5199 = vmatprep.mubr.msk.f32.mxu1 %vm244_vm0, %v4784_v4 }
  0x9a   : >> { %5152 = vmatprep.subr.mxu0 %v4756_v5  ;;  %5207 = vmatprep.subr.mxu1 %v4756_v5 }
  0x9f   : >> { %5145 = vmatmul.mubr.msk.f32.vlgmr.msra.gmra.mrb[0].mxu0 %vm244_vm0, %v4748_v52  ;;  %5200 = vmatmul.mubr.msk.f32.vlgmr.msra.gmra.mrb[0].mxu1 %vm244_vm0, %v4785_v6 }
  0xa0   : >> { %5153 = vmatpush3.msra.mxu0 %v4756_v5  ;;  %5208 = vmatpush3.msra.mxu1 %v4756_v5 }
  0xa1   : >> { %5154 = vmatprep.mubr.msk.f32.mxu0 %vm244_vm0, %v4754_v53  ;;  %5209 = vmatprep.mubr.msk.f32.mxu1 %vm244_vm0, %v4791_v7 }
  0xa2   : >> { %5162 = vmatprep.subr.mxu0 %v4763_v8  ;;  %5217 = vmatprep.subr.mxu1 %v4763_v8 }
  0xa7   : >> { %5155 = vmatmul.mubr.msk.f32.vlgmr.msra.gmra.mrb[0].mxu0 %vm244_vm0, %v4755_v55  ;;  %5210 = vmatmul.mubr.msk.f32.vlgmr.msra.gmra.mrb[0].mxu1 %vm244_vm0, %v4792_v9 }
  0xa8   : >> { %5163 = vmatpush3.msra.mxu0 %v4763_v8  ;;  %5218 = vmatpush3.msra.mxu1 %v4763_v8 }
  0xa9   : >> { %5164 = vmatprep.mubr.msk.f32.mxu0 %vm244_vm0, %v4761_v56  ;;  %5219 = vmatprep.mubr.msk.f32.mxu1 %vm244_vm0, %v4798_v10 }
  0xaa   : >> { %5172 = vmatprep.subr.mxu0 %v4772_v11  ;;  %5222 = vmatprep.subr.mxu1 %v4772_v11 }
  0xaf   : >> { %5165 = vmatmul.mubr.msk.f32.vlgmr.msra.gmra.mrb[0].mxu0 %vm244_vm0, %v4762_v58  ;;  %5220 = vmatmul.mubr.msk.f32.vlgmr.msra.gmra.mrb[0].mxu1 %vm244_vm0, %v4799_v12 }
  0xb0   : >> { %5173 = vmatpush3.msra.mxu0 %v4772_v11  ;;  %5223 = vmatpush3.msra.mxu1 %v4772_v11 }
  0xb1   : >> { %5174 = vmatprep.mubr.msk.f32.mxu0 %vm244_vm0, %v4770_v59  ;;  %5224 = vmatprep.mubr.msk.f32.mxu1 %vm244_vm0, %v4807_v13 }
  0xb2   : >> { %5182 = vmatprep.subr.mxu0 %v4779_v14  ;;  %5227 = vmatprep.subr.mxu1 %v4779_v14 }
  0xb7   : >> { %5175 = vmatmul.mubr.msk.f32.vlgmr.msra.gmra.mrb[0].mxu0 %vm244_vm0, %v4771_v61  ;;  %5225 = vmatmul.mubr.msk.f32.vlgmr.msra.gmra.mrb[0].mxu1 %vm244_vm0, %v4808_v15 }
  0xb8   : >> { %5183 = vmatpush3.msra.mxu0 %v4779_v14  ;;  %5228 = vmatpush3.msra.mxu1 %v4779_v14 }
  0xb9   : >> { %5184 = vmatprep.mubr.msk.f32.mxu0 %vm244_vm0, %v4777_v62  ;;  %5229 = vmatprep.mubr.msk.f32.mxu1 %vm244_vm0, %v4811_v16 }
  0xba   : >> { %5192 = vmatprep.subr.mxu0 %v4786_v17  ;;  %5232 = vmatprep.subr.mxu1 %v4786_v17 }
  0xbf   : >> { %5185 = vmatmul.mubr.msk.f32.vlgmr.msra.gmra.mrb[0].mxu0 %vm244_vm0, %v4778_v3  ;;  %5230 = vmatmul.mubr.msk.f32.vlgmr.msra.gmra.mrb[0].mxu1 %vm244_vm0, %v4812_v18 }
  0xc0   : >> { %5193 = vmatpush3.msra.mxu0 %v4786_v17  ;;  %5233 = vmatpush3.msra.mxu1 %v4786_v17 }
  0xc1   : >> { %5194 = vmatprep.mubr.msk.f32.mxu0 %vm244_vm0, %v4784_v4  ;;  %5234 = vmatprep.mubr.msk.f32.mxu1 %vm244_vm0, %v4815_v19 }
  0xc2   : >> { %5202 = vmatprep.subr.mxu0 %v4793_v20  ;;  %5237 = vmatprep.subr.mxu1 %v4793_v20 }
  0xc7   : >> { %5195 = vmatmul.mubr.msk.f32.vlgmr.msra.gmra.mrb[0].mxu0 %vm244_vm0, %v4785_v6  ;;  %5235 = vmatmul.mubr.msk.f32.vlgmr.msra.gmra.mrb[0].mxu1 %vm244_vm0, %v4816_v21 }
  0xc8   : >> { %5203 = vmatpush3.msra.mxu0 %v4793_v20  ;;  %5238 = vmatpush3.msra.mxu1 %v4793_v20 }
  0xc9   : >> { %5204 = vmatprep.mubr.msk.f32.mxu0 %vm244_vm0, %v4791_v7  ;;  %5239 = vmatprep.mubr.msk.f32.mxu1 %vm244_vm0, %v4819_v22 }
  0xca   : >> { %5212 = vmatprep.subr.mxu0 %v4800_v23  ;;  %5242 = vmatprep.subr.mxu1 %v4800_v23 }
  0xcf   : >> { %5205 = vmatmul.mubr.msk.f32.vlgmr.msra.gmra.mrb[0].mxu0 %vm244_vm0, %v4792_v9  ;;  %5240 = vmatmul.mubr.msk.f32.vlgmr.msra.gmra.mrb[0].mxu1 %vm244_vm0, %v4820_v24 }
  0xd0   : >> { %5213 = vmatpush3.msra.mxu0 %v4800_v23  ;;  %5243 = vmatpush3.msra.mxu1 %v4800_v23 }
  0xd1   : >> { %5214 = vmatprep.mubr.msk.f32.mxu0 %vm244_vm0, %v4798_v10  ;;  %5244 = vmatprep.mubr.msk.f32.mxu1 %vm244_vm0, %v4823_v25 }
  0xd2   : >> { %5261 = vmatprep.subr.bf16.mxu0 %v5403_v27  ;;  %5265 = vmatprep.subr.bf16.mxu1 %v5403_v27 }
  0xd7   : >> { %5215 = vmatmul.mubr.msk.f32.vlgmr.msra.gmra.mrb[0].mxu0 %vm244_vm0, %v4799_v12  ;;  %5245 = vmatmul.mubr.msk.f32.vlgmr.msra.gmra.mrb[0].mxu1 %vm244_vm0, %v4824_v26 }
  0xd8   : >> { %5251 = vmatprep.mubr.msk.f32.mxu0 %vm5404_vm1, %v5405_v28  ;;  %5258 = vmatprep.mubr.msk.f32.mxu1 %vm5404_vm1, %v5405_v28 }
 0x1aa   : >> { %v5216_v29 = vpop.f32.mrb[0].mxu0  ;;  %v5246_v30 = vpop.f32.mrb[0].mxu1 }
 0x1ab   : >> { %v4385_v31 = vmax.f32 %v5216_v29, %v5246_v30  ;;  %v3868_v32 = vpop.f32.mrb[1].mxu0  ;;  %v4373_v33 = vpop.f32.mrb[1].mxu1 }
 0x1ac   : >> { %v4384_v34 = vmax.f32 %v3868_v32, %v4373_v33 }
 0x1ae   : >> { %v5262_v35 = vpack.c.bf16 %v4385_v31, %v4384_v34 }
 0x1b0   : >> { %5264 = vmatpush3.bf16.msk.msra.mxu0 %vm5263_vm4, %v5262_v35  ;;  %5268 = vmatpush3.bf16.msk.msra.mxu1 %vm5263_vm4, %v5262_v35 }
 0x1b3   : >> { %5252 = vmatmul.mubr.msk.f32.vlgmr.msra.gmra.mrb[2].mxu0 %vm4386_vm5, %v5453_v1  ;;  %5259 = vmatmul.mubr.msk.f32.vlgmr.msra.gmra.mrb[2].mxu1 %vm4386_vm5, %v5458_v2 }
 0x286   : >> { %v4460_v36 = vpop.f32.mrb[2].mxu0  ;;  %v4533_v37 = vpop.f32.mrb[2].mxu1 }
 0x287   : >> { %v4537_v38 = vmax.f32 %v4460_v36, %v4533_v37  ;;  %v5253_v39 = vpop.f32.mrb[3].mxu0  ;;  %v5260_v40 = vpop.f32.mrb[3].mxu1  ;;  %232 = sbr.rel (!%p230_p4) target bundleno = 18 (0x12), region = 108 }
 0x289   : >> { %v4544_v41 = vadd.f32 %v5448_v0, %v4537_v38 }
 0x28b   : >> { %v4545_v42 = vmax.f32 %v4544_v41, 0.0 }
 0x28d   : >> { %4549 = vst.msk [vmem:[%s4547_s23] sm:$0x1f] %vm4548_vm6, %v4545_v42 }
 0x28e PF: > { %s15_s18 = sadd.s32 1, %s5397_s18  }
 0x28f   : > { %p12_p5 = scmp.ge.s32.totalorder %s15_s18, 4  }
 0x291   :  { %14 = sbr.rel (!%p12_p5) target bundleno = 1 (0x1), region = 119 }

// kernel: net_forward.3
= control target key start
LH: loop header
LB: loop body
LE: loop exit
PB: predicated region body
PF: predicated region fallthrough
CT: control target
= control target key end

     0   :  { %s6939_s18 = smov 0   ;;  %s7824_s0 = inlined_call_operand.vmem [shape: f32[2,32,32,3], index: 0, kind: input, shape index: {}]   ;;  %s7825_s1 = inlined_call_operand.vmem [shape: f32[25,3,8], index: 1, kind: input, shape index: {}]   ;;  %s7826_s2 = inlined_call_operand.vmem [shape: f32[1,8], index: 2, kind: input, shape index: {}]   ;;  %s7827_s3 = inlined_call_operand.vmem [shape: f32[14,28], index: 3, kind: input, shape index: {}]   ;;  %s7828_s4 = inlined_call_operand.vmem [shape: f32[14,28], index: 4, kind: input, shape index: {}]   ;;  %s7829_s5 = inlined_call_operand.vmem [shape: f32[2,14,14,8], index: 5, kind: output, shape index: {}]  }
   0x1 LB: > { %s5567_s19 = sadd.s32 4294967295, %s6902_s18   ;;  %p5571_p0 = scmp.ge.s32.totalorder %s6902_s18, 1  ;;  %s6902_s18 = sphi %s6939_s18, %s15_s18  }
   0x2   : > { %p187_p1 = scmp.lt.s32.totalorder %s6902_s18, 3 }
   0x4   : > { %p188_p2 = pnand %p5571_p0, %p187_p1 }
   0x5   : > { %p215_p3 = scmp.lt.s32.totalorder (!%p188_p2), %s5567_s19, 1  ;;  %v6950_v0 = vld [vmem:[%s7826_s2] ss:$0 sm:$0xff] (!%p188_p2)  ;;  %v6960_v2 = vld [vmem:[%s7827_s3 + $0x8] sm:$0x3f] (!%p188_p2)  ;;  %s6982_s13 = smov (!%p188_p2), 0  }
   0x6   : > { %191 = sbr.rel (%p188_p2) target bundleno = 659 (0x293), region = 40  ;;  %v6955_v1 = vld [vmem:[%s7827_s3] sm:$0xff] (!%p188_p2)  ;;  %v6970_v4 = vld [vmem:[%s7828_s4 + $0x8] sm:$0x3f] (!%p188_p2) }
   0x7   : > { %v6965_v3 = vld [vmem:[%s7828_s4] sm:$0xff] (!%p188_p2) }
   0xd   : > { %s7831_s19 = smov (!%p215_p3, %s5567_s19), 1 }
   0xe   : > { %s5971_s30 = sshll.u32 %s7831_s19, 10  ;;  %s6874_s6 = smul.u32 224, %s7831_s19 }
   0xf   : > { %s6975_s9 = scalar_lea.vmem %s7824_s0, %s5971_s30 }
  0x10   : > { %s6980_s12 = scalar_lea.vmem %s7829_s5, %s6874_s6 }
  0x11 LB: >> { %v5577_v5 = vld [vmem:[%s7825_s1 + $0x4] sm:$0x7]  ;;  %vm263_vm0 = vcmask 1042432   ;;  %v243_v6 = vld [vmem:[%s7825_s1] sm:$0x7]  ;;  %s5972_s19 = sshll.u32 %s6906_s13, 6  ;;  %s6906_s13 = sphi %s6982_s13, %s235_s13  }
  0x12   : >> { %6240 = vmatprep.subr.msk.mxu0 %vm263_vm0, %v5577_v5  ;;  %6296 = vmatprep.subr.msk.mxu1 %vm263_vm0, %v5577_v5  ;;  %vm250_vm1 = vcmask 23552   ;;  %s6999_s20 = scalar_lea.vmem %s6975_s9, %s5972_s19  ;;  %v5588_v13 = vld [vmem:[%s7825_s1 + $0x8] sm:$0x7]  ;;  %v5594_v22 = vld [vmem:[%s7825_s1 + $0xc] sm:$0x7]  ;;  %vm5298_vm2 = vcmask 228352  }
  0x13   : >> { %6241 = vmatpush3.msk.msra.mxu0 %vm263_vm0, %v5577_v5  ;;  %6297 = vmatpush3.msk.msra.mxu1 %vm263_vm0, %v5577_v5  ;;  %v244_v7 = vld [vmem:[%s6999_s20 + $0x1] sm:$0xff]  ;;  %v245_v9 = vld [vmem:[%s6999_s20 + $0x9] sm:$0xff]  ;;  %v246_v11 = vld [vmem:[%s6999_s20 + $0x11] sm:$0xff]  ;;  %vm5305_vm3 = vcmask 1043456   ;;  %vm6908_vm4 = vmmov 1   ;;  %vm5481_vm6 = vcmask 62464  }
  0x14   : >> { %6248 = vmatprep.subr.msk.mxu0 %vm263_vm0, %v243_v6  ;;  %6304 = vmatprep.subr.msk.mxu1 %vm263_vm0, %v243_v6  ;;  %v7005_v8 = vld [vmem:[%s6999_s20 + $0x21] sm:$0xff]  ;;  %v7012_v10 = vld [vmem:[%s6999_s20 + $0x29] sm:$0xff]  ;;  %v7016_v12 = vld [vmem:[%s6999_s20 + $0x31] sm:$0xff]  ;;  %vm5479_vm7 = vcmask 64512  }
  0x15   : >> { %6242 = vmatprep.mubr.msk.f32.mxu0 %vm250_vm1, %v244_v7  ;;  %6298 = vmatprep.mubr.msk.f32.mxu1 %vm250_vm1, %v7005_v8  ;;  %v247_v14 = vld [vmem:[%s6999_s20 + $0x19] sm:$0xf]  ;;  %v239_v16 = vld [vmem:[%s6999_s20] sm:$0xff]  ;;  %v240_v18 = vld [vmem:[%s6999_s20 + $0x8] sm:$0xff] }
  0x16   : >> { %6243 = vmatmul.mubr.msk.f32.vlgmr.msra.gmra.mrb[0].mxu0 %vm250_vm1, %v245_v9  ;;  %6299 = vmatmul.mubr.msk.f32.vlgmr.msra.gmra.mrb[0].mxu1 %vm250_vm1, %v7012_v10  ;;  %v7028_v15 = vld [vmem:[%s6999_s20 + $0x39] sm:$0xf]  ;;  %v7035_v17 = vld [vmem:[%s6999_s20 + $0x20] sm:$0xff]  ;;  %v7047_v19 = vld [vmem:[%s6999_s20 + $0x28] sm:$0xff] }
  0x17   : >> { %6249 = vmatpush3.msk.msra.mxu0 %vm263_vm0, %v243_v6  ;;  %6305 = vmatpush3.msk.msra.mxu1 %vm263_vm0, %v243_v6  ;;  %v241_v20 = vld [vmem:[%s6999_s20 + $0x10] sm:$0xff]  ;;  %v242_v23 = vld [vmem:[%s6999_s20 + $0x18] sm:$0xf]  ;;  %v452_v25 = vld [vmem:[%s6999_s20 + $0x2] sm:$0xff] }
  0x18   : >> { %6245 = vmatprep.mubr.msk.f32.mxu0 %vm250_vm1, %v246_v11  ;;  %6301 = vmatprep.mubr.msk.f32.mxu1 %vm250_vm1, %v7016_v12  ;;  %v7051_v21 = vld [vmem:[%s6999_s20 + $0x30] sm:$0xff]  ;;  %v7063_v24 = vld [vmem:[%s6999_s20 + $0x38] sm:$0xf]  ;;  %v7070_v26 = vld [vmem:[%s6999_s20 + $0x22] sm:$0xff] }
  0x19   : >> { %6256 = vmatprep.subr.msk.mxu0 %vm263_vm0, %v5588_v13  ;;  %6320 = vmatprep.subr.msk.mxu1 %vm263_vm0, %v5588_v13  ;;  %v453_v27 = vld [vmem:[%s6999_s20 + $0xa] sm:$0xff]  ;;  %v454_v29 = vld [vmem:[%s6999_s20 + $0x12] sm:$0xff]  ;;  %v455_v32 = vld [vmem:[%s6999_s20 + $0x1a] sm:$0xf] }
  0x1a   : >> { %6246 = vmatmul.mubr.msk.f32.gmra.mrb[2].mxu0 %vm250_vm1, %v247_v14  ;;  %6302 = vmatmul.mubr.msk.f32.gmra.mrb[2].mxu1 %vm250_vm1, %v7028_v15  ;;  %v7082_v28 = vld [vmem:[%s6999_s20 + $0x2a] sm:$0xff]  ;;  %v7086_v30 = vld [vmem:[%s6999_s20 + $0x32] sm:$0xff]  ;;  %v7098_v33 = vld [vmem:[%s6999_s20 + $0x3a] sm:$0xf] }
  0x1b   : >> { %6250 = vmatprep.mubr.msk.f32.mxu0 %vm250_vm1, %v239_v16  ;;  %6306 = vmatprep.mubr.msk.f32.mxu1 %vm250_vm1, %v7035_v17  ;;  %v5600_v31 = vld [vmem:[%s7825_s1 + $0x10] sm:$0x7]  ;;  %v562_v34 = vld [vmem:[%s6999_s20 + $0x3] sm:$0xff]  ;;  %v564_v38 = vld [vmem:[%s6999_s20 + $0x13] sm:$0xff] }
  0x1c   : >> { %v7105_v35 = vld [vmem:[%s6999_s20 + $0x23] sm:$0xff]  ;;  %v563_v36 = vld [vmem:[%s6999_s20 + $0xb] sm:$0xff]  ;;  %v7121_v39 = vld [vmem:[%s6999_s20 + $0x33] sm:$0xff] }
  0x1d   : >> { %v7117_v37 = vld [vmem:[%s6999_s20 + $0x2b] sm:$0xff]  ;;  %v5612_v40 = vld [vmem:[%s7825_s1 + $0x14] sm:$0x7]  ;;  %v565_v41 = vld [vmem:[%s6999_s20 + $0x1b] sm:$0xf] }
  0x1e   : >> { %6251 = vmatmul.mubr.msk.f32.vlgmr.msra.gmra.mrb[0].mxu0 %vm250_vm1, %v240_v18  ;;  %6307 = vmatmul.mubr.msk.f32.vlgmr.msra.gmra.mrb[0].mxu1 %vm250_vm1, %v7047_v19  ;;  %v7133_v42 = vld [vmem:[%s6999_s20 + $0x3b] sm:$0xf]  ;;  %v672_v43 = vld [vmem:[%s6999_s20 + $0x4] sm:$0xff]  ;;  %v673_v45 = vld [vmem:[%s6999_s20 + $0xc] sm:$0xff] }
  0x1f   : >> { %6257 = vmatpush3.msk.msra.mxu0 %vm263_vm0, %v5588_v13  ;;  %6321 = vmatpush3.msk.msra.mxu1 %vm263_vm0, %v5588_v13  ;;  %v7140_v44 = vld [vmem:[%s6999_s20 + $0x24] sm:$0xff]  ;;  %v7152_v46 = vld [vmem:[%s6999_s20 + $0x2c] sm:$0xff]  ;;  %v674_v47 = vld [vmem:[%s6999_s20 + $0x14] sm:$0xff] }
  0x20   : >> { %6253 = vmatprep.mubr.msk.f32.mxu0 %vm250_vm1, %v241_v20  ;;  %6309 = vmatprep.mubr.msk.f32.mxu1 %vm250_vm1, %v7051_v21  ;;  %v7156_v48 = vld [vmem:[%s6999_s20 + $0x34] sm:$0xff]  ;;  %v675_v50 = vld [vmem:[%s6999_s20 + $0x1c] sm:$0xf]  ;;  %v7174_v52 = vld [vmem:[%s6999_s20 + $0x40] sm:$0xff] }
  0x21   : >> { %6264 = vmatprep.subr.msk.mxu0 %vm263_vm0, %v5594_v22  ;;  %6336 = vmatprep.subr.msk.mxu1 %vm263_vm0, %v5594_v22  ;;  %v5622_v49 = vld [vmem:[%s7825_s1 + $0x18] sm:$0x7]  ;;  %v7168_v51 = vld [vmem:[%s6999_s20 + $0x3c] sm:$0xf]  ;;  %v7186_v53 = vld [vmem:[%s6999_s20 + $0x48] sm:$0xff] }
  0x22   : >> { %6254 = vmatmul.mubr.msk.f32.gmra.mrb[2].mxu0 %vm250_vm1, %v242_v23  ;;  %6310 = vmatmul.mubr.msk.f32.gmra.mrb[2].mxu1 %vm250_vm1, %v7063_v24  ;;  %v7189_v54 = vld [vmem:[%s6999_s20 + $0x50] sm:$0xff]  ;;  %v5642_v55 = vld [vmem:[%s7825_s1 + $0x1c] sm:$0x7]  ;;  %v7201_v56 = vld [vmem:[%s6999_s20 + $0x58] sm:$0xf] }
  0x23   : >> { %6258 = vmatprep.mubr.msk.f32.mxu0 %vm250_vm1, %v452_v25  ;;  %6322 = vmatprep.mubr.msk.f32.mxu1 %vm250_vm1, %v7070_v26  ;;  %v7208_v57 = vld [vmem:[%s6999_s20 + $0x41] sm:$0xff]  ;;  %v7221_v58 = vld [vmem:[%s6999_s20 + $0x49] sm:$0xff]  ;;  %v7224_v59 = vld [vmem:[%s6999_s20 + $0x51] sm:$0xff] }
  0x24   : >> { %v5657_v60 = vld [vmem:[%s7825_s1 + $0x20] sm:$0x7]  ;;  %v7236_v61 = vld [vmem:[%s6999_s20 + $0x59] sm:$0xf]  ;;  %v7256_v63 = vld [vmem:[%s6999_s20 + $0x4a] sm:$0xff] }
  0x25   : >> { %v7243_v62 = vld [vmem:[%s6999_s20 + $0x42] sm:$0xff]  ;;  %v7259_v5 = vld [vmem:[%s6999_s20 + $0x52] sm:$0xff]  ;;  %v7271_v7 = vld [vmem:[%s6999_s20 + $0x5a] sm:$0xf] }
  0x26   : >> { %6259 = vmatmul.mubr.msk.f32.vlgmr.msra.gmra.mrb[0].mxu0 %vm250_vm1, %v453_v27  ;;  %6323 = vmatmul.mubr.msk.f32.vlgmr.msra.gmra.mrb[0].mxu1 %vm250_vm1, %v7082_v28  ;;  %v5672_v6 = vld [vmem:[%s7825_s1 + $0x24] sm:$0x7]  ;;  %v7291_v9 = vld [vmem:[%s6999_s20 + $0x4b] sm:$0xff]  ;;  %v5689_v11 = vld [vmem:[%s7825_s1 + $0x28] sm:$0x7] }
  0x27   : >> { %6265 = vmatpush3.msk.msra.mxu0 %vm263_vm0, %v5594_v22  ;;  %6337 = vmatpush3.msk.msra.mxu1 %vm263_vm0, %v5594_v22  ;;  %v7313_v13 = vld [vmem:[%s6999_s20 + $0x44] sm:$0xff]  ;;  %v7326_v14 = vld [vmem:[%s6999_s20 + $0x4c] sm:$0xff]  ;;  %v7376_v22 = vld [vmem:[%s6999_s20 + $0x78] sm:$0xf] }
  0x28   : >> { %6261 = vmatprep.mubr.msk.f32.mxu0 %vm250_vm1, %v454_v29  ;;  %6325 = vmatprep.mubr.msk.f32.mxu1 %vm250_vm1, %v7086_v30  ;;  %v5704_v16 = vld [vmem:[%s7825_s1 + $0x2c] sm:$0x7]  ;;  %v7348_v18 = vld [vmem:[%s6999_s20 + $0x60] sm:$0xff]  ;;  %v7364_v20 = vld [vmem:[%s6999_s20 + $0x70] sm:$0xff] }
  0x29   : >> { %6272 = vmatprep.subr.msk.mxu0 %vm263_vm0, %v5600_v31  ;;  %6352 = vmatprep.subr.msk.mxu1 %vm263_vm0, %v5600_v31  ;;  %v7383_v23 = vld [vmem:[%s6999_s20 + $0x61] sm:$0xff]  ;;  %v7399_v25 = vld [vmem:[%s6999_s20 + $0x71] sm:$0xff]  ;;  %v7411_v27 = vld [vmem:[%s6999_s20 + $0x79] sm:$0xf] }
  0x2a   : >> { %6262 = vmatmul.mubr.msk.f32.gmra.mrb[2].mxu0 %vm250_vm1, %v455_v32  ;;  %6326 = vmatmul.mubr.msk.f32.gmra.mrb[2].mxu1 %vm250_vm1, %v7098_v33  ;;  %v7431_v29 = vld [vmem:[%s6999_s20 + $0x6a] sm:$0xff]  ;;  %v7446_v32 = vld [vmem:[%s6999_s20 + $0x7a] sm:$0xf]  ;;  %vm6667_vm5 = vmpackc.low %vm5305_vm3, %vm6908_vm4 }
  0x2b   : >> { %6266 = vmatprep.mubr.msk.f32.mxu0 %vm250_vm1, %v562_v34  ;;  %6338 = vmatprep.mubr.msk.f32.mxu1 %vm250_vm1, %v7105_v35  ;;  %v7466_v34 = vld [vmem:[%s6999_s20 + $0x6b] sm:$0xff] }
  0x2e   : >> { %6267 = vmatmul.mubr.msk.f32.vlgmr.msra.gmra.mrb[0].mxu0 %vm250_vm1, %v563_v36  ;;  %6339 = vmatmul.mubr.msk.f32.vlgmr.msra.gmra.mrb[0].mxu1 %vm250_vm1, %v7117_v37  ;;  %v5766_v36 = vld [vmem:[%s7825_s1 + $0x3c] sm:$0x7] }
  0x2f   : >> { %6273 = vmatpush3.msk.msra.mxu0 %vm263_vm0, %v5600_v31  ;;  %6353 = vmatpush3.msk.msra.mxu1 %vm263_vm0, %v5600_v31  ;;  %v5749_v31 = vld [vmem:[%s7825_s1 + $0x38] sm:$0x7] }
  0x30   : >> { %6269 = vmatprep.mubr.msk.f32.mxu0 %vm250_vm1, %v564_v38  ;;  %6341 = vmatprep.mubr.msk.f32.mxu1 %vm250_vm1, %v7121_v39  ;;  %v7488_v38 = vld [vmem:[%s6999_s20 + $0x64] sm:$0xff] }
  0x31   : >> { %6280 = vmatprep.subr.msk.mxu0 %vm263_vm0, %v5612_v40  ;;  %6368 = vmatprep.subr.msk.mxu1 %vm263_vm0, %v5612_v40 }
  0x32   : >> { %6270 = vmatmul.mubr.msk.f32.gmra.mrb[2].mxu0 %vm250_vm1, %v565_v41  ;;  %6342 = vmatmul.mubr.msk.f32.gmra.mrb[2].mxu1 %vm250_vm1, %v7133_v42  ;;  %v5781_v41 = vld [vmem:[%s7825_s1 + $0x40] sm:$0x7] }
  0x33   : >> { %6274 = vmatprep.mubr.msk.f32.mxu0 %vm250_vm1, %v672_v43  ;;  %6354 = vmatprep.mubr.msk.f32.mxu1 %vm250_vm1, %v7140_v44  ;;  %v7523_v43 = vld [vmem:[%s6999_s20 + $0x80] sm:$0xff] }
  0x36   : >> { %6275 = vmatmul.mubr.msk.f32.vlgmr.msra.gmra.mrb[0].mxu0 %vm250_vm1, %v673_v45  ;;  %6355 = vmatmul.mubr.msk.f32.vlgmr.msra.gmra.mrb[0].mxu1 %vm250_vm1, %v7152_v46  ;;  %v7539_v45 = vld [vmem:[%s6999_s20 + $0x90] sm:$0xff] }
  0x37   : >> { %6281 = vmatpush3.msk.msra.mxu0 %vm263_vm0, %v5612_v40  ;;  %6369 = vmatpush3.msk.msra.mxu1 %vm263_vm0, %v5612_v40  ;;  %v7504_v40 = vld [vmem:[%s6999_s20 + $0x74] sm:$0xff] }
  0x38   : >> { %6277 = vmatprep.mubr.msk.f32.mxu0 %vm250_vm1, %v674_v47  ;;  %6357 = vmatprep.mubr.msk.f32.mxu1 %vm250_vm1, %v7156_v48  ;;  %v7551_v47 = vld [vmem:[%s6999_s20 + $0x98] sm:$0xf] }
  0x39   : >> { %6288 = vmatprep.subr.msk.mxu0 %vm263_vm0, %v5622_v49  ;;  %6384 = vmatprep.subr.msk.mxu1 %vm263_vm0, %v5622_v49 }
  0x3a   : >> { %6278 = vmatmul.mubr.msk.f32.gmra.mrb[2].mxu0 %vm250_vm1, %v675_v50  ;;  %6358 = vmatmul.mubr.msk.f32.gmra.mrb[2].mxu1 %vm250_vm1, %v7168_v51  ;;  %v7574_v50 = vld [vmem:[%s6999_s20 + $0x91] sm:$0xff] }
  0x3b   : >> { %6282 = vmatprep.mubr.msk.f32.mxu0 %vm250_vm1, %v7035_v17  ;;  %6370 = vmatprep.mubr.msk.f32.mxu1 %vm250_vm1, %v7174_v52  ;;  %v7341_v17 = vld [vmem:[%s6999_s20 + $0x5c] sm:$0xf] }
  0x3e   : >> { %6283 = vmatmul.mubr.msk.f32.vlgmr.msra.gmra.mrb[0].mxu0 %vm250_vm1, %v7047_v19  ;;  %6371 = vmatmul.mubr.msk.f32.vlgmr.msra.gmra.mrb[0].mxu1 %vm250_vm1, %v7186_v53  ;;  %v7361_v19 = vld [vmem:[%s6999_s20 + $0x68] sm:$0xff] }
  0x3f   : >> { %6289 = vmatpush3.msk.msra.mxu0 %vm263_vm0, %v5622_v49  ;;  %6385 = vmatpush3.msk.msra.mxu1 %vm263_vm0, %v5622_v49  ;;  %v7571_v49 = vld [vmem:[%s6999_s20 + $0x89] sm:$0xff] }
  0x40   : >> { %6285 = vmatprep.mubr.msk.f32.mxu0 %vm250_vm1, %v7051_v21  ;;  %6373 = vmatprep.mubr.msk.f32.mxu1 %vm250_vm1, %v7189_v54  ;;  %v5719_v21 = vld [vmem:[%s7825_s1 + $0x30] sm:$0x7] }
  0x41   : >> { %6312 = vmatprep.subr.msk.mxu0 %vm263_vm0, %v5642_v55  ;;  %6400 = vmatprep.subr.msk.mxu1 %vm263_vm0, %v5642_v55 }
  0x42   : >> { %6286 = vmatmul.mubr.msk.f32.gmra.mrb[2].mxu0 %vm250_vm1, %v7063_v24  ;;  %6374 = vmatmul.mubr.msk.f32.gmra.mrb[2].mxu1 %vm250_vm1, %v7201_v56  ;;  %v7396_v24 = vld [vmem:[%s6999_s20 + $0x69] sm:$0xff] }
  0x43   : >> { %6290 = vmatprep.mubr.msk.f32.mxu0 %vm250_vm1, %v7005_v8  ;;  %6386 = vmatprep.mubr.msk.f32.mxu1 %vm250_vm1, %v7208_v57  ;;  %v7278_v8 = vld [vmem:[%s6999_s20 + $0x43] sm:$0xff] }
  0x46   : >> { %6291 = vmatmul.mubr.msk.f32.vlgmr.msra.gmra.mrb[0].mxu0 %vm250_vm1, %v7012_v10  ;;  %6387 = vmatmul.mubr.msk.f32.vlgmr.msra.gmra.mrb[0].mxu1 %vm250_vm1, %v7221_v58  ;;  %v7294_v10 = vld [vmem:[%s6999_s20 + $0x53] sm:$0xff] }
  0x47   : >> { %6313 = vmatpush3.msk.msra.mxu0 %vm263_vm0, %v5642_v55  ;;  %6401 = vmatpush3.msk.msra.mxu1 %vm263_vm0, %v5642_v55  ;;  %v7609_v55 = vld [vmem:[%s6999_s20 + $0x92] sm:$0xff] }
  0x48   : >> { %6293 = vmatprep.mubr.msk.f32.mxu0 %vm250_vm1, %v7016_v12  ;;  %6389 = vmatprep.mubr.msk.f32.mxu1 %vm250_vm1, %v7224_v59  ;;  %v7306_v12 = vld [vmem:[%s6999_s20 + $0x5b] sm:$0xf] }
  0x49   : >> { %6328 = vmatprep.subr.msk.mxu0 %vm263_vm0, %v5657_v60  ;;  %6416 = vmatprep.subr.msk.mxu1 %vm263_vm0, %v5657_v60 }
  0x4a   : >> { %6294 = vmatmul.mubr.msk.f32.gmra.mrb[2].mxu0 %vm250_vm1, %v7028_v15  ;;  %6390 = vmatmul.mubr.msk.f32.gmra.mrb[2].mxu1 %vm250_vm1, %v7236_v61  ;;  %v7329_v15 = vld [vmem:[%s6999_s20 + $0x54] sm:$0xff] }
  0x4b   : >> { %6314 = vmatprep.mubr.msk.f32.mxu0 %vm250_vm1, %v7070_v26  ;;  %6402 = vmatprep.mubr.msk.f32.mxu1 %vm250_vm1, %v7243_v62  ;;  %v5734_v26 = vld [vmem:[%s7825_s1 + $0x34] sm:$0x7] }
  0x4e   : >> { %6315 = vmatmul.mubr.msk.f32.vlgmr.msra.gmra.mrb[0].mxu0 %vm250_vm1, %v7082_v28  ;;  %6403 = vmatmul.mubr.msk.f32.vlgmr.msra.gmra.mrb[0].mxu1 %vm250_vm1, %v7256_v63  ;;  %v7418_v28 = vld [vmem:[%s6999_s20 + $0x62] sm:$0xff] }
  0x4f   : >> { %6329 = vmatpush3.msk.msra.mxu0 %vm263_vm0, %v5657_v60  ;;  %6417 = vmatpush3.msk.msra.mxu1 %vm263_vm0, %v5657_v60  ;;  %v7644_v60 = vld [vmem:[%s6999_s20 + $0x93] sm:$0xff] }
  0x50   : >> { %6317 = vmatprep.mubr.msk.f32.mxu0 %vm250_vm1, %v7086_v30  ;;  %6405 = vmatprep.mubr.msk.f32.mxu1 %vm250_vm1, %v7259_v5  ;;  %v7434_v30 = vld [vmem:[%s6999_s20 + $0x72] sm:$0xff] }
  0x51   : >> { %6344 = vmatprep.subr.msk.mxu0 %vm263_vm0, %v5672_v6  ;;  %6432 = vmatprep.subr.msk.mxu1 %vm263_vm0, %v5672_v6 }
  0x52   : >> { %6318 = vmatmul.mubr.msk.f32.gmra.mrb[2].mxu0 %vm250_vm1, %v7098_v33  ;;  %6406 = vmatmul.mubr.msk.f32.gmra.mrb[2].mxu1 %vm250_vm1, %v7271_v7  ;;  %v7453_v33 = vld [vmem:[%s6999_s20 + $0x63] sm:$0xff] }
  0x53   : >> { %6330 = vmatprep.mubr.msk.f32.mxu0 %vm250_vm1, %v7105_v35  ;;  %6418 = vmatprep.mubr.msk.f32.mxu1 %vm250_vm1, %v7278_v8  ;;  %v7469_v35 = vld [vmem:[%s6999_s20 + $0x73] sm:$0xff] }
  0x56   : >> { %6331 = vmatmul.mubr.msk.f32.vlgmr.msra.gmra.mrb[0].mxu0 %vm250_vm1, %v7117_v37  ;;  %6419 = vmatmul.mubr.msk.f32.vlgmr.msra.gmra.mrb[0].mxu1 %vm250_vm1, %v7291_v9  ;;  %v7481_v37 = vld [vmem:[%s6999_s20 + $0x7b] sm:$0xf] }
  0x57   : >> { %6345 = vmatpush3.msk.msra.mxu0 %vm263_vm0, %v5672_v6  ;;  %6433 = vmatpush3.msk.msra.mxu1 %vm263_vm0, %v5672_v6  ;;  %v7679_v6 = vld [vmem:[%s6999_s20 + $0x94] sm:$0xff] }
  0x58   : >> { %6333 = vmatprep.mubr.msk.f32.mxu0 %vm250_vm1, %v7121_v39  ;;  %6421 = vmatprep.mubr.msk.f32.mxu1 %vm250_vm1, %v7294_v10  ;;  %v7501_v39 = vld [vmem:[%s6999_s20 + $0x6c] sm:$0xff] }
  0x59   : >> { %6360 = vmatprep.subr.msk.mxu0 %vm263_vm0, %v5689_v11  ;;  %6448 = vmatprep.subr.msk.mxu1 %vm263_vm0, %v5689_v11 }
  0x5a   : >> { %6334 = vmatmul.mubr.msk.f32.gmra.mrb[2].mxu0 %vm250_vm1, %v7133_v42  ;;  %6422 = vmatmul.mubr.msk.f32.gmra.mrb[2].mxu1 %vm250_vm1, %v7306_v12  ;;  %v7516_v42 = vld [vmem:[%s6999_s20 + $0x7c] sm:$0xf] }
  0x5b   : >> { %6346 = vmatprep.mubr.msk.f32.mxu0 %vm250_vm1, %v7140_v44  ;;  %6434 = vmatprep.mubr.msk.f32.mxu1 %vm250_vm1, %v7313_v13  ;;  %v7536_v44 = vld [vmem:[%s6999_s20 + $0x88] sm:$0xff] }
  0x5e   : >> { %6347 = vmatmul.mubr.msk.f32.vlgmr.msra.gmra.mrb[0].mxu0 %vm250_vm1, %v7152_v46  ;;  %6435 = vmatmul.mubr.msk.f32.vlgmr.msra.gmra.mrb[0].mxu1 %vm250_vm1, %v7326_v14  ;;  %v5796_v46 = vld [vmem:[%s7825_s1 + $0x44] sm:$0x7] }
  0x5f   : >> { %6361 = vmatpush3.msk.msra.mxu0 %vm263_vm0, %v5689_v11  ;;  %6449 = vmatpush3.msk.msra.mxu1 %vm263_vm0, %v5689_v11  ;;  %v5918_v11 = vld [vmem:[%s6999_s20 + $0xb0] sm:$0xff] }
  0x60   : >> { %6349 = vmatprep.mubr.msk.f32.mxu0 %vm250_vm1, %v7156_v48  ;;  %6437 = vmatprep.mubr.msk.f32.mxu1 %vm250_vm1, %v7329_v15  ;;  %v7558_v48 = vld [vmem:[%s6999_s20 + $0x81] sm:$0xff] }
  0x61   : >> { %6376 = vmatprep.subr.msk.mxu0 %vm263_vm0, %v5704_v16  ;;  %6464 = vmatprep.subr.msk.mxu1 %vm263_vm0, %v5704_v16 }
  0x62   : >> { %6350 = vmatmul.mubr.msk.f32.gmra.mrb[2].mxu0 %vm250_vm1, %v7168_v51  ;;  %6438 = vmatmul.mubr.msk.f32.gmra.mrb[2].mxu1 %vm250_vm1, %v7341_v17  ;;  %v5811_v51 = vld [vmem:[%s7825_s1 + $0x48] sm:$0x7] }
  0x63   : >> { %6362 = vmatprep.mubr.msk.f32.mxu0 %vm250_vm1, %v7174_v52  ;;  %6450 = vmatprep.mubr.msk.f32.mxu1 %vm250_vm1, %v7348_v18  ;;  %v7586_v52 = vld [vmem:[%s6999_s20 + $0x99] sm:$0xf] }
  0x66   : >> { %6363 = vmatmul.mubr.msk.f32.vlgmr.msra.gmra.mrb[0].mxu0 %vm250_vm1, %v7186_v53  ;;  %6451 = vmatmul.mubr.msk.f32.vlgmr.msra.gmra.mrb[0].mxu1 %vm250_vm1, %v7361_v19  ;;  %v7593_v53 = vld [vmem:[%s6999_s20 + $0x82] sm:$0xff] }
  0x67   : >> { %6377 = vmatpush3.msk.msra.mxu0 %vm263_vm0, %v5704_v16  ;;  %6465 = vmatpush3.msk.msra.mxu1 %vm263_vm0, %v5704_v16  ;;  %v5927_v16 = vld [vmem:[%s6999_s20 + $0xb1] sm:$0xff] }
  0x68   : >> { %6365 = vmatprep.mubr.msk.f32.mxu0 %vm250_vm1, %v7189_v54  ;;  %6453 = vmatprep.mubr.msk.f32.mxu1 %vm250_vm1, %v7364_v20  ;;  %v7606_v54 = vld [vmem:[%s6999_s20 + $0x8a] sm:$0xff] }
  0x69   : >> { %6392 = vmatprep.subr.msk.mxu0 %vm263_vm0, %v5719_v21  ;;  %6480 = vmatprep.subr.msk.mxu1 %vm263_vm0, %v5719_v21 }
  0x6a   : >> { %6366 = vmatmul.mubr.msk.f32.gmra.mrb[2].mxu0 %vm250_vm1, %v7201_v56  ;;  %6454 = vmatmul.mubr.msk.f32.gmra.mrb[2].mxu1 %vm250_vm1, %v7376_v22  ;;  %v5826_v56 = vld [vmem:[%s7825_s1 + $0x4c] sm:$0x7] }
  0x6b   : >> { %6378 = vmatprep.mubr.msk.f32.mxu0 %vm250_vm1, %v7208_v57  ;;  %6466 = vmatprep.mubr.msk.f32.mxu1 %vm250_vm1, %v7383_v23  ;;  %v7621_v57 = vld [vmem:[%s6999_s20 + $0x9a] sm:$0xf] }
  0x6e   : >> { %6379 = vmatmul.mubr.msk.f32.vlgmr.msra.gmra.mrb[0].mxu0 %vm250_vm1, %v7221_v58  ;;  %6467 = vmatmul.mubr.msk.f32.vlgmr.msra.gmra.mrb[0].mxu1 %vm250_vm1, %v7396_v24  ;;  %v7628_v58 = vld [vmem:[%s6999_s20 + $0x83] sm:$0xff] }
  0x6f   : >> { %6393 = vmatpush3.msk.msra.mxu0 %vm263_vm0, %v5719_v21  ;;  %6481 = vmatpush3.msk.msra.mxu1 %vm263_vm0, %v5719_v21  ;;  %v5936_v21 = vld [vmem:[%s6999_s20 + $0xb2] sm:$0xff] }
  0x70   : >> { %6381 = vmatprep.mubr.msk.f32.mxu0 %vm250_vm1, %v7224_v59  ;;  %6469 = vmatprep.mubr.msk.f32.mxu1 %vm250_vm1, %v7399_v25  ;;  %v7641_v59 = vld [vmem:[%s6999_s20 + $0x8b] sm:$0xff] }
  0x71   : >> { %6408 = vmatprep.subr.msk.mxu0 %vm263_vm0, %v5734_v26  ;;  %6496 = vmatprep.subr.msk.mxu1 %vm263_vm0, %v5734_v26 }
  0x72   : >> { %6382 = vmatmul.mubr.msk.f32.gmra.mrb[2].mxu0 %vm250_vm1, %v7236_v61  ;;  %6470 = vmatmul.mubr.msk.f32.gmra.mrb[2].mxu1 %vm250_vm1, %v7411_v27  ;;  %v5843_v61 = vld [vmem:[%s7825_s1 + $0x50] sm:$0x7] }
  0x73   : >> { %6394 = vmatprep.mubr.msk.f32.mxu0 %vm250_vm1, %v7243_v62  ;;  %6482 = vmatprep.mubr.msk.f32.mxu1 %vm250_vm1, %v7418_v28  ;;  %v7656_v62 = vld [vmem:[%s6999_s20 + $0x9b] sm:$0xf] }
  0x76   : >> { %6395 = vmatmul.mubr.msk.f32.vlgmr.msra.gmra.mrb[0].mxu0 %vm250_vm1, %v7256_v63  ;;  %6483 = vmatmul.mubr.msk.f32.vlgmr.msra.gmra.mrb[0].mxu1 %vm250_vm1, %v7431_v29  ;;  %v7663_v63 = vld [vmem:[%s6999_s20 + $0x84] sm:$0xff] }
  0x77   : >> { %6409 = vmatpush3.msk.msra.mxu0 %vm263_vm0, %v5734_v26  ;;  %6497 = vmatpush3.msk.msra.mxu1 %vm263_vm0, %v5734_v26  ;;  %v5945_v26 = vld [vmem:[%s6999_s20 + $0xb3] sm:$0xff] }
  0x78   : >> { %6397 = vmatprep.mubr.msk.f32.mxu0 %vm250_vm1, %v7259_v5  ;;  %6485 = vmatprep.mubr.msk.f32.mxu1 %vm250_vm1, %v7434_v30  ;;  %v7676_v5 = vld [vmem:[%s6999_s20 + $0x8c] sm:$0xff] }
  0x79   : >> { %6424 = vmatprep.subr.msk.mxu0 %vm263_vm0, %v5749_v31  ;;  %6512 = vmatprep.subr.msk.mxu1 %vm263_vm0, %v5749_v31 }
  0x7a   : >> { %6398 = vmatmul.mubr.msk.f32.gmra.mrb[2].mxu0 %vm250_vm1, %v7271_v7  ;;  %6486 = vmatmul.mubr.msk.f32.gmra.mrb[2].mxu1 %vm250_vm1, %v7446_v32  ;;  %v5858_v7 = vld [vmem:[%s7825_s1 + $0x54] sm:$0x7] }
  0x7b   : >> { %6410 = vmatprep.mubr.msk.f32.mxu0 %vm250_vm1, %v7278_v8  ;;  %6498 = vmatprep.mubr.msk.f32.mxu1 %vm250_vm1, %v7453_v33  ;;  %v7691_v8 = vld [vmem:[%s6999_s20 + $0x9c] sm:$0xf] }
  0x7e   : >> { %6411 = vmatmul.mubr.msk.f32.vlgmr.msra.gmra.mrb[0].mxu0 %vm250_vm1, %v7291_v9  ;;  %6499 = vmatmul.mubr.msk.f32.vlgmr.msra.gmra.mrb[0].mxu1 %vm250_vm1, %v7466_v34  ;;  %v5916_v9 = vld [vmem:[%s6999_s20 + $0xa0] sm:$0xff] }
  0x7f   : >> { %6425 = vmatpush3.msk.msra.mxu0 %vm263_vm0, %v5749_v31  ;;  %6513 = vmatpush3.msk.msra.mxu1 %vm263_vm0, %v5749_v31  ;;  %v5955_v31 = vld [vmem:[%s6999_s20 + $0xbc] sm:$0xf] }
  0x80   : >> { %6413 = vmatprep.mubr.msk.f32.mxu0 %vm250_vm1, %v7294_v10  ;;  %6501 = vmatprep.mubr.msk.f32.mxu1 %vm250_vm1, %v7469_v35  ;;  %v5917_v10 = vld [vmem:[%s6999_s20 + $0xa8] sm:$0xff] }
  0x81   : >> { %6440 = vmatprep.subr.msk.mxu0 %vm263_vm0, %v5766_v36  ;;  %6528 = vmatprep.subr.msk.mxu1 %vm263_vm0, %v5766_v36 }
  0x82   : >> { %6414 = vmatmul.mubr.msk.f32.gmra.mrb[2].mxu0 %vm250_vm1, %v7306_v12  ;;  %6502 = vmatmul.mubr.msk.f32.gmra.mrb[2].mxu1 %vm250_vm1, %v7481_v37  ;;  %v5873_v12 = vld [vmem:[%s7825_s1 + $0x58] sm:$0x7] }
  0x83   : >> { %6426 = vmatprep.mubr.msk.f32.mxu0 %vm250_vm1, %v7313_v13  ;;  %6514 = vmatprep.mubr.msk.f32.mxu1 %vm250_vm1, %v7488_v38  ;;  %v5919_v13 = vld [vmem:[%s6999_s20 + $0xb8] sm:$0xf] }
  0x86   : >> { %6427 = vmatmul.mubr.msk.f32.vlgmr.msra.gmra.mrb[0].mxu0 %vm250_vm1, %v7326_v14  ;;  %6515 = vmatmul.mubr.msk.f32.vlgmr.msra.gmra.mrb[0].mxu1 %vm250_vm1, %v7501_v39  ;;  %v5925_v14 = vld [vmem:[%s6999_s20 + $0xa1] sm:$0xff] }
  0x87   : >> { %6441 = vmatpush3.msk.msra.mxu0 %vm263_vm0, %v5766_v36  ;;  %6529 = vmatpush3.msk.msra.mxu1 %vm263_vm0, %v5766_v36 }
  0x88   : >> { %6429 = vmatprep.mubr.msk.f32.mxu0 %vm250_vm1, %v7329_v15  ;;  %6517 = vmatprep.mubr.msk.f32.mxu1 %vm250_vm1, %v7504_v40  ;;  %v5926_v15 = vld [vmem:[%s6999_s20 + $0xa9] sm:$0xff] }
  0x89   : >> { %6456 = vmatprep.subr.msk.mxu0 %vm263_vm0, %v5781_v41  ;;  %6544 = vmatprep.subr.msk.mxu1 %vm263_vm0, %v5781_v41 }
  0x8a   : >> { %6430 = vmatmul.mubr.msk.f32.gmra.mrb[2].mxu0 %vm250_vm1, %v7341_v17  ;;  %6518 = vmatmul.mubr.msk.f32.gmra.mrb[2].mxu1 %vm250_vm1, %v7516_v42  ;;  %v5888_v17 = vld [vmem:[%s7825_s1 + $0x5c] sm:$0x7] }
  0x8b   : >> { %6442 = vmatprep.mubr.msk.f32.mxu0 %vm250_vm1, %v7348_v18  ;;  %6530 = vmatprep.mubr.msk.f32.mxu1 %vm250_vm1, %v7523_v43  ;;  %v5928_v18 = vld [vmem:[%s6999_s20 + $0xb9] sm:$0xf] }
  0x8e   : >> { %6443 = vmatmul.mubr.msk.f32.vlgmr.msra.gmra.mrb[0].mxu0 %vm250_vm1, %v7361_v19  ;;  %6531 = vmatmul.mubr.msk.f32.vlgmr.msra.gmra.mrb[0].mxu1 %vm250_vm1, %v7536_v44  ;;  %v5934_v19 = vld [vmem:[%s6999_s20 + $0xa2] sm:$0xff] }
  0x8f   : >> { %6457 = vmatpush3.msk.msra.mxu0 %vm263_vm0, %v5781_v41  ;;  %6545 = vmatpush3.msk.msra.mxu1 %vm263_vm0, %v5781_v41 }
  0x90   : >> { %6445 = vmatprep.mubr.msk.f32.mxu0 %vm250_vm1, %v7364_v20  ;;  %6533 = vmatprep.mubr.msk.f32.mxu1 %vm250_vm1, %v7539_v45  ;;  %v5935_v20 = vld [vmem:[%s6999_s20 + $0xaa] sm:$0xff] }
  0x91   : >> { %6472 = vmatprep.subr.msk.mxu0 %vm263_vm0, %v5796_v46  ;;  %6560 = vmatprep.subr.msk.mxu1 %vm263_vm0, %v5796_v46 }
  0x92   : >> { %6446 = vmatmul.mubr.msk.f32.gmra.mrb[2].mxu0 %vm250_vm1, %v7376_v22  ;;  %6534 = vmatmul.mubr.msk.f32.gmra.mrb[2].mxu1 %vm250_vm1, %v7551_v47  ;;  %v5903_v22 = vld [vmem:[%s7825_s1 + $0x60] sm:$0x7] }
  0x93   : >> { %6458 = vmatprep.mubr.msk.f32.mxu0 %vm250_vm1, %v7383_v23  ;;  %6546 = vmatprep.mubr.msk.f32.mxu1 %vm250_vm1, %v7558_v48  ;;  %v5937_v23 = vld [vmem:[%s6999_s20 + $0xba] sm:$0xf] }
  0x96   : >> { %6459 = vmatmul.mubr.msk.f32.vlgmr.msra.gmra.mrb[0].mxu0 %vm250_vm1, %v7396_v24  ;;  %6547 = vmatmul.mubr.msk.f32.vlgmr.msra.gmra.mrb[0].mxu1 %vm250_vm1, %v7571_v49  ;;  %v5943_v24 = vld [vmem:[%s6999_s20 + $0xa3] sm:$0xff] }
  0x97   : >> { %6473 = vmatpush3.msk.msra.mxu0 %vm263_vm0, %v5796_v46  ;;  %6561 = vmatpush3.msk.msra.mxu1 %vm263_vm0, %v5796_v46 }
  0x98   : >> { %6461 = vmatprep.mubr.msk.f32.mxu0 %vm250_vm1, %v7399_v25  ;;  %6549 = vmatprep.mubr.msk.f32.mxu1 %vm250_vm1, %v7574_v50  ;;  %v5944_v25 = vld [vmem:[%s6999_s20 + $0xab] sm:$0xff] }
  0x99   : >> { %6488 = vmatprep.subr.msk.mxu0 %vm263_vm0, %v5811_v51  ;;  %6576 = vmatprep.subr.msk.mxu1 %vm263_vm0, %v5811_v51 }
  0x9a   : >> { %6462 = vmatmul.mubr.msk.f32.gmra.mrb[2].mxu0 %vm250_vm1, %v7411_v27  ;;  %6550 = vmatmul.mubr.msk.f32.gmra.mrb[2].mxu1 %vm250_vm1, %v7586_v52  ;;  %v5946_v27 = vld [vmem:[%s6999_s20 + $0xbb] sm:$0xf] }
  0x9b   : >> { %6474 = vmatprep.mubr.msk.f32.mxu0 %vm250_vm1, %v7418_v28  ;;  %6562 = vmatprep.mubr.msk.f32.mxu1 %vm250_vm1, %v7593_v53  ;;  %v5952_v28 = vld [vmem:[%s6999_s20 + $0xa4] sm:$0xff] }
  0x9e   : >> { %6475 = vmatmul.mubr.msk.f32.vlgmr.msra.gmra.mrb[0].mxu0 %vm250_vm1, %v7431_v29  ;;  %6563 = vmatmul.mubr.msk.f32.vlgmr.msra.gmra.mrb[0].mxu1 %vm250_vm1, %v7606_v54  ;;  %v5953_v29 = vld [vmem:[%s6999_s20 + $0xac] sm:$0xff] }
  0x9f   : >> { %6489 = vmatpush3.msk.msra.mxu0 %vm263_vm0, %v5811_v51  ;;  %6577 = vmatpush3.msk.msra.mxu1 %vm263_vm0, %v5811_v51 }
  0xa0   : >> { %6477 = vmatprep.mubr.msk.f32.mxu0 %vm250_vm1, %v7434_v30  ;;  %6565 = vmatprep.mubr.msk.f32.mxu1 %vm250_vm1, %v7609_v55  ;;  %v5954_v30 = vld [vmem:[%s6999_s20 + $0xb4] sm:$0xff]  ;;  %s5968_s20 = sshll.u32 %s6906_s13, 4  ;;  %s235_s13 = sadd.s32 1, %s6906_s13  }
  0xa1   : >> { %6504 = vmatprep.subr.msk.mxu0 %vm263_vm0, %v5826_v56  ;;  %6592 = vmatprep.subr.msk.mxu1 %vm263_vm0, %v5826_v56  ;;  %s5478_s27 = scalar_lea.vmem %s6980_s12, %s5968_s20  ;;  %p232_p4 = scmp.ge.s32.totalorder %s235_s13, 14  }
  0xa2   : >> { %6478 = vmatmul.mubr.msk.f32.gmra.mrb[2].mxu0 %vm250_vm1, %v7446_v32  ;;  %6566 = vmatmul.mubr.msk.f32.gmra.mrb[2].mxu1 %vm250_vm1, %v7621_v57 }
  0xa3   : >> { %6490 = vmatprep.mubr.msk.f32.mxu0 %vm250_vm1, %v7453_v33  ;;  %6578 = vmatprep.mubr.msk.f32.mxu1 %vm250_vm1, %v7628_v58 }
  0xa6   : >> { %6491 = vmatmul.mubr.msk.f32.vlgmr.msra.gmra.mrb[0].mxu0 %vm250_vm1, %v7466_v34  ;;  %6579 = vmatmul.mubr.msk.f32.vlgmr.msra.gmra.mrb[0].mxu1 %vm250_vm1, %v7641_v59 }
  0xa7   : >> { %6505 = vmatpush3.msk.msra.mxu0 %vm263_vm0, %v5826_v56  ;;  %6593 = vmatpush3.msk.msra.mxu1 %vm263_vm0, %v5826_v56 }
  0xa8   : >> { %6493 = vmatprep.mubr.msk.f32.mxu0 %vm250_vm1, %v7469_v35  ;;  %6581 = vmatprep.mubr.msk.f32.mxu1 %vm250_vm1, %v7644_v60 }
  0xa9   : >> { %6520 = vmatprep.subr.msk.mxu0 %vm263_vm0, %v5843_v61  ;;  %6600 = vmatprep.subr.msk.mxu1 %vm263_vm0, %v5843_v61 }
  0xaa   : >> { %6494 = vmatmul.mubr.msk.f32.gmra.mrb[2].mxu0 %vm250_vm1, %v7481_v37  ;;  %6582 = vmatmul.mubr.msk.f32.gmra.mrb[2].mxu1 %vm250_vm1, %v7656_v62 }
  0xab   : >> { %6506 = vmatprep.mubr.msk.f32.mxu0 %vm250_vm1, %v7488_v38  ;;  %6594 = vmatprep.mubr.msk.f32.mxu1 %vm250_vm1, %v7663_v63 }
  0xae   : >> { %6507 = vmatmul.mubr.msk.f32.vlgmr.msra.gmra.mrb[0].mxu0 %vm250_vm1, %v7501_v39  ;;  %6595 = vmatmul.mubr.msk.f32.vlgmr.msra.gmra.mrb[0].mxu1 %vm250_vm1, %v7676_v5 }
  0xaf   : >> { %6521 = vmatpush3.msk.msra.mxu0 %vm263_vm0, %v5843_v61  ;;  %6601 = vmatpush3.msk.msra.mxu1 %vm263_vm0, %v5843_v61 }
  0xb0   : >> { %6509 = vmatprep.mubr.msk.f32.mxu0 %vm250_vm1, %v7504_v40  ;;  %6597 = vmatprep.mubr.msk.f32.mxu1 %vm250_vm1, %v7679_v6 }
  0xb1   : >> { %6536 = vmatprep.subr.msk.mxu0 %vm263_vm0, %v5858_v7  ;;  %6608 = vmatprep.subr.msk.mxu1 %vm263_vm0, %v5858_v7 }
  0xb2   : >> { %6510 = vmatmul.mubr.msk.f32.gmra.mrb[2].mxu0 %vm250_vm1, %v7516_v42  ;;  %6598 = vmatmul.mubr.msk.f32.gmra.mrb[2].mxu1 %vm250_vm1, %v7691_v8 }
  0xb3   : >> { %6522 = vmatprep.mubr.msk.f32.mxu0 %vm250_vm1, %v7523_v43  ;;  %6602 = vmatprep.mubr.msk.f32.mxu1 %vm250_vm1, %v5916_v9 }
  0xb6   : >> { %6523 = vmatmul.mubr.msk.f32.vlgmr.msra.gmra.mrb[0].mxu0 %vm250_vm1, %v7536_v44  ;;  %6603 = vmatmul.mubr.msk.f32.vlgmr.msra.gmra.mrb[0].mxu1 %vm250_vm1, %v5917_v10 }
  0xb7   : >> { %6537 = vmatpush3.msk.msra.mxu0 %vm263_vm0, %v5858_v7  ;;  %6609 = vmatpush3.msk.msra.mxu1 %vm263_vm0, %v5858_v7 }
  0xb8   : >> { %6525 = vmatprep.mubr.msk.f32.mxu0 %vm250_vm1, %v7539_v45  ;;  %6605 = vmatprep.mubr.msk.f32.mxu1 %vm250_vm1, %v5918_v11 }
  0xb9   : >> { %6552 = vmatprep.subr.msk.mxu0 %vm263_vm0, %v5873_v12  ;;  %6616 = vmatprep.subr.msk.mxu1 %vm263_vm0, %v5873_v12 }
  0xba   : >> { %6526 = vmatmul.mubr.msk.f32.gmra.mrb[2].mxu0 %vm250_vm1, %v7551_v47  ;;  %6606 = vmatmul.mubr.msk.f32.gmra.mrb[2].mxu1 %vm250_vm1, %v5919_v13 }
  0xbb   : >> { %6538 = vmatprep.mubr.msk.f32.mxu0 %vm250_vm1, %v7558_v48  ;;  %6610 = vmatprep.mubr.msk.f32.mxu1 %vm250_vm1, %v5925_v14 }
  0xbe   : >> { %6539 = vmatmul.mubr.msk.f32.vlgmr.msra.gmra.mrb[0].mxu0 %vm250_vm1, %v7571_v49  ;;  %6611 = vmatmul.mubr.msk.f32.vlgmr.msra.gmra.mrb[0].mxu1 %vm250_vm1, %v5926_v15 }
  0xbf   : >> { %6553 = vmatpush3.msk.msra.mxu0 %vm263_vm0, %v5873_v12  ;;  %6617 = vmatpush3.msk.msra.mxu1 %vm263_vm0, %v5873_v12 }
  0xc0   : >> { %6541 = vmatprep.mubr.msk.f32.mxu0 %vm250_vm1, %v7574_v50  ;;  %6613 = vmatprep.mubr.msk.f32.mxu1 %vm250_vm1, %v5927_v16 }
  0xc1   : >> { %6568 = vmatprep.subr.msk.mxu0 %vm263_vm0, %v5888_v17  ;;  %6624 = vmatprep.subr.msk.mxu1 %vm263_vm0, %v5888_v17 }
  0xc2   : >> { %6542 = vmatmul.mubr.msk.f32.gmra.mrb[2].mxu0 %vm250_vm1, %v7586_v52  ;;  %6614 = vmatmul.mubr.msk.f32.gmra.mrb[2].mxu1 %vm250_vm1, %v5928_v18 }
  0xc3   : >> { %6554 = vmatprep.mubr.msk.f32.mxu0 %vm250_vm1, %v7593_v53  ;;  %6618 = vmatprep.mubr.msk.f32.mxu1 %vm250_vm1, %v5934_v19 }
  0xc6   : >> { %6555 = vmatmul.mubr.msk.f32.vlgmr.msra.gmra.mrb[0].mxu0 %vm250_vm1, %v7606_v54  ;;  %6619 = vmatmul.mubr.msk.f32.vlgmr.msra.gmra.mrb[0].mxu1 %vm250_vm1, %v5935_v20 }
  0xc7   : >> { %6569 = vmatpush3.msk.msra.mxu0 %vm263_vm0, %v5888_v17  ;;  %6625 = vmatpush3.msk.msra.mxu1 %vm263_vm0, %v5888_v17 }
  0xc8   : >> { %6557 = vmatprep.mubr.msk.f32.mxu0 %vm250_vm1, %v7609_v55  ;;  %6621 = vmatprep.mubr.msk.f32.mxu1 %vm250_vm1, %v5936_v21 }
  0xc9   : >> { %6584 = vmatprep.subr.msk.mxu0 %vm263_vm0, %v5903_v22  ;;  %6632 = vmatprep.subr.msk.mxu1 %vm263_vm0, %v5903_v22 }
  0xca   : >> { %6558 = vmatmul.mubr.msk.f32.gmra.mrb[2].mxu0 %vm250_vm1, %v7621_v57  ;;  %6622 = vmatmul.mubr.msk.f32.gmra.mrb[2].mxu1 %vm250_vm1, %v5937_v23 }
  0xcb   : >> { %6570 = vmatprep.mubr.msk.f32.mxu0 %vm250_vm1, %v7628_v58  ;;  %6626 = vmatprep.mubr.msk.f32.mxu1 %vm250_vm1, %v5943_v24 }
  0xce   : >> { %6571 = vmatmul.mubr.msk.f32.vlgmr.msra.gmra.mrb[0].mxu0 %vm250_vm1, %v7641_v59  ;;  %6627 = vmatmul.mubr.msk.f32.vlgmr.msra.gmra.mrb[0].mxu1 %vm250_vm1, %v5944_v25 }
  0xcf   : >> { %6585 = vmatpush3.msk.msra.mxu0 %vm263_vm0, %v5903_v22  ;;  %6633 = vmatpush3.msk.msra.mxu1 %vm263_vm0, %v5903_v22 }
  0xd0   : >> { %6573 = vmatprep.mubr.msk.f32.mxu0 %vm250_vm1, %v7644_v60  ;;  %6629 = vmatprep.mubr.msk.f32.mxu1 %vm250_vm1, %v5945_v26 }
  0xd2   : >> { %6574 = vmatmul.mubr.msk.f32.gmra.mrb[2].mxu0 %vm250_vm1, %v7656_v62  ;;  %6630 = vmatmul.mubr.msk.f32.gmra.mrb[2].mxu1 %vm250_vm1, %v5946_v27 }
  0xd3   : >> { %6586 = vmatprep.mubr.msk.f32.mxu0 %vm250_vm1, %v7663_v63  ;;  %6634 = vmatprep.mubr.msk.f32.mxu1 %vm250_vm1, %v5952_v28 }
  0xd6   : >> { %6587 = vmatmul.mubr.msk.f32.vlgmr.msra.gmra.mrb[0].mxu0 %vm250_vm1, %v7676_v5  ;;  %6635 = vmatmul.mubr.msk.f32.vlgmr.msra.gmra.mrb[0].mxu1 %vm250_vm1, %v5953_v29 }
  0xd7   : >> { %6589 = vmatprep.mubr.msk.f32.mxu0 %vm250_vm1, %v7679_v6  ;;  %6637 = vmatprep.mubr.msk.f32.mxu1 %vm250_vm1, %v5954_v30 }
  0xda   : >> { %6590 = vmatmul.mubr.msk.f32.gmra.mrb[2].mxu0 %vm250_vm1, %v7691_v8  ;;  %6638 = vmatmul.mubr.msk.f32.gmra.mrb[2].mxu1 %vm250_vm1, %v5955_v31 }
  0xdb   : >> { %6648 = vmatprep.mubr.msk.f32.mxu0 %vm5298_vm2, %v6955_v1  ;;  %6659 = vmatprep.mubr.msk.f32.mxu1 %vm5298_vm2, %v6965_v3 }
 0x1a9   : >> { %v6588_v32 = vpop.f32.mrb[0].mxu0  ;;  %v6636_v33 = vpop.f32.mrb[0].mxu1 }
 0x1aa   : >> { %v5295_v34 = vmax.f32 %v6588_v32, %v6636_v33  ;;  %v4654_v35 = vpop.f32.mrb[1].mxu0  ;;  %v5271_v36 = vpop.f32.mrb[1].mxu1 }
 0x1ab   : >> { %v5294_v37 = vmax.f32 %v4654_v35, %v5271_v36 }
 0x1ad   : >> { %v6662_v38 = vpack.c.bf16 %v5295_v34, %v5294_v37  ;;  %v6591_v39 = vpop.f32.mrb[2].mxu0  ;;  %v6639_v40 = vpop.f32.mrb[2].mxu1 }
 0x1ae   : >> { %v5297_v41 = vmax.f32 %v6591_v39, %v6639_v40  ;;  %v4664_v42 = vpop.f32.mrb[3].mxu0  ;;  %v5281_v43 = vpop.f32.mrb[3].mxu1 }
 0x1af   : >> { %v5296_v44 = vmax.f32 %v4664_v42, %v5281_v43  ;;  %6663 = vmatprep.subr.bf16.mxu0 %v6662_v38  ;;  %6673 = vmatprep.subr.bf16.mxu1 %v6662_v38 }
 0x1b0   : >> { %6665 = vmatpush3.bf16.msra.mxu0 %v6662_v38  ;;  %6675 = vmatpush3.bf16.msra.mxu1 %v6662_v38 }
 0x1b1   : >> { %v6666_v45 = vpack.c.bf16 %v5297_v41, %v5296_v44 }
 0x1b3   : >> { %6668 = vmatprep.subr.msk.bf16.mxu0 %vm6667_vm5, %v6666_v45  ;;  %6678 = vmatprep.subr.msk.bf16.mxu1 %vm6667_vm5, %v6666_v45 }
 0x1b4   : >> { %6671 = vmatpush3.bf16.msk.msra.mxu0 %vm6667_vm5, %v6666_v45  ;;  %6681 = vmatpush3.bf16.msk.msra.mxu1 %vm6667_vm5, %v6666_v45 }
 0x1b7   : >> { %6649 = vmatmul.mubr.msk.f32.vlgmr.msra.gmra.mrb[4].mxu0 %vm5298_vm2, %v6960_v2  ;;  %6660 = vmatmul.mubr.msk.f32.vlgmr.msra.gmra.mrb[4].mxu1 %vm5298_vm2, %v6970_v4 }
 0x28a   : >> { %v6650_v46 = vpop.f32.mrb[4].mxu0  ;;  %v6661_v47 = vpop.f32.mrb[4].mxu1 }
 0x28b   : >> { %v5466_v48 = vmax.f32 %v6650_v46, %v6661_v47  ;;  %v5375_v49 = vpop.f32.mrb[5].mxu0  ;;  %v5456_v50 = vpop.f32.mrb[5].mxu1 }
 0x28c   : >> { %v5465_v51 = vmax.f32 %v5375_v49, %v5456_v50  ;;  %234 = sbr.rel (!%p232_p4) target bundleno = 17 (0x11), region = 108 }
 0x28d   : >> { %v5474_v52 = vadd.f32 %v6950_v0, %v5466_v48 }
 0x28e   : >> { %v5473_v53 = vadd.f32 %v6950_v0, %v5465_v51 }
 0x28f   : >> { %v5476_v54 = vmax.f32 %v5474_v52, 0.0 }
 0x290   : >> { %v5475_v55 = vmax.f32 %v5473_v53, 0.0 }
 0x291   : >> { %5482 = vst.msk [vmem:[%s5478_s27 + $0x8] sm:$0x3f] %vm5481_vm6, %v5476_v54 }
 0x292   : >> { %5480 = vst.msk [vmem:[%s5478_s27] sm:$0xff] %vm5479_vm7, %v5475_v55 }
 0x293 PF: > { %s15_s18 = sadd.s32 1, %s6902_s18  }
 0x294   : > { %p12_p5 = scmp.ge.s32.totalorder %s15_s18, 4  }
 0x296   :  { %14 = sbr.rel (!%p12_p5) target bundleno = 1 (0x1), region = 119 }

</bundles_post_ra>
